<compile_context>
chip_gen: v7x
topology: tpu7x:2x2x1
jax: 0.10.0
libtpu: 0.0.40
codegen_flags: <defaults>
</compile_context>

<pallas_src>
import functools

import jax
import jax.numpy as jnp
from jax.experimental import pallas as pl
from jax.experimental.pallas import tpu as pltpu

INPUT_SIZE = 12
HIDDEN_SIZE = 32      # scaled down from 256 for the small synthetic test
NUM_LAYERS = 2        # kernel below is written for exactly 2 layers (spec value)
NUM_CLASSES = 12
BIDIRECTIONAL = True
NUM_DIRS = 2
BATCH = 2
SEQ = 8

assert NUM_LAYERS == 2 and BIDIRECTIONAL and NUM_DIRS == 2


def _fused_gru_kernel(T, Bp, B, H,
                      x_ref, wi_ref, wh_ref, b_ref, fcw_ref, fcb_ref,
                      out_ref, l0_ref):
    """Whole model in one kernel.

    x_ref  : (T*Bp, 2H) time-major, batch-padded, lane-padded input, VMEM f32.
    wi_ref : (4, 2H, 3H) fused input-projection weights per (layer, dir).
    wh_ref : (4, H, 3H)  fused recurrent weights per (layer, dir).
    b_ref  : (4, 2, 3H)  row 0 = [b_ir+b_hr | b_iz+b_hz | b_in],
                         row 1 = [0 | 0 | b_hn].
    fcw_ref: (2H, C) classifier weight (transposed), fcb_ref: (1, C).
    out_ref: (B, C) logits.  l0_ref: (T*Bp, 2H) VMEM scratch for layer-0 out.
    Index order for the leading axis of wi/wh/b: layer*2 + dir.
    """
    H2, H3 = 2 * H, 3 * H

    def make_step(idx):
        # Fused recurrent weight + hoisted n-gate hidden-bias broadcast (JAX
        # does not CSE broadcast_in_dim, so hoist it out of the unrolled loop).
        wh = wh_ref[idx]                                    # (H, 3H)
        bias = b_ref[idx]                                   # (2, 3H)
        bh = jnp.broadcast_to(bias[1:2, :], (Bp, H3))       # [0 | 0 | b_hn]

        def step(h, gi):
            # Single MXU push per timestep per direction.
            gh = jnp.dot(h, wh, preferred_element_type=jnp.float32) + bh
            rz = jax.nn.sigmoid(gi[:, :H2] + gh[:, :H2])    # one EUP push (r|z)
            n = jnp.tanh(gi[:, H2:] + rz[:, :H] * gh[:, H2:])
            return n + rz[:, H:] * (h - n)                  # (1-z)*n + z*h

        return step

    def input_proj(x, idx):
        # Hoisted, gate-fused input projection: one dot per (layer, dir).
        return (jnp.dot(x, wi_ref[idx], preferred_element_type=jnp.float32)
                + b_ref[idx][0:1, :])

    def row(m, t):                                          # 8-aligned row slab
        return m[t * Bp:(t + 1) * Bp, :]

    # ------------------------- layer 0 ---------------------------------------
    x_all = x_ref[...]                                      # (T*Bp, 2H)
    gi0_f = input_proj(x_all, 0)                            # (T*Bp, 3H)
    gi0_b = input_proj(x_all, 1)
    step0_f, step0_b = make_step(0), make_step(1)

    h_f = jnp.zeros((Bp, H), jnp.float32)
    h_b = jnp.zeros((Bp, H), jnp.float32)
    for i in range(T):                  # static unroll; fwd/bwd chains are
        tf, tb = i, T - 1 - i           # independent -> latencies overlap
        h_f = step0_f(h_f, row(gi0_f, tf))
        h_b = step0_b(h_b, row(gi0_b, tb))
        l0_ref[tf * Bp:(tf + 1) * Bp, :H] = h_f             # fwd lanes [:H]
        l0_ref[tb * Bp:(tb + 1) * Bp, H:] = h_b             # bwd lanes [H:]

    l0 = l0_ref[...]                                        # (T*Bp, 2H), VMEM

    # ------------------------- layer 1 (last) --------------------------------
    # Reverse direction: out[:, -1, H:] is a SINGLE GRU step from h0 = 0 on the
    # last layer-0 timestep, so the full reverse recurrence is skipped.
    h1_b = make_step(3)(jnp.zeros((Bp, H), jnp.float32),
                        input_proj(row(l0, T - 1), 3))

    # Forward direction: full recurrence, only the final hidden state kept.
    gi1_f = input_proj(l0, 2)                               # (T*Bp, 3H), 1 dot
    step1_f = make_step(2)
    h1_f = jnp.zeros((Bp, H), jnp.float32)
    for t in range(T):
        h1_f = step1_f(h1_f, row(gi1_f, t))

    # ------------------------- fused classifier ------------------------------
    fc_w = fcw_ref[...]                                     # (2H, C)
    logits = (jnp.dot(h1_f, fc_w[:H], preferred_element_type=jnp.float32)
              + jnp.dot(h1_b, fc_w[H:], preferred_element_type=jnp.float32)
              + fcb_ref[...])
    out_ref[...] = logits[:B]                               # drop padded rows


def prepare_params(params):
    """One-time weight preprocessing (outside the jitted forward).

    Produces 5 packed arrays:
      wi_all (4, 2H, 3H): per-(layer,dir) gate-fused, transposed input weights
                          (layer-0 rows zero-padded from INPUT_SIZE to 2H),
      wh_all (4, H, 3H) : gate-fused, transposed recurrent weights,
      b_all  (4, 2, 3H) : row 0 = [b_ir+b_hr | b_iz+b_hz | b_in],
                          row 1 = [0 | 0 | b_hn],
      fc_wT  (2H, C), fc_b (1, C).
    """
    H = HIDDEN_SIZE
    D_pad = 2 * H
    wi_all, wh_all, b_all = [], [], []
    for layer in range(NUM_LAYERS):
        for d in range(NUM_DIRS):
            wih, whh, bih, bhh = params["gru"][(layer, d)]          # torch layout
            d_in = wih.shape[1]
            wi = jnp.concatenate([wih[g * H:(g + 1) * H].T for g in range(3)],
                                 axis=1)                            # (d_in, 3H)
            wi = jnp.pad(wi, ((0, D_pad - d_in), (0, 0)))           # (2H, 3H)
            wh = jnp.concatenate([whh[g * H:(g + 1) * H].T for g in range(3)],
                                 axis=1)                            # (H, 3H)
            b_i = [bih[g * H:(g + 1) * H] for g in range(3)]
            b_h = [bhh[g * H:(g + 1) * H] for g in range(3)]
            b_gi = jnp.concatenate([b_i[0] + b_h[0], b_i[1] + b_h[1], b_i[2]])
            b_gh = jnp.concatenate([jnp.zeros((2 * H,), jnp.float32), b_h[2]])
            wi_all.append(wi)
            wh_all.append(wh)
            b_all.append(jnp.stack([b_gi, b_gh], axis=0))           # (2, 3H)
    return (jnp.stack(wi_all), jnp.stack(wh_all), jnp.stack(b_all),
            params["fc_w"].T, params["fc_b"][None, :])


@jax.jit
def gru_forward(x, prepared):
    """x: (B, T, INPUT_SIZE) batch-first -> (B, NUM_CLASSES) logits."""
    B, T, D = x.shape
    H = HIDDEN_SIZE
    Bp = max(8, ((B + 7) // 8) * 8)       # pad batch to the 8-sublane granule
    D_pad = 2 * H                         # common lane width for both layers
    assert D <= D_pad
    # time-major, batch-padded, lane-padded, flattened so every per-timestep
    # slab starts on an (8,128)-aligned boundary and the in-kernel input
    # projection is one matmul per direction.
    xt = jnp.transpose(x, (1, 0, 2))                              # (T, B, D)
    xt = jnp.pad(xt, ((0, 0), (0, Bp - B), (0, D_pad - D)))
    x2d = xt.reshape(T * Bp, D_pad)

    wi_all, wh_all, b_all, fc_wT, fc_b = prepared
    vmem = pl.BlockSpec(memory_space=pltpu.MemorySpace.VMEM)
    kernel = functools.partial(_fused_gru_kernel, T, Bp, B, H)
    return pl.pallas_call(
        kernel,
        out_shape=jax.ShapeDtypeStruct((B, NUM_CLASSES), jnp.float32),
        in_specs=[vmem] * 6,
        out_specs=vmem,
        scratch_shapes=[pltpu.VMEM((T * Bp, 2 * H), jnp.float32)],
    )(x2d, wi_all, wh_all, b_all, fc_wT, fc_b)


def init_params(key):
    params = {"gru": {}}
    keys = iter(jax.random.split(key, NUM_LAYERS * NUM_DIRS * 4 + 2))
    k = 1.0 / float(jnp.sqrt(HIDDEN_SIZE))
    for layer in range(NUM_LAYERS):
        in_size = INPUT_SIZE if layer == 0 else HIDDEN_SIZE * NUM_DIRS
        for d in range(NUM_DIRS):
            wih = jax.random.uniform(next(keys), (3 * HIDDEN_SIZE, in_size),
                                     jnp.float32, -k, k)
            whh = jax.random.uniform(next(keys), (3 * HIDDEN_SIZE, HIDDEN_SIZE),
                                     jnp.float32, -k, k)
            bih = jax.random.uniform(next(keys), (3 * HIDDEN_SIZE,),
                                     jnp.float32, -k, k)
            bhh = jax.random.uniform(next(keys), (3 * HIDDEN_SIZE,),
                                     jnp.float32, -k, k)
            params["gru"][(layer, d)] = (wih, whh, bih, bhh)
    fc_in = HIDDEN_SIZE * NUM_DIRS
    kf = 1.0 / float(jnp.sqrt(fc_in))
    params["fc_w"] = jax.random.uniform(next(keys), (NUM_CLASSES, fc_in),
                                        jnp.float32, -kf, kf)
    params["fc_b"] = jax.random.uniform(next(keys), (NUM_CLASSES,),
                                        jnp.float32, -kf, kf)
    return params


def gru_reference(x, params):
    """Pure-JAX reference with identical PyTorch GRU semantics."""
    B, T, _ = x.shape
    layer_in = x
    for layer in range(NUM_LAYERS):
        outs = []
        for d in range(NUM_DIRS):
            wih, whh, bih, bhh = params["gru"][(layer, d)]
            H = whh.shape[1]
            h = jnp.zeros((B, H), jnp.float32)
            ys = [None] * T
            order = range(T - 1, -1, -1) if d == 1 else range(T)
            for t in order:
                x_t = layer_in[:, t, :]
                gi = x_t @ wih.T + bih
                gh = h @ whh.T + bhh
                r = jax.nn.sigmoid(gi[:, :H] + gh[:, :H])
                z = jax.nn.sigmoid(gi[:, H:2 * H] + gh[:, H:2 * H])
                n = jnp.tanh(gi[:, 2 * H:] + r * gh[:, 2 * H:])
                h = (1.0 - z) * n + z * h
                ys[t] = h
            outs.append(jnp.stack(ys, axis=1))
        layer_in = jnp.concatenate(outs, axis=-1)
    return layer_in[:, -1, :] @ params["fc_w"].T + params["fc_b"]


if __name__ == "__main__":
    key = jax.random.PRNGKey(0)
    kx, kp = jax.random.split(key)
    x = jax.random.normal(kx, (BATCH, SEQ, INPUT_SIZE), jnp.float32)
    params = init_params(kp)
    prepared = prepare_params(params)

    out = jax.block_until_ready(gru_forward(x, prepared))
    ref = gru_reference(x, params)

    assert out.shape == (BATCH, NUM_CLASSES), out.shape
    if not bool(jnp.allclose(out, ref, atol=1e-4, rtol=1e-4)):
        raise AssertionError("Pallas GRU output does not match reference")
    print("KERNEL_OK")
</pallas_src>

<mosaic_0001>
module attributes {stable_mosaic.version = 11 : i64} {
  func.func @_fused_gru_kernel(%arg0: memref<64x64xf32, #tpu.memory_space<vmem>>, %arg1: memref<4x64x96xf32, #tpu.memory_space<vmem>>, %arg2: memref<4x32x96xf32, #tpu.memory_space<vmem>>, %arg3: memref<4x2x96xf32, #tpu.memory_space<vmem>>, %arg4: memref<64x12xf32, #tpu.memory_space<vmem>>, %arg5: memref<1x12xf32, #tpu.memory_space<vmem>>, %arg6: memref<2x12xf32, #tpu.memory_space<vmem>>, %arg7: memref<64x64xf32, #tpu.memory_space<vmem>>) attributes {dimension_semantics = [], scalar_prefetch = 0 : i64, scratch_operands = 1 : i64, tpu.core_type = #tpu.core_type<tc>} {
    %c0 = arith.constant 0 : index
    %c0_0 = arith.constant 0 : index
    %0 = vector.load %arg0[%c0, %c0_0] : memref<64x64xf32, #tpu.memory_space<vmem>>, vector<64x64xf32>
    %c0_1 = arith.constant 0 : index
    %c0_2 = arith.constant 0 : index
    %c0_3 = arith.constant 0 : index
    %1 = vector.load %arg1[%c0_1, %c0_2, %c0_3] : memref<4x64x96xf32, #tpu.memory_space<vmem>>, vector<1x64x96xf32>
    %2 = vector.shape_cast %1 : vector<1x64x96xf32> to vector<64x96xf32>
    %cst = arith.constant dense<0.000000e+00> : vector<64x96xf32>
    %3 = tpu.matmul %0, %2, %cst {dimension_numbers = #tpu.dot_dimension_numbers<[1], [0], [0], [1], [0, 0, 1, 1], [], []>} : vector<64x64xf32>, vector<64x96xf32>, vector<64x96xf32> -> vector<64x96xf32>
    %c0_4 = arith.constant 0 : index
    %c0_5 = arith.constant 0 : index
    %c0_6 = arith.constant 0 : index
    %4 = vector.load %arg3[%c0_4, %c0_5, %c0_6] : memref<4x2x96xf32, #tpu.memory_space<vmem>>, vector<1x2x96xf32>
    %5 = vector.shape_cast %4 : vector<1x2x96xf32> to vector<2x96xf32>
    %6 = vector.extract_strided_slice %5 {offsets = [0, 0], sizes = [1, 96], strides = [1, 1]} : vector<2x96xf32> to vector<1x96xf32>
    %7 = vector.broadcast %6 : vector<1x96xf32> to vector<64x96xf32>
    %8 = arith.addf %3, %7 : vector<64x96xf32>
    %c1 = arith.constant 1 : index
    %c0_7 = arith.constant 0 : index
    %c0_8 = arith.constant 0 : index
    %9 = vector.load %arg1[%c1, %c0_7, %c0_8] : memref<4x64x96xf32, #tpu.memory_space<vmem>>, vector<1x64x96xf32>
    %10 = vector.shape_cast %9 : vector<1x64x96xf32> to vector<64x96xf32>
    %cst_9 = arith.constant dense<0.000000e+00> : vector<64x96xf32>
    %11 = tpu.matmul %0, %10, %cst_9 {dimension_numbers = #tpu.dot_dimension_numbers<[1], [0], [0], [1], [0, 0, 1, 1], [], []>} : vector<64x64xf32>, vector<64x96xf32>, vector<64x96xf32> -> vector<64x96xf32>
    %c1_10 = arith.constant 1 : index
    %c0_11 = arith.constant 0 : index
    %c0_12 = arith.constant 0 : index
    %12 = vector.load %arg3[%c1_10, %c0_11, %c0_12] : memref<4x2x96xf32, #tpu.memory_space<vmem>>, vector<1x2x96xf32>
    %13 = vector.shape_cast %12 : vector<1x2x96xf32> to vector<2x96xf32>
    %14 = vector.extract_strided_slice %13 {offsets = [0, 0], sizes = [1, 96], strides = [1, 1]} : vector<2x96xf32> to vector<1x96xf32>
    %15 = vector.broadcast %14 : vector<1x96xf32> to vector<64x96xf32>
    %16 = arith.addf %11, %15 : vector<64x96xf32>
    %c0_13 = arith.constant 0 : index
    %c0_14 = arith.constant 0 : index
    %c0_15 = arith.constant 0 : index
    %17 = vector.load %arg2[%c0_13, %c0_14, %c0_15] : memref<4x32x96xf32, #tpu.memory_space<vmem>>, vector<1x32x96xf32>
    %18 = vector.shape_cast %17 : vector<1x32x96xf32> to vector<32x96xf32>
    %c0_16 = arith.constant 0 : index
    %c0_17 = arith.constant 0 : index
    %c0_18 = arith.constant 0 : index
    %19 = vector.load %arg3[%c0_16, %c0_17, %c0_18] : memref<4x2x96xf32, #tpu.memory_space<vmem>>, vector<1x2x96xf32>
    %20 = vector.shape_cast %19 : vector<1x2x96xf32> to vector<2x96xf32>
    %21 = vector.extract_strided_slice %20 {offsets = [1, 0], sizes = [1, 96], strides = [1, 1]} : vector<2x96xf32> to vector<1x96xf32>
    %22 = vector.shape_cast %21 : vector<1x96xf32> to vector<1x96xf32>
    %23 = vector.broadcast %22 : vector<1x96xf32> to vector<8x96xf32>
    %c1_19 = arith.constant 1 : index
    %c0_20 = arith.constant 0 : index
    %c0_21 = arith.constant 0 : index
    %24 = vector.load %arg2[%c1_19, %c0_20, %c0_21] : memref<4x32x96xf32, #tpu.memory_space<vmem>>, vector<1x32x96xf32>
    %25 = vector.shape_cast %24 : vector<1x32x96xf32> to vector<32x96xf32>
    %c1_22 = arith.constant 1 : index
    %c0_23 = arith.constant 0 : index
    %c0_24 = arith.constant 0 : index
    %26 = vector.load %arg3[%c1_22, %c0_23, %c0_24] : memref<4x2x96xf32, #tpu.memory_space<vmem>>, vector<1x2x96xf32>
    %27 = vector.shape_cast %26 : vector<1x2x96xf32> to vector<2x96xf32>
    %28 = vector.extract_strided_slice %27 {offsets = [1, 0], sizes = [1, 96], strides = [1, 1]} : vector<2x96xf32> to vector<1x96xf32>
    %29 = vector.shape_cast %28 : vector<1x96xf32> to vector<1x96xf32>
    %30 = vector.broadcast %29 : vector<1x96xf32> to vector<8x96xf32>
    %cst_25 = arith.constant 0.000000e+00 : f32
    %31 = vector.broadcast %cst_25 : f32 to vector<8x32xf32>
    %cst_26 = arith.constant 0.000000e+00 : f32
    %32 = vector.broadcast %cst_26 : f32 to vector<8x32xf32>
    %33 = vector.extract_strided_slice %8 {offsets = [0, 0], sizes = [8, 96], strides = [1, 1]} : vector<64x96xf32> to vector<8x96xf32>
    %cst_27 = arith.constant dense<0.000000e+00> : vector<8x96xf32>
    %34 = tpu.matmul %31, %18, %cst_27 {dimension_numbers = #tpu.dot_dimension_numbers<[1], [0], [0], [1], [0, 0, 1, 1], [], []>} : vector<8x32xf32>, vector<32x96xf32>, vector<8x96xf32> -> vector<8x96xf32>
    %35 = arith.addf %34, %23 : vector<8x96xf32>
    %36 = vector.extract_strided_slice %33 {offsets = [0, 0], sizes = [8, 64], strides = [1, 1]} : vector<8x96xf32> to vector<8x64xf32>
    %37 = vector.extract_strided_slice %35 {offsets = [0, 0], sizes = [8, 64], strides = [1, 1]} : vector<8x96xf32> to vector<8x64xf32>
    %38 = arith.addf %36, %37 : vector<8x64xf32>
    %39 = arith.negf %38 : vector<8x64xf32>
    %40 = math.exp %39 : vector<8x64xf32>
    %cst_28 = arith.constant 1.000000e+00 : f32
    %41 = vector.broadcast %cst_28 : f32 to vector<8x64xf32>
    %42 = arith.addf %41, %40 : vector<8x64xf32>
    %43 = arith.divf %41, %42 : vector<8x64xf32>
    %44 = vector.extract_strided_slice %33 {offsets = [0, 64], sizes = [8, 32], strides = [1, 1]} : vector<8x96xf32> to vector<8x32xf32>
    %45 = vector.extract_strided_slice %43 {offsets = [0, 0], sizes = [8, 32], strides = [1, 1]} : vector<8x64xf32> to vector<8x32xf32>
    %46 = vector.extract_strided_slice %35 {offsets = [0, 64], sizes = [8, 32], strides = [1, 1]} : vector<8x96xf32> to vector<8x32xf32>
    %47 = arith.mulf %45, %46 : vector<8x32xf32>
    %48 = arith.addf %44, %47 : vector<8x32xf32>
    %49 = math.tanh %48 : vector<8x32xf32>
    %50 = vector.extract_strided_slice %43 {offsets = [0, 32], sizes = [8, 32], strides = [1, 1]} : vector<8x64xf32> to vector<8x32xf32>
    %51 = arith.subf %31, %49 : vector<8x32xf32>
    %52 = arith.mulf %50, %51 : vector<8x32xf32>
    %53 = arith.addf %49, %52 : vector<8x32xf32>
    %54 = vector.extract_strided_slice %16 {offsets = [56, 0], sizes = [8, 96], strides = [1, 1]} : vector<64x96xf32> to vector<8x96xf32>
    %cst_29 = arith.constant dense<0.000000e+00> : vector<8x96xf32>
    %55 = tpu.matmul %32, %25, %cst_29 {dimension_numbers = #tpu.dot_dimension_numbers<[1], [0], [0], [1], [0, 0, 1, 1], [], []>} : vector<8x32xf32>, vector<32x96xf32>, vector<8x96xf32> -> vector<8x96xf32>
    %56 = arith.addf %55, %30 : vector<8x96xf32>
    %57 = vector.extract_strided_slice %54 {offsets = [0, 0], sizes = [8, 64], strides = [1, 1]} : vector<8x96xf32> to vector<8x64xf32>
    %58 = vector.extract_strided_slice %56 {offsets = [0, 0], sizes = [8, 64], strides = [1, 1]} : vector<8x96xf32> to vector<8x64xf32>
    %59 = arith.addf %57, %58 : vector<8x64xf32>
    %60 = arith.negf %59 : vector<8x64xf32>
    %61 = math.exp %60 : vector<8x64xf32>
    %cst_30 = arith.constant 1.000000e+00 : f32
    %62 = vector.broadcast %cst_30 : f32 to vector<8x64xf32>
    %63 = arith.addf %62, %61 : vector<8x64xf32>
    %64 = arith.divf %62, %63 : vector<8x64xf32>
    %65 = vector.extract_strided_slice %54 {offsets = [0, 64], sizes = [8, 32], strides = [1, 1]} : vector<8x96xf32> to vector<8x32xf32>
    %66 = vector.extract_strided_slice %64 {offsets = [0, 0], sizes = [8, 32], strides = [1, 1]} : vector<8x64xf32> to vector<8x32xf32>
    %67 = vector.extract_strided_slice %56 {offsets = [0, 64], sizes = [8, 32], strides = [1, 1]} : vector<8x96xf32> to vector<8x32xf32>
    %68 = arith.mulf %66, %67 : vector<8x32xf32>
    %69 = arith.addf %65, %68 : vector<8x32xf32>
    %70 = math.tanh %69 : vector<8x32xf32>
    %71 = vector.extract_strided_slice %64 {offsets = [0, 32], sizes = [8, 32], strides = [1, 1]} : vector<8x64xf32> to vector<8x32xf32>
    %72 = arith.subf %32, %70 : vector<8x32xf32>
    %73 = arith.mulf %71, %72 : vector<8x32xf32>
    %74 = arith.addf %70, %73 : vector<8x32xf32>
    %c0_31 = arith.constant 0 : index
    %c0_32 = arith.constant 0 : index
    %75 = vector.load %arg7[%c0_31, %c0_32] : memref<64x64xf32, #tpu.memory_space<vmem>>, vector<8x32xf32>
    tpu.vector_store %arg7[%c0_31, %c0_32], %53 {strides = array<i32>} : memref<64x64xf32, #tpu.memory_space<vmem>>, vector<8x32xf32>,
    %c56 = arith.constant 56 : index
    %c32 = arith.constant 32 : index
    %76 = vector.load %arg7[%c56, %c32] : memref<64x64xf32, #tpu.memory_space<vmem>>, vector<8x32xf32>
    tpu.vector_store %arg7[%c56, %c32], %74 {strides = array<i32>} : memref<64x64xf32, #tpu.memory_space<vmem>>, vector<8x32xf32>,
    %77 = vector.extract_strided_slice %8 {offsets = [8, 0], sizes = [8, 96], strides = [1, 1]} : vector<64x96xf32> to vector<8x96xf32>
    %cst_33 = arith.constant dense<0.000000e+00> : vector<8x96xf32>
    %78 = tpu.matmul %53, %18, %cst_33 {dimension_numbers = #tpu.dot_dimension_numbers<[1], [0], [0], [1], [0, 0, 1, 1], [], []>} : vector<8x32xf32>, vector<32x96xf32>, vector<8x96xf32> -> vector<8x96xf32>
    %79 = arith.addf %78, %23 : vector<8x96xf32>
    %80 = vector.extract_strided_slice %77 {offsets = [0, 0], sizes = [8, 64], strides = [1, 1]} : vector<8x96xf32> to vector<8x64xf32>
    %81 = vector.extract_strided_slice %79 {offsets = [0, 0], sizes = [8, 64], strides = [1, 1]} : vector<8x96xf32> to vector<8x64xf32>
    %82 = arith.addf %80, %81 : vector<8x64xf32>
    %83 = arith.negf %82 : vector<8x64xf32>
    %84 = math.exp %83 : vector<8x64xf32>
    %cst_34 = arith.constant 1.000000e+00 : f32
    %85 = vector.broadcast %cst_34 : f32 to vector<8x64xf32>
    %86 = arith.addf %85, %84 : vector<8x64xf32>
    %87 = arith.divf %85, %86 : vector<8x64xf32>
    %88 = vector.extract_strided_slice %77 {offsets = [0, 64], sizes = [8, 32], strides = [1, 1]} : vector<8x96xf32> to vector<8x32xf32>
    %89 = vector.extract_strided_slice %87 {offsets = [0, 0], sizes = [8, 32], strides = [1, 1]} : vector<8x64xf32> to vector<8x32xf32>
    %90 = vector.extract_strided_slice %79 {offsets = [0, 64], sizes = [8, 32], strides = [1, 1]} : vector<8x96xf32> to vector<8x32xf32>
    %91 = arith.mulf %89, %90 : vector<8x32xf32>
    %92 = arith.addf %88, %91 : vector<8x32xf32>
    %93 = math.tanh %92 : vector<8x32xf32>
    %94 = vector.extract_strided_slice %87 {offsets = [0, 32], sizes = [8, 32], strides = [1, 1]} : vector<8x64xf32> to vector<8x32xf32>
    %95 = arith.subf %53, %93 : vector<8x32xf32>
    %96 = arith.mulf %94, %95 : vector<8x32xf32>
    %97 = arith.addf %93, %96 : vector<8x32xf32>
    %98 = vector.extract_strided_slice %16 {offsets = [48, 0], sizes = [8, 96], strides = [1, 1]} : vector<64x96xf32> to vector<8x96xf32>
    %cst_35 = arith.constant dense<0.000000e+00> : vector<8x96xf32>
    %99 = tpu.matmul %74, %25, %cst_35 {dimension_numbers = #tpu.dot_dimension_numbers<[1], [0], [0], [1], [0, 0, 1, 1], [], []>} : vector<8x32xf32>, vector<32x96xf32>, vector<8x96xf32> -> vector<8x96xf32>
    %100 = arith.addf %99, %30 : vector<8x96xf32>
    %101 = vector.extract_strided_slice %98 {offsets = [0, 0], sizes = [8, 64], strides = [1, 1]} : vector<8x96xf32> to vector<8x64xf32>
    %102 = vector.extract_strided_slice %100 {offsets = [0, 0], sizes = [8, 64], strides = [1, 1]} : vector<8x96xf32> to vector<8x64xf32>
    %103 = arith.addf %101, %102 : vector<8x64xf32>
    %104 = arith.negf %103 : vector<8x64xf32>
    %105 = math.exp %104 : vector<8x64xf32>
    %cst_36 = arith.constant 1.000000e+00 : f32
    %106 = vector.broadcast %cst_36 : f32 to vector<8x64xf32>
    %107 = arith.addf %106, %105 : vector<8x64xf32>
    %108 = arith.divf %106, %107 : vector<8x64xf32>
    %109 = vector.extract_strided_slice %98 {offsets = [0, 64], sizes = [8, 32], strides = [1, 1]} : vector<8x96xf32> to vector<8x32xf32>
    %110 = vector.extract_strided_slice %108 {offsets = [0, 0], sizes = [8, 32], strides = [1, 1]} : vector<8x64xf32> to vector<8x32xf32>
    %111 = vector.extract_strided_slice %100 {offsets = [0, 64], sizes = [8, 32], strides = [1, 1]} : vector<8x96xf32> to vector<8x32xf32>
    %112 = arith.mulf %110, %111 : vector<8x32xf32>
    %113 = arith.addf %109, %112 : vector<8x32xf32>
    %114 = math.tanh %113 : vector<8x32xf32>
    %115 = vector.extract_strided_slice %108 {offsets = [0, 32], sizes = [8, 32], strides = [1, 1]} : vector<8x64xf32> to vector<8x32xf32>
    %116 = arith.subf %74, %114 : vector<8x32xf32>
    %117 = arith.mulf %115, %116 : vector<8x32xf32>
    %118 = arith.addf %114, %117 : vector<8x32xf32>
    %c8 = arith.constant 8 : index
    %c0_37 = arith.constant 0 : index
    %119 = vector.load %arg7[%c8, %c0_37] : memref<64x64xf32, #tpu.memory_space<vmem>>, vector<8x32xf32>
    tpu.vector_store %arg7[%c8, %c0_37], %97 {strides = array<i32>} : memref<64x64xf32, #tpu.memory_space<vmem>>, vector<8x32xf32>,
    %c48 = arith.constant 48 : index
    %c32_38 = arith.constant 32 : index
    %120 = vector.load %arg7[%c48, %c32_38] : memref<64x64xf32, #tpu.memory_space<vmem>>, vector<8x32xf32>
    tpu.vector_store %arg7[%c48, %c32_38], %118 {strides = array<i32>} : memref<64x64xf32, #tpu.memory_space<vmem>>, vector<8x32xf32>,
    %121 = vector.extract_strided_slice %8 {offsets = [16, 0], sizes = [8, 96], strides = [1, 1]} : vector<64x96xf32> to vector<8x96xf32>
    %cst_39 = arith.constant dense<0.000000e+00> : vector<8x96xf32>
    %122 = tpu.matmul %97, %18, %cst_39 {dimension_numbers = #tpu.dot_dimension_numbers<[1], [0], [0], [1], [0, 0, 1, 1], [], []>} : vector<8x32xf32>, vector<32x96xf32>, vector<8x96xf32> -> vector<8x96xf32>
    %123 = arith.addf %122, %23 : vector<8x96xf32>
    %124 = vector.extract_strided_slice %121 {offsets = [0, 0], sizes = [8, 64], strides = [1, 1]} : vector<8x96xf32> to vector<8x64xf32>
    %125 = vector.extract_strided_slice %123 {offsets = [0, 0], sizes = [8, 64], strides = [1, 1]} : vector<8x96xf32> to vector<8x64xf32>
    %126 = arith.addf %124, %125 : vector<8x64xf32>
    %127 = arith.negf %126 : vector<8x64xf32>
    %128 = math.exp %127 : vector<8x64xf32>
    %cst_40 = arith.constant 1.000000e+00 : f32
    %129 = vector.broadcast %cst_40 : f32 to vector<8x64xf32>
    %130 = arith.addf %129, %128 : vector<8x64xf32>
    %131 = arith.divf %129, %130 : vector<8x64xf32>
    %132 = vector.extract_strided_slice %121 {offsets = [0, 64], sizes = [8, 32], strides = [1, 1]} : vector<8x96xf32> to vector<8x32xf32>
    %133 = vector.extract_strided_slice %131 {offsets = [0, 0], sizes = [8, 32], strides = [1, 1]} : vector<8x64xf32> to vector<8x32xf32>
    %134 = vector.extract_strided_slice %123 {offsets = [0, 64], sizes = [8, 32], strides = [1, 1]} : vector<8x96xf32> to vector<8x32xf32>
    %135 = arith.mulf %133, %134 : vector<8x32xf32>
    %136 = arith.addf %132, %135 : vector<8x32xf32>
    %137 = math.tanh %136 : vector<8x32xf32>
    %138 = vector.extract_strided_slice %131 {offsets = [0, 32], sizes = [8, 32], strides = [1, 1]} : vector<8x64xf32> to vector<8x32xf32>
    %139 = arith.subf %97, %137 : vector<8x32xf32>
    %140 = arith.mulf %138, %139 : vector<8x32xf32>
    %141 = arith.addf %137, %140 : vector<8x32xf32>
    %142 = vector.extract_strided_slice %16 {offsets = [40, 0], sizes = [8, 96], strides = [1, 1]} : vector<64x96xf32> to vector<8x96xf32>
    %cst_41 = arith.constant dense<0.000000e+00> : vector<8x96xf32>
    %143 = tpu.matmul %118, %25, %cst_41 {dimension_numbers = #tpu.dot_dimension_numbers<[1], [0], [0], [1], [0, 0, 1, 1], [], []>} : vector<8x32xf32>, vector<32x96xf32>, vector<8x96xf32> -> vector<8x96xf32>
    %144 = arith.addf %143, %30 : vector<8x96xf32>
    %145 = vector.extract_strided_slice %142 {offsets = [0, 0], sizes = [8, 64], strides = [1, 1]} : vector<8x96xf32> to vector<8x64xf32>
    %146 = vector.extract_strided_slice %144 {offsets = [0, 0], sizes = [8, 64], strides = [1, 1]} : vector<8x96xf32> to vector<8x64xf32>
    %147 = arith.addf %145, %146 : vector<8x64xf32>
    %148 = arith.negf %147 : vector<8x64xf32>
    %149 = math.exp %148 : vector<8x64xf32>
    %cst_42 = arith.constant 1.000000e+00 : f32
    %150 = vector.broadcast %cst_42 : f32 to vector<8x64xf32>
    %151 = arith.addf %150, %149 : vector<8x64xf32>
    %152 = arith.divf %150, %151 : vector<8x64xf32>
    %153 = vector.extract_strided_slice %142 {offsets = [0, 64], sizes = [8, 32], strides = [1, 1]} : vector<8x96xf32> to vector<8x32xf32>
    %154 = vector.extract_strided_slice %152 {offsets = [0, 0], sizes = [8, 32], strides = [1, 1]} : vector<8x64xf32> to vector<8x32xf32>
    %155 = vector.extract_strided_slice %144 {offsets = [0, 64], sizes = [8, 32], strides = [1, 1]} : vector<8x96xf32> to vector<8x32xf32>
    %156 = arith.mulf %154, %155 : vector<8x32xf32>
    %157 = arith.addf %153, %156 : vector<8x32xf32>
    %158 = math.tanh %157 : vector<8x32xf32>
    %159 = vector.extract_strided_slice %152 {offsets = [0, 32], sizes = [8, 32], strides = [1, 1]} : vector<8x64xf32> to vector<8x32xf32>
    %160 = arith.subf %118, %158 : vector<8x32xf32>
    %161 = arith.mulf %159, %160 : vector<8x32xf32>
    %162 = arith.addf %158, %161 : vector<8x32xf32>
    %c16 = arith.constant 16 : index
    %c0_43 = arith.constant 0 : index
    %163 = vector.load %arg7[%c16, %c0_43] : memref<64x64xf32, #tpu.memory_space<vmem>>, vector<8x32xf32>
    tpu.vector_store %arg7[%c16, %c0_43], %141 {strides = array<i32>} : memref<64x64xf32, #tpu.memory_space<vmem>>, vector<8x32xf32>,
    %c40 = arith.constant 40 : index
    %c32_44 = arith.constant 32 : index
    %164 = vector.load %arg7[%c40, %c32_44] : memref<64x64xf32, #tpu.memory_space<vmem>>, vector<8x32xf32>
    tpu.vector_store %arg7[%c40, %c32_44], %162 {strides = array<i32>} : memref<64x64xf32, #tpu.memory_space<vmem>>, vector<8x32xf32>,
    %165 = vector.extract_strided_slice %8 {offsets = [24, 0], sizes = [8, 96], strides = [1, 1]} : vector<64x96xf32> to vector<8x96xf32>
    %cst_45 = arith.constant dense<0.000000e+00> : vector<8x96xf32>
    %166 = tpu.matmul %141, %18, %cst_45 {dimension_numbers = #tpu.dot_dimension_numbers<[1], [0], [0], [1], [0, 0, 1, 1], [], []>} : vector<8x32xf32>, vector<32x96xf32>, vector<8x96xf32> -> vector<8x96xf32>
    %167 = arith.addf %166, %23 : vector<8x96xf32>
    %168 = vector.extract_strided_slice %165 {offsets = [0, 0], sizes = [8, 64], strides = [1, 1]} : vector<8x96xf32> to vector<8x64xf32>
    %169 = vector.extract_strided_slice %167 {offsets = [0, 0], sizes = [8, 64], strides = [1, 1]} : vector<8x96xf32> to vector<8x64xf32>
    %170 = arith.addf %168, %169 : vector<8x64xf32>
    %171 = arith.negf %170 : vector<8x64xf32>
    %172 = math.exp %171 : vector<8x64xf32>
    %cst_46 = arith.constant 1.000000e+00 : f32
    %173 = vector.broadcast %cst_46 : f32 to vector<8x64xf32>
    %174 = arith.addf %173, %172 : vector<8x64xf32>
    %175 = arith.divf %173, %174 : vector<8x64xf32>
    %176 = vector.extract_strided_slice %165 {offsets = [0, 64], sizes = [8, 32], strides = [1, 1]} : vector<8x96xf32> to vector<8x32xf32>
    %177 = vector.extract_strided_slice %175 {offsets = [0, 0], sizes = [8, 32], strides = [1, 1]} : vector<8x64xf32> to vector<8x32xf32>
    %178 = vector.extract_strided_slice %167 {offsets = [0, 64], sizes = [8, 32], strides = [1, 1]} : vector<8x96xf32> to vector<8x32xf32>
    %179 = arith.mulf %177, %178 : vector<8x32xf32>
    %180 = arith.addf %176, %179 : vector<8x32xf32>
    %181 = math.tanh %180 : vector<8x32xf32>
    %182 = vector.extract_strided_slice %175 {offsets = [0, 32], sizes = [8, 32], strides = [1, 1]} : vector<8x64xf32> to vector<8x32xf32>
    %183 = arith.subf %141, %181 : vector<8x32xf32>
    %184 = arith.mulf %182, %183 : vector<8x32xf32>
    %185 = arith.addf %181, %184 : vector<8x32xf32>
    %186 = vector.extract_strided_slice %16 {offsets = [32, 0], sizes = [8, 96], strides = [1, 1]} : vector<64x96xf32> to vector<8x96xf32>
    %cst_47 = arith.constant dense<0.000000e+00> : vector<8x96xf32>
    %187 = tpu.matmul %162, %25, %cst_47 {dimension_numbers = #tpu.dot_dimension_numbers<[1], [0], [0], [1], [0, 0, 1, 1], [], []>} : vector<8x32xf32>, vector<32x96xf32>, vector<8x96xf32> -> vector<8x96xf32>
    %188 = arith.addf %187, %30 : vector<8x96xf32>
    %189 = vector.extract_strided_slice %186 {offsets = [0, 0], sizes = [8, 64], strides = [1, 1]} : vector<8x96xf32> to vector<8x64xf32>
    %190 = vector.extract_strided_slice %188 {offsets = [0, 0], sizes = [8, 64], strides = [1, 1]} : vector<8x96xf32> to vector<8x64xf32>
    %191 = arith.addf %189, %190 : vector<8x64xf32>
    %192 = arith.negf %191 : vector<8x64xf32>
    %193 = math.exp %192 : vector<8x64xf32>
    %cst_48 = arith.constant 1.000000e+00 : f32
    %194 = vector.broadcast %cst_48 : f32 to vector<8x64xf32>
    %195 = arith.addf %194, %193 : vector<8x64xf32>
    %196 = arith.divf %194, %195 : vector<8x64xf32>
    %197 = vector.extract_strided_slice %186 {offsets = [0, 64], sizes = [8, 32], strides = [1, 1]} : vector<8x96xf32> to vector<8x32xf32>
    %198 = vector.extract_strided_slice %196 {offsets = [0, 0], sizes = [8, 32], strides = [1, 1]} : vector<8x64xf32> to vector<8x32xf32>
    %199 = vector.extract_strided_slice %188 {offsets = [0, 64], sizes = [8, 32], strides = [1, 1]} : vector<8x96xf32> to vector<8x32xf32>
    %200 = arith.mulf %198, %199 : vector<8x32xf32>
    %201 = arith.addf %197, %200 : vector<8x32xf32>
    %202 = math.tanh %201 : vector<8x32xf32>
    %203 = vector.extract_strided_slice %196 {offsets = [0, 32], sizes = [8, 32], strides = [1, 1]} : vector<8x64xf32> to vector<8x32xf32>
    %204 = arith.subf %162, %202 : vector<8x32xf32>
    %205 = arith.mulf %203, %204 : vector<8x32xf32>
    %206 = arith.addf %202, %205 : vector<8x32xf32>
    %c24 = arith.constant 24 : index
    %c0_49 = arith.constant 0 : index
    %207 = vector.load %arg7[%c24, %c0_49] : memref<64x64xf32, #tpu.memory_space<vmem>>, vector<8x32xf32>
    tpu.vector_store %arg7[%c24, %c0_49], %185 {strides = array<i32>} : memref<64x64xf32, #tpu.memory_space<vmem>>, vector<8x32xf32>,
    %c32_50 = arith.constant 32 : index
    %c32_51 = arith.constant 32 : index
    %208 = vector.load %arg7[%c32_50, %c32_51] : memref<64x64xf32, #tpu.memory_space<vmem>>, vector<8x32xf32>
    tpu.vector_store %arg7[%c32_50, %c32_51], %206 {strides = array<i32>} : memref<64x64xf32, #tpu.memory_space<vmem>>, vector<8x32xf32>,
    %209 = vector.extract_strided_slice %8 {offsets = [32, 0], sizes = [8, 96], strides = [1, 1]} : vector<64x96xf32> to vector<8x96xf32>
    %cst_52 = arith.constant dense<0.000000e+00> : vector<8x96xf32>
    %210 = tpu.matmul %185, %18, %cst_52 {dimension_numbers = #tpu.dot_dimension_numbers<[1], [0], [0], [1], [0, 0, 1, 1], [], []>} : vector<8x32xf32>, vector<32x96xf32>, vector<8x96xf32> -> vector<8x96xf32>
    %211 = arith.addf %210, %23 : vector<8x96xf32>
    %212 = vector.extract_strided_slice %209 {offsets = [0, 0], sizes = [8, 64], strides = [1, 1]} : vector<8x96xf32> to vector<8x64xf32>
    %213 = vector.extract_strided_slice %211 {offsets = [0, 0], sizes = [8, 64], strides = [1, 1]} : vector<8x96xf32> to vector<8x64xf32>
    %214 = arith.addf %212, %213 : vector<8x64xf32>
    %215 = arith.negf %214 : vector<8x64xf32>
    %216 = math.exp %215 : vector<8x64xf32>
    %cst_53 = arith.constant 1.000000e+00 : f32
    %217 = vector.broadcast %cst_53 : f32 to vector<8x64xf32>
    %218 = arith.addf %217, %216 : vector<8x64xf32>
    %219 = arith.divf %217, %218 : vector<8x64xf32>
    %220 = vector.extract_strided_slice %209 {offsets = [0, 64], sizes = [8, 32], strides = [1, 1]} : vector<8x96xf32> to vector<8x32xf32>
    %221 = vector.extract_strided_slice %219 {offsets = [0, 0], sizes = [8, 32], strides = [1, 1]} : vector<8x64xf32> to vector<8x32xf32>
    %222 = vector.extract_strided_slice %211 {offsets = [0, 64], sizes = [8, 32], strides = [1, 1]} : vector<8x96xf32> to vector<8x32xf32>
    %223 = arith.mulf %221, %222 : vector<8x32xf32>
    %224 = arith.addf %220, %223 : vector<8x32xf32>
    %225 = math.tanh %224 : vector<8x32xf32>
    %226 = vector.extract_strided_slice %219 {offsets = [0, 32], sizes = [8, 32], strides = [1, 1]} : vector<8x64xf32> to vector<8x32xf32>
    %227 = arith.subf %185, %225 : vector<8x32xf32>
    %228 = arith.mulf %226, %227 : vector<8x32xf32>
    %229 = arith.addf %225, %228 : vector<8x32xf32>
    %230 = vector.extract_strided_slice %16 {offsets = [24, 0], sizes = [8, 96], strides = [1, 1]} : vector<64x96xf32> to vector<8x96xf32>
    %cst_54 = arith.constant dense<0.000000e+00> : vector<8x96xf32>
    %231 = tpu.matmul %206, %25, %cst_54 {dimension_numbers = #tpu.dot_dimension_numbers<[1], [0], [0], [1], [0, 0, 1, 1], [], []>} : vector<8x32xf32>, vector<32x96xf32>, vector<8x96xf32> -> vector<8x96xf32>
    %232 = arith.addf %231, %30 : vector<8x96xf32>
    %233 = vector.extract_strided_slice %230 {offsets = [0, 0], sizes = [8, 64], strides = [1, 1]} : vector<8x96xf32> to vector<8x64xf32>
    %234 = vector.extract_strided_slice %232 {offsets = [0, 0], sizes = [8, 64], strides = [1, 1]} : vector<8x96xf32> to vector<8x64xf32>
    %235 = arith.addf %233, %234 : vector<8x64xf32>
    %236 = arith.negf %235 : vector<8x64xf32>
    %237 = math.exp %236 : vector<8x64xf32>
    %cst_55 = arith.constant 1.000000e+00 : f32
    %238 = vector.broadcast %cst_55 : f32 to vector<8x64xf32>
    %239 = arith.addf %238, %237 : vector<8x64xf32>
    %240 = arith.divf %238, %239 : vector<8x64xf32>
    %241 = vector.extract_strided_slice %230 {offsets = [0, 64], sizes = [8, 32], strides = [1, 1]} : vector<8x96xf32> to vector<8x32xf32>
    %242 = vector.extract_strided_slice %240 {offsets = [0, 0], sizes = [8, 32], strides = [1, 1]} : vector<8x64xf32> to vector<8x32xf32>
    %243 = vector.extract_strided_slice %232 {offsets = [0, 64], sizes = [8, 32], strides = [1, 1]} : vector<8x96xf32> to vector<8x32xf32>
    %244 = arith.mulf %242, %243 : vector<8x32xf32>
    %245 = arith.addf %241, %244 : vector<8x32xf32>
    %246 = math.tanh %245 : vector<8x32xf32>
    %247 = vector.extract_strided_slice %240 {offsets = [0, 32], sizes = [8, 32], strides = [1, 1]} : vector<8x64xf32> to vector<8x32xf32>
    %248 = arith.subf %206, %246 : vector<8x32xf32>
    %249 = arith.mulf %247, %248 : vector<8x32xf32>
    %250 = arith.addf %246, %249 : vector<8x32xf32>
    %c32_56 = arith.constant 32 : index
    %c0_57 = arith.constant 0 : index
    %251 = vector.load %arg7[%c32_56, %c0_57] : memref<64x64xf32, #tpu.memory_space<vmem>>, vector<8x32xf32>
    tpu.vector_store %arg7[%c32_56, %c0_57], %229 {strides = array<i32>} : memref<64x64xf32, #tpu.memory_space<vmem>>, vector<8x32xf32>,
    %c24_58 = arith.constant 24 : index
    %c32_59 = arith.constant 32 : index
    %252 = vector.load %arg7[%c24_58, %c32_59] : memref<64x64xf32, #tpu.memory_space<vmem>>, vector<8x32xf32>
    tpu.vector_store %arg7[%c24_58, %c32_59], %250 {strides = array<i32>} : memref<64x64xf32, #tpu.memory_space<vmem>>, vector<8x32xf32>,
    %253 = vector.extract_strided_slice %8 {offsets = [40, 0], sizes = [8, 96], strides = [1, 1]} : vector<64x96xf32> to vector<8x96xf32>
    %cst_60 = arith.constant dense<0.000000e+00> : vector<8x96xf32>
    %254 = tpu.matmul %229, %18, %cst_60 {dimension_numbers = #tpu.dot_dimension_numbers<[1], [0], [0], [1], [0, 0, 1, 1], [], []>} : vector<8x32xf32>, vector<32x96xf32>, vector<8x96xf32> -> vector<8x96xf32>
    %255 = arith.addf %254, %23 : vector<8x96xf32>
    %256 = vector.extract_strided_slice %253 {offsets = [0, 0], sizes = [8, 64], strides = [1, 1]} : vector<8x96xf32> to vector<8x64xf32>
    %257 = vector.extract_strided_slice %255 {offsets = [0, 0], sizes = [8, 64], strides = [1, 1]} : vector<8x96xf32> to vector<8x64xf32>
    %258 = arith.addf %256, %257 : vector<8x64xf32>
    %259 = arith.negf %258 : vector<8x64xf32>
    %260 = math.exp %259 : vector<8x64xf32>
    %cst_61 = arith.constant 1.000000e+00 : f32
    %261 = vector.broadcast %cst_61 : f32 to vector<8x64xf32>
    %262 = arith.addf %261, %260 : vector<8x64xf32>
    %263 = arith.divf %261, %262 : vector<8x64xf32>
    %264 = vector.extract_strided_slice %253 {offsets = [0, 64], sizes = [8, 32], strides = [1, 1]} : vector<8x96xf32> to vector<8x32xf32>
    %265 = vector.extract_strided_slice %263 {offsets = [0, 0], sizes = [8, 32], strides = [1, 1]} : vector<8x64xf32> to vector<8x32xf32>
    %266 = vector.extract_strided_slice %255 {offsets = [0, 64], sizes = [8, 32], strides = [1, 1]} : vector<8x96xf32> to vector<8x32xf32>
    %267 = arith.mulf %265, %266 : vector<8x32xf32>
    %268 = arith.addf %264, %267 : vector<8x32xf32>
    %269 = math.tanh %268 : vector<8x32xf32>
    %270 = vector.extract_strided_slice %263 {offsets = [0, 32], sizes = [8, 32], strides = [1, 1]} : vector<8x64xf32> to vector<8x32xf32>
    %271 = arith.subf %229, %269 : vector<8x32xf32>
    %272 = arith.mulf %270, %271 : vector<8x32xf32>
    %273 = arith.addf %269, %272 : vector<8x32xf32>
    %274 = vector.extract_strided_slice %16 {offsets = [16, 0], sizes = [8, 96], strides = [1, 1]} : vector<64x96xf32> to vector<8x96xf32>
    %cst_62 = arith.constant dense<0.000000e+00> : vector<8x96xf32>
    %275 = tpu.matmul %250, %25, %cst_62 {dimension_numbers = #tpu.dot_dimension_numbers<[1], [0], [0], [1], [0, 0, 1, 1], [], []>} : vector<8x32xf32>, vector<32x96xf32>, vector<8x96xf32> -> vector<8x96xf32>
    %276 = arith.addf %275, %30 : vector<8x96xf32>
    %277 = vector.extract_strided_slice %274 {offsets = [0, 0], sizes = [8, 64], strides = [1, 1]} : vector<8x96xf32> to vector<8x64xf32>
    %278 = vector.extract_strided_slice %276 {offsets = [0, 0], sizes = [8, 64], strides = [1, 1]} : vector<8x96xf32> to vector<8x64xf32>
    %279 = arith.addf %277, %278 : vector<8x64xf32>
    %280 = arith.negf %279 : vector<8x64xf32>
    %281 = math.exp %280 : vector<8x64xf32>
    %cst_63 = arith.constant 1.000000e+00 : f32
    %282 = vector.broadcast %cst_63 : f32 to vector<8x64xf32>
    %283 = arith.addf %282, %281 : vector<8x64xf32>
    %284 = arith.divf %282, %283 : vector<8x64xf32>
    %285 = vector.extract_strided_slice %274 {offsets = [0, 64], sizes = [8, 32], strides = [1, 1]} : vector<8x96xf32> to vector<8x32xf32>
    %286 = vector.extract_strided_slice %284 {offsets = [0, 0], sizes = [8, 32], strides = [1, 1]} : vector<8x64xf32> to vector<8x32xf32>
    %287 = vector.extract_strided_slice %276 {offsets = [0, 64], sizes = [8, 32], strides = [1, 1]} : vector<8x96xf32> to vector<8x32xf32>
    %288 = arith.mulf %286, %287 : vector<8x32xf32>
    %289 = arith.addf %285, %288 : vector<8x32xf32>
    %290 = math.tanh %289 : vector<8x32xf32>
    %291 = vector.extract_strided_slice %284 {offsets = [0, 32], sizes = [8, 32], strides = [1, 1]} : vector<8x64xf32> to vector<8x32xf32>
    %292 = arith.subf %250, %290 : vector<8x32xf32>
    %293 = arith.mulf %291, %292 : vector<8x32xf32>
    %294 = arith.addf %290, %293 : vector<8x32xf32>
    %c40_64 = arith.constant 40 : index
    %c0_65 = arith.constant 0 : index
    %295 = vector.load %arg7[%c40_64, %c0_65] : memref<64x64xf32, #tpu.memory_space<vmem>>, vector<8x32xf32>
    tpu.vector_store %arg7[%c40_64, %c0_65], %273 {strides = array<i32>} : memref<64x64xf32, #tpu.memory_space<vmem>>, vector<8x32xf32>,
    %c16_66 = arith.constant 16 : index
    %c32_67 = arith.constant 32 : index
    %296 = vector.load %arg7[%c16_66, %c32_67] : memref<64x64xf32, #tpu.memory_space<vmem>>, vector<8x32xf32>
    tpu.vector_store %arg7[%c16_66, %c32_67], %294 {strides = array<i32>} : memref<64x64xf32, #tpu.memory_space<vmem>>, vector<8x32xf32>,
    %297 = vector.extract_strided_slice %8 {offsets = [48, 0], sizes = [8, 96], strides = [1, 1]} : vector<64x96xf32> to vector<8x96xf32>
    %cst_68 = arith.constant dense<0.000000e+00> : vector<8x96xf32>
    %298 = tpu.matmul %273, %18, %cst_68 {dimension_numbers = #tpu.dot_dimension_numbers<[1], [0], [0], [1], [0, 0, 1, 1], [], []>} : vector<8x32xf32>, vector<32x96xf32>, vector<8x96xf32> -> vector<8x96xf32>
    %299 = arith.addf %298, %23 : vector<8x96xf32>
    %300 = vector.extract_strided_slice %297 {offsets = [0, 0], sizes = [8, 64], strides = [1, 1]} : vector<8x96xf32> to vector<8x64xf32>
    %301 = vector.extract_strided_slice %299 {offsets = [0, 0], sizes = [8, 64], strides = [1, 1]} : vector<8x96xf32> to vector<8x64xf32>
    %302 = arith.addf %300, %301 : vector<8x64xf32>
    %303 = arith.negf %302 : vector<8x64xf32>
    %304 = math.exp %303 : vector<8x64xf32>
    %cst_69 = arith.constant 1.000000e+00 : f32
    %305 = vector.broadcast %cst_69 : f32 to vector<8x64xf32>
    %306 = arith.addf %305, %304 : vector<8x64xf32>
    %307 = arith.divf %305, %306 : vector<8x64xf32>
    %308 = vector.extract_strided_slice %297 {offsets = [0, 64], sizes = [8, 32], strides = [1, 1]} : vector<8x96xf32> to vector<8x32xf32>
    %309 = vector.extract_strided_slice %307 {offsets = [0, 0], sizes = [8, 32], strides = [1, 1]} : vector<8x64xf32> to vector<8x32xf32>
    %310 = vector.extract_strided_slice %299 {offsets = [0, 64], sizes = [8, 32], strides = [1, 1]} : vector<8x96xf32> to vector<8x32xf32>
    %311 = arith.mulf %309, %310 : vector<8x32xf32>
    %312 = arith.addf %308, %311 : vector<8x32xf32>
    %313 = math.tanh %312 : vector<8x32xf32>
    %314 = vector.extract_strided_slice %307 {offsets = [0, 32], sizes = [8, 32], strides = [1, 1]} : vector<8x64xf32> to vector<8x32xf32>
    %315 = arith.subf %273, %313 : vector<8x32xf32>
    %316 = arith.mulf %314, %315 : vector<8x32xf32>
    %317 = arith.addf %313, %316 : vector<8x32xf32>
    %318 = vector.extract_strided_slice %16 {offsets = [8, 0], sizes = [8, 96], strides = [1, 1]} : vector<64x96xf32> to vector<8x96xf32>
    %cst_70 = arith.constant dense<0.000000e+00> : vector<8x96xf32>
    %319 = tpu.matmul %294, %25, %cst_70 {dimension_numbers = #tpu.dot_dimension_numbers<[1], [0], [0], [1], [0, 0, 1, 1], [], []>} : vector<8x32xf32>, vector<32x96xf32>, vector<8x96xf32> -> vector<8x96xf32>
    %320 = arith.addf %319, %30 : vector<8x96xf32>
    %321 = vector.extract_strided_slice %318 {offsets = [0, 0], sizes = [8, 64], strides = [1, 1]} : vector<8x96xf32> to vector<8x64xf32>
    %322 = vector.extract_strided_slice %320 {offsets = [0, 0], sizes = [8, 64], strides = [1, 1]} : vector<8x96xf32> to vector<8x64xf32>
    %323 = arith.addf %321, %322 : vector<8x64xf32>
    %324 = arith.negf %323 : vector<8x64xf32>
    %325 = math.exp %324 : vector<8x64xf32>
    %cst_71 = arith.constant 1.000000e+00 : f32
    %326 = vector.broadcast %cst_71 : f32 to vector<8x64xf32>
    %327 = arith.addf %326, %325 : vector<8x64xf32>
    %328 = arith.divf %326, %327 : vector<8x64xf32>
    %329 = vector.extract_strided_slice %318 {offsets = [0, 64], sizes = [8, 32], strides = [1, 1]} : vector<8x96xf32> to vector<8x32xf32>
    %330 = vector.extract_strided_slice %328 {offsets = [0, 0], sizes = [8, 32], strides = [1, 1]} : vector<8x64xf32> to vector<8x32xf32>
    %331 = vector.extract_strided_slice %320 {offsets = [0, 64], sizes = [8, 32], strides = [1, 1]} : vector<8x96xf32> to vector<8x32xf32>
    %332 = arith.mulf %330, %331 : vector<8x32xf32>
    %333 = arith.addf %329, %332 : vector<8x32xf32>
    %334 = math.tanh %333 : vector<8x32xf32>
    %335 = vector.extract_strided_slice %328 {offsets = [0, 32], sizes = [8, 32], strides = [1, 1]} : vector<8x64xf32> to vector<8x32xf32>
    %336 = arith.subf %294, %334 : vector<8x32xf32>
    %337 = arith.mulf %335, %336 : vector<8x32xf32>
    %338 = arith.addf %334, %337 : vector<8x32xf32>
    %c48_72 = arith.constant 48 : index
    %c0_73 = arith.constant 0 : index
    %339 = vector.load %arg7[%c48_72, %c0_73] : memref<64x64xf32, #tpu.memory_space<vmem>>, vector<8x32xf32>
    tpu.vector_store %arg7[%c48_72, %c0_73], %317 {strides = array<i32>} : memref<64x64xf32, #tpu.memory_space<vmem>>, vector<8x32xf32>,
    %c8_74 = arith.constant 8 : index
    %c32_75 = arith.constant 32 : index
    %340 = vector.load %arg7[%c8_74, %c32_75] : memref<64x64xf32, #tpu.memory_space<vmem>>, vector<8x32xf32>
    tpu.vector_store %arg7[%c8_74, %c32_75], %338 {strides = array<i32>} : memref<64x64xf32, #tpu.memory_space<vmem>>, vector<8x32xf32>,
    %341 = vector.extract_strided_slice %8 {offsets = [56, 0], sizes = [8, 96], strides = [1, 1]} : vector<64x96xf32> to vector<8x96xf32>
    %cst_76 = arith.constant dense<0.000000e+00> : vector<8x96xf32>
    %342 = tpu.matmul %317, %18, %cst_76 {dimension_numbers = #tpu.dot_dimension_numbers<[1], [0], [0], [1], [0, 0, 1, 1], [], []>} : vector<8x32xf32>, vector<32x96xf32>, vector<8x96xf32> -> vector<8x96xf32>
    %343 = arith.addf %342, %23 : vector<8x96xf32>
    %344 = vector.extract_strided_slice %341 {offsets = [0, 0], sizes = [8, 64], strides = [1, 1]} : vector<8x96xf32> to vector<8x64xf32>
    %345 = vector.extract_strided_slice %343 {offsets = [0, 0], sizes = [8, 64], strides = [1, 1]} : vector<8x96xf32> to vector<8x64xf32>
    %346 = arith.addf %344, %345 : vector<8x64xf32>
    %347 = arith.negf %346 : vector<8x64xf32>
    %348 = math.exp %347 : vector<8x64xf32>
    %cst_77 = arith.constant 1.000000e+00 : f32
    %349 = vector.broadcast %cst_77 : f32 to vector<8x64xf32>
    %350 = arith.addf %349, %348 : vector<8x64xf32>
    %351 = arith.divf %349, %350 : vector<8x64xf32>
    %352 = vector.extract_strided_slice %341 {offsets = [0, 64], sizes = [8, 32], strides = [1, 1]} : vector<8x96xf32> to vector<8x32xf32>
    %353 = vector.extract_strided_slice %351 {offsets = [0, 0], sizes = [8, 32], strides = [1, 1]} : vector<8x64xf32> to vector<8x32xf32>
    %354 = vector.extract_strided_slice %343 {offsets = [0, 64], sizes = [8, 32], strides = [1, 1]} : vector<8x96xf32> to vector<8x32xf32>
    %355 = arith.mulf %353, %354 : vector<8x32xf32>
    %356 = arith.addf %352, %355 : vector<8x32xf32>
    %357 = math.tanh %356 : vector<8x32xf32>
    %358 = vector.extract_strided_slice %351 {offsets = [0, 32], sizes = [8, 32], strides = [1, 1]} : vector<8x64xf32> to vector<8x32xf32>
    %359 = arith.subf %317, %357 : vector<8x32xf32>
    %360 = arith.mulf %358, %359 : vector<8x32xf32>
    %361 = arith.addf %357, %360 : vector<8x32xf32>
    %362 = vector.extract_strided_slice %16 {offsets = [0, 0], sizes = [8, 96], strides = [1, 1]} : vector<64x96xf32> to vector<8x96xf32>
    %cst_78 = arith.constant dense<0.000000e+00> : vector<8x96xf32>
    %363 = tpu.matmul %338, %25, %cst_78 {dimension_numbers = #tpu.dot_dimension_numbers<[1], [0], [0], [1], [0, 0, 1, 1], [], []>} : vector<8x32xf32>, vector<32x96xf32>, vector<8x96xf32> -> vector<8x96xf32>
    %364 = arith.addf %363, %30 : vector<8x96xf32>
    %365 = vector.extract_strided_slice %362 {offsets = [0, 0], sizes = [8, 64], strides = [1, 1]} : vector<8x96xf32> to vector<8x64xf32>
    %366 = vector.extract_strided_slice %364 {offsets = [0, 0], sizes = [8, 64], strides = [1, 1]} : vector<8x96xf32> to vector<8x64xf32>
    %367 = arith.addf %365, %366 : vector<8x64xf32>
    %368 = arith.negf %367 : vector<8x64xf32>
    %369 = math.exp %368 : vector<8x64xf32>
    %cst_79 = arith.constant 1.000000e+00 : f32
    %370 = vector.broadcast %cst_79 : f32 to vector<8x64xf32>
    %371 = arith.addf %370, %369 : vector<8x64xf32>
    %372 = arith.divf %370, %371 : vector<8x64xf32>
    %373 = vector.extract_strided_slice %362 {offsets = [0, 64], sizes = [8, 32], strides = [1, 1]} : vector<8x96xf32> to vector<8x32xf32>
    %374 = vector.extract_strided_slice %372 {offsets = [0, 0], sizes = [8, 32], strides = [1, 1]} : vector<8x64xf32> to vector<8x32xf32>
    %375 = vector.extract_strided_slice %364 {offsets = [0, 64], sizes = [8, 32], strides = [1, 1]} : vector<8x96xf32> to vector<8x32xf32>
    %376 = arith.mulf %374, %375 : vector<8x32xf32>
    %377 = arith.addf %373, %376 : vector<8x32xf32>
    %378 = math.tanh %377 : vector<8x32xf32>
    %379 = vector.extract_strided_slice %372 {offsets = [0, 32], sizes = [8, 32], strides = [1, 1]} : vector<8x64xf32> to vector<8x32xf32>
    %380 = arith.subf %338, %378 : vector<8x32xf32>
    %381 = arith.mulf %379, %380 : vector<8x32xf32>
    %382 = arith.addf %378, %381 : vector<8x32xf32>
    %c56_80 = arith.constant 56 : index
    %c0_81 = arith.constant 0 : index
    %383 = vector.load %arg7[%c56_80, %c0_81] : memref<64x64xf32, #tpu.memory_space<vmem>>, vector<8x32xf32>
    tpu.vector_store %arg7[%c56_80, %c0_81], %361 {strides = array<i32>} : memref<64x64xf32, #tpu.memory_space<vmem>>, vector<8x32xf32>,
    %c0_82 = arith.constant 0 : index
    %c32_83 = arith.constant 32 : index
    %384 = vector.load %arg7[%c0_82, %c32_83] : memref<64x64xf32, #tpu.memory_space<vmem>>, vector<8x32xf32>
    tpu.vector_store %arg7[%c0_82, %c32_83], %382 {strides = array<i32>} : memref<64x64xf32, #tpu.memory_space<vmem>>, vector<8x32xf32>,
    %c0_84 = arith.constant 0 : index
    %c0_85 = arith.constant 0 : index
    %385 = vector.load %arg7[%c0_84, %c0_85] : memref<64x64xf32, #tpu.memory_space<vmem>>, vector<64x64xf32>
    %c3 = arith.constant 3 : index
    %c0_86 = arith.constant 0 : index
    %c0_87 = arith.constant 0 : index
    %386 = vector.load %arg2[%c3, %c0_86, %c0_87] : memref<4x32x96xf32, #tpu.memory_space<vmem>>, vector<1x32x96xf32>
    %387 = vector.shape_cast %386 : vector<1x32x96xf32> to vector<32x96xf32>
    %c3_88 = arith.constant 3 : index
    %c0_89 = arith.constant 0 : index
    %c0_90 = arith.constant 0 : index
    %388 = vector.load %arg3[%c3_88, %c0_89, %c0_90] : memref<4x2x96xf32, #tpu.memory_space<vmem>>, vector<1x2x96xf32>
    %389 = vector.shape_cast %388 : vector<1x2x96xf32> to vector<2x96xf32>
    %390 = vector.extract_strided_slice %389 {offsets = [1, 0], sizes = [1, 96], strides = [1, 1]} : vector<2x96xf32> to vector<1x96xf32>
    %391 = vector.shape_cast %390 : vector<1x96xf32> to vector<1x96xf32>
    %392 = vector.broadcast %391 : vector<1x96xf32> to vector<8x96xf32>
    %cst_91 = arith.constant 0.000000e+00 : f32
    %393 = vector.broadcast %cst_91 : f32 to vector<8x32xf32>
    %394 = vector.extract_strided_slice %385 {offsets = [56, 0], sizes = [8, 64], strides = [1, 1]} : vector<64x64xf32> to vector<8x64xf32>
    %c3_92 = arith.constant 3 : index
    %c0_93 = arith.constant 0 : index
    %c0_94 = arith.constant 0 : index
    %395 = vector.load %arg1[%c3_92, %c0_93, %c0_94] : memref<4x64x96xf32, #tpu.memory_space<vmem>>, vector<1x64x96xf32>
    %396 = vector.shape_cast %395 : vector<1x64x96xf32> to vector<64x96xf32>
    %cst_95 = arith.constant dense<0.000000e+00> : vector<8x96xf32>
    %397 = tpu.matmul %394, %396, %cst_95 {dimension_numbers = #tpu.dot_dimension_numbers<[1], [0], [0], [1], [0, 0, 1, 1], [], []>} : vector<8x64xf32>, vector<64x96xf32>, vector<8x96xf32> -> vector<8x96xf32>
    %c3_96 = arith.constant 3 : index
    %c0_97 = arith.constant 0 : index
    %c0_98 = arith.constant 0 : index
    %398 = vector.load %arg3[%c3_96, %c0_97, %c0_98] : memref<4x2x96xf32, #tpu.memory_space<vmem>>, vector<1x2x96xf32>
    %399 = vector.shape_cast %398 : vector<1x2x96xf32> to vector<2x96xf32>
    %400 = vector.extract_strided_slice %399 {offsets = [0, 0], sizes = [1, 96], strides = [1, 1]} : vector<2x96xf32> to vector<1x96xf32>
    %401 = vector.broadcast %400 : vector<1x96xf32> to vector<8x96xf32>
    %402 = arith.addf %397, %401 : vector<8x96xf32>
    %cst_99 = arith.constant dense<0.000000e+00> : vector<8x96xf32>
    %403 = tpu.matmul %393, %387, %cst_99 {dimension_numbers = #tpu.dot_dimension_numbers<[1], [0], [0], [1], [0, 0, 1, 1], [], []>} : vector<8x32xf32>, vector<32x96xf32>, vector<8x96xf32> -> vector<8x96xf32>
    %404 = arith.addf %403, %392 : vector<8x96xf32>
    %405 = vector.extract_strided_slice %402 {offsets = [0, 0], sizes = [8, 64], strides = [1, 1]} : vector<8x96xf32> to vector<8x64xf32>
    %406 = vector.extract_strided_slice %404 {offsets = [0, 0], sizes = [8, 64], strides = [1, 1]} : vector<8x96xf32> to vector<8x64xf32>
    %407 = arith.addf %405, %406 : vector<8x64xf32>
    %408 = arith.negf %407 : vector<8x64xf32>
    %409 = math.exp %408 : vector<8x64xf32>
    %cst_100 = arith.constant 1.000000e+00 : f32
    %410 = vector.broadcast %cst_100 : f32 to vector<8x64xf32>
    %411 = arith.addf %410, %409 : vector<8x64xf32>
    %412 = arith.divf %410, %411 : vector<8x64xf32>
    %413 = vector.extract_strided_slice %402 {offsets = [0, 64], sizes = [8, 32], strides = [1, 1]} : vector<8x96xf32> to vector<8x32xf32>
    %414 = vector.extract_strided_slice %412 {offsets = [0, 0], sizes = [8, 32], strides = [1, 1]} : vector<8x64xf32> to vector<8x32xf32>
    %415 = vector.extract_strided_slice %404 {offsets = [0, 64], sizes = [8, 32], strides = [1, 1]} : vector<8x96xf32> to vector<8x32xf32>
    %416 = arith.mulf %414, %415 : vector<8x32xf32>
    %417 = arith.addf %413, %416 : vector<8x32xf32>
    %418 = math.tanh %417 : vector<8x32xf32>
    %419 = vector.extract_strided_slice %412 {offsets = [0, 32], sizes = [8, 32], strides = [1, 1]} : vector<8x64xf32> to vector<8x32xf32>
    %420 = arith.subf %393, %418 : vector<8x32xf32>
    %421 = arith.mulf %419, %420 : vector<8x32xf32>
    %422 = arith.addf %418, %421 : vector<8x32xf32>
    %c2 = arith.constant 2 : index
    %c0_101 = arith.constant 0 : index
    %c0_102 = arith.constant 0 : index
    %423 = vector.load %arg1[%c2, %c0_101, %c0_102] : memref<4x64x96xf32, #tpu.memory_space<vmem>>, vector<1x64x96xf32>
    %424 = vector.shape_cast %423 : vector<1x64x96xf32> to vector<64x96xf32>
    %cst_103 = arith.constant dense<0.000000e+00> : vector<64x96xf32>
    %425 = tpu.matmul %385, %424, %cst_103 {dimension_numbers = #tpu.dot_dimension_numbers<[1], [0], [0], [1], [0, 0, 1, 1], [], []>} : vector<64x64xf32>, vector<64x96xf32>, vector<64x96xf32> -> vector<64x96xf32>
    %c2_104 = arith.constant 2 : index
    %c0_105 = arith.constant 0 : index
    %c0_106 = arith.constant 0 : index
    %426 = vector.load %arg3[%c2_104, %c0_105, %c0_106] : memref<4x2x96xf32, #tpu.memory_space<vmem>>, vector<1x2x96xf32>
    %427 = vector.shape_cast %426 : vector<1x2x96xf32> to vector<2x96xf32>
    %428 = vector.extract_strided_slice %427 {offsets = [0, 0], sizes = [1, 96], strides = [1, 1]} : vector<2x96xf32> to vector<1x96xf32>
    %429 = vector.broadcast %428 : vector<1x96xf32> to vector<64x96xf32>
    %430 = arith.addf %425, %429 : vector<64x96xf32>
    %c2_107 = arith.constant 2 : index
    %c0_108 = arith.constant 0 : index
    %c0_109 = arith.constant 0 : index
    %431 = vector.load %arg2[%c2_107, %c0_108, %c0_109] : memref<4x32x96xf32, #tpu.memory_space<vmem>>, vector<1x32x96xf32>
    %432 = vector.shape_cast %431 : vector<1x32x96xf32> to vector<32x96xf32>
    %c2_110 = arith.constant 2 : index
    %c0_111 = arith.constant 0 : index
    %c0_112 = arith.constant 0 : index
    %433 = vector.load %arg3[%c2_110, %c0_111, %c0_112] : memref<4x2x96xf32, #tpu.memory_space<vmem>>, vector<1x2x96xf32>
    %434 = vector.shape_cast %433 : vector<1x2x96xf32> to vector<2x96xf32>
    %435 = vector.extract_strided_slice %434 {offsets = [1, 0], sizes = [1, 96], strides = [1, 1]} : vector<2x96xf32> to vector<1x96xf32>
    %436 = vector.shape_cast %435 : vector<1x96xf32> to vector<1x96xf32>
    %437 = vector.broadcast %436 : vector<1x96xf32> to vector<8x96xf32>
    %cst_113 = arith.constant 0.000000e+00 : f32
    %438 = vector.broadcast %cst_113 : f32 to vector<8x32xf32>
    %439 = vector.extract_strided_slice %430 {offsets = [0, 0], sizes = [8, 96], strides = [1, 1]} : vector<64x96xf32> to vector<8x96xf32>
    %cst_114 = arith.constant dense<0.000000e+00> : vector<8x96xf32>
    %440 = tpu.matmul %438, %432, %cst_114 {dimension_numbers = #tpu.dot_dimension_numbers<[1], [0], [0], [1], [0, 0, 1, 1], [], []>} : vector<8x32xf32>, vector<32x96xf32>, vector<8x96xf32> -> vector<8x96xf32>
    %441 = arith.addf %440, %437 : vector<8x96xf32>
    %442 = vector.extract_strided_slice %439 {offsets = [0, 0], sizes = [8, 64], strides = [1, 1]} : vector<8x96xf32> to vector<8x64xf32>
    %443 = vector.extract_strided_slice %441 {offsets = [0, 0], sizes = [8, 64], strides = [1, 1]} : vector<8x96xf32> to vector<8x64xf32>
    %444 = arith.addf %442, %443 : vector<8x64xf32>
    %445 = arith.negf %444 : vector<8x64xf32>
    %446 = math.exp %445 : vector<8x64xf32>
    %cst_115 = arith.constant 1.000000e+00 : f32
    %447 = vector.broadcast %cst_115 : f32 to vector<8x64xf32>
    %448 = arith.addf %447, %446 : vector<8x64xf32>
    %449 = arith.divf %447, %448 : vector<8x64xf32>
    %450 = vector.extract_strided_slice %439 {offsets = [0, 64], sizes = [8, 32], strides = [1, 1]} : vector<8x96xf32> to vector<8x32xf32>
    %451 = vector.extract_strided_slice %449 {offsets = [0, 0], sizes = [8, 32], strides = [1, 1]} : vector<8x64xf32> to vector<8x32xf32>
    %452 = vector.extract_strided_slice %441 {offsets = [0, 64], sizes = [8, 32], strides = [1, 1]} : vector<8x96xf32> to vector<8x32xf32>
    %453 = arith.mulf %451, %452 : vector<8x32xf32>
    %454 = arith.addf %450, %453 : vector<8x32xf32>
    %455 = math.tanh %454 : vector<8x32xf32>
    %456 = vector.extract_strided_slice %449 {offsets = [0, 32], sizes = [8, 32], strides = [1, 1]} : vector<8x64xf32> to vector<8x32xf32>
    %457 = arith.subf %438, %455 : vector<8x32xf32>
    %458 = arith.mulf %456, %457 : vector<8x32xf32>
    %459 = arith.addf %455, %458 : vector<8x32xf32>
    %460 = vector.extract_strided_slice %430 {offsets = [8, 0], sizes = [8, 96], strides = [1, 1]} : vector<64x96xf32> to vector<8x96xf32>
    %cst_116 = arith.constant dense<0.000000e+00> : vector<8x96xf32>
    %461 = tpu.matmul %459, %432, %cst_116 {dimension_numbers = #tpu.dot_dimension_numbers<[1], [0], [0], [1], [0, 0, 1, 1], [], []>} : vector<8x32xf32>, vector<32x96xf32>, vector<8x96xf32> -> vector<8x96xf32>
    %462 = arith.addf %461, %437 : vector<8x96xf32>
    %463 = vector.extract_strided_slice %460 {offsets = [0, 0], sizes = [8, 64], strides = [1, 1]} : vector<8x96xf32> to vector<8x64xf32>
    %464 = vector.extract_strided_slice %462 {offsets = [0, 0], sizes = [8, 64], strides = [1, 1]} : vector<8x96xf32> to vector<8x64xf32>
    %465 = arith.addf %463, %464 : vector<8x64xf32>
    %466 = arith.negf %465 : vector<8x64xf32>
    %467 = math.exp %466 : vector<8x64xf32>
    %cst_117 = arith.constant 1.000000e+00 : f32
    %468 = vector.broadcast %cst_117 : f32 to vector<8x64xf32>
    %469 = arith.addf %468, %467 : vector<8x64xf32>
    %470 = arith.divf %468, %469 : vector<8x64xf32>
    %471 = vector.extract_strided_slice %460 {offsets = [0, 64], sizes = [8, 32], strides = [1, 1]} : vector<8x96xf32> to vector<8x32xf32>
    %472 = vector.extract_strided_slice %470 {offsets = [0, 0], sizes = [8, 32], strides = [1, 1]} : vector<8x64xf32> to vector<8x32xf32>
    %473 = vector.extract_strided_slice %462 {offsets = [0, 64], sizes = [8, 32], strides = [1, 1]} : vector<8x96xf32> to vector<8x32xf32>
    %474 = arith.mulf %472, %473 : vector<8x32xf32>
    %475 = arith.addf %471, %474 : vector<8x32xf32>
    %476 = math.tanh %475 : vector<8x32xf32>
    %477 = vector.extract_strided_slice %470 {offsets = [0, 32], sizes = [8, 32], strides = [1, 1]} : vector<8x64xf32> to vector<8x32xf32>
    %478 = arith.subf %459, %476 : vector<8x32xf32>
    %479 = arith.mulf %477, %478 : vector<8x32xf32>
    %480 = arith.addf %476, %479 : vector<8x32xf32>
    %481 = vector.extract_strided_slice %430 {offsets = [16, 0], sizes = [8, 96], strides = [1, 1]} : vector<64x96xf32> to vector<8x96xf32>
    %cst_118 = arith.constant dense<0.000000e+00> : vector<8x96xf32>
    %482 = tpu.matmul %480, %432, %cst_118 {dimension_numbers = #tpu.dot_dimension_numbers<[1], [0], [0], [1], [0, 0, 1, 1], [], []>} : vector<8x32xf32>, vector<32x96xf32>, vector<8x96xf32> -> vector<8x96xf32>
    %483 = arith.addf %482, %437 : vector<8x96xf32>
    %484 = vector.extract_strided_slice %481 {offsets = [0, 0], sizes = [8, 64], strides = [1, 1]} : vector<8x96xf32> to vector<8x64xf32>
    %485 = vector.extract_strided_slice %483 {offsets = [0, 0], sizes = [8, 64], strides = [1, 1]} : vector<8x96xf32> to vector<8x64xf32>
    %486 = arith.addf %484, %485 : vector<8x64xf32>
    %487 = arith.negf %486 : vector<8x64xf32>
    %488 = math.exp %487 : vector<8x64xf32>
    %cst_119 = arith.constant 1.000000e+00 : f32
    %489 = vector.broadcast %cst_119 : f32 to vector<8x64xf32>
    %490 = arith.addf %489, %488 : vector<8x64xf32>
    %491 = arith.divf %489, %490 : vector<8x64xf32>
    %492 = vector.extract_strided_slice %481 {offsets = [0, 64], sizes = [8, 32], strides = [1, 1]} : vector<8x96xf32> to vector<8x32xf32>
    %493 = vector.extract_strided_slice %491 {offsets = [0, 0], sizes = [8, 32], strides = [1, 1]} : vector<8x64xf32> to vector<8x32xf32>
    %494 = vector.extract_strided_slice %483 {offsets = [0, 64], sizes = [8, 32], strides = [1, 1]} : vector<8x96xf32> to vector<8x32xf32>
    %495 = arith.mulf %493, %494 : vector<8x32xf32>
    %496 = arith.addf %492, %495 : vector<8x32xf32>
    %497 = math.tanh %496 : vector<8x32xf32>
    %498 = vector.extract_strided_slice %491 {offsets = [0, 32], sizes = [8, 32], strides = [1, 1]} : vector<8x64xf32> to vector<8x32xf32>
    %499 = arith.subf %480, %497 : vector<8x32xf32>
    %500 = arith.mulf %498, %499 : vector<8x32xf32>
    %501 = arith.addf %497, %500 : vector<8x32xf32>
    %502 = vector.extract_strided_slice %430 {offsets = [24, 0], sizes = [8, 96], strides = [1, 1]} : vector<64x96xf32> to vector<8x96xf32>
    %cst_120 = arith.constant dense<0.000000e+00> : vector<8x96xf32>
    %503 = tpu.matmul %501, %432, %cst_120 {dimension_numbers = #tpu.dot_dimension_numbers<[1], [0], [0], [1], [0, 0, 1, 1], [], []>} : vector<8x32xf32>, vector<32x96xf32>, vector<8x96xf32> -> vector<8x96xf32>
    %504 = arith.addf %503, %437 : vector<8x96xf32>
    %505 = vector.extract_strided_slice %502 {offsets = [0, 0], sizes = [8, 64], strides = [1, 1]} : vector<8x96xf32> to vector<8x64xf32>
    %506 = vector.extract_strided_slice %504 {offsets = [0, 0], sizes = [8, 64], strides = [1, 1]} : vector<8x96xf32> to vector<8x64xf32>
    %507 = arith.addf %505, %506 : vector<8x64xf32>
    %508 = arith.negf %507 : vector<8x64xf32>
    %509 = math.exp %508 : vector<8x64xf32>
    %cst_121 = arith.constant 1.000000e+00 : f32
    %510 = vector.broadcast %cst_121 : f32 to vector<8x64xf32>
    %511 = arith.addf %510, %509 : vector<8x64xf32>
    %512 = arith.divf %510, %511 : vector<8x64xf32>
    %513 = vector.extract_strided_slice %502 {offsets = [0, 64], sizes = [8, 32], strides = [1, 1]} : vector<8x96xf32> to vector<8x32xf32>
    %514 = vector.extract_strided_slice %512 {offsets = [0, 0], sizes = [8, 32], strides = [1, 1]} : vector<8x64xf32> to vector<8x32xf32>
    %515 = vector.extract_strided_slice %504 {offsets = [0, 64], sizes = [8, 32], strides = [1, 1]} : vector<8x96xf32> to vector<8x32xf32>
    %516 = arith.mulf %514, %515 : vector<8x32xf32>
    %517 = arith.addf %513, %516 : vector<8x32xf32>
    %518 = math.tanh %517 : vector<8x32xf32>
    %519 = vector.extract_strided_slice %512 {offsets = [0, 32], sizes = [8, 32], strides = [1, 1]} : vector<8x64xf32> to vector<8x32xf32>
    %520 = arith.subf %501, %518 : vector<8x32xf32>
    %521 = arith.mulf %519, %520 : vector<8x32xf32>
    %522 = arith.addf %518, %521 : vector<8x32xf32>
    %523 = vector.extract_strided_slice %430 {offsets = [32, 0], sizes = [8, 96], strides = [1, 1]} : vector<64x96xf32> to vector<8x96xf32>
    %cst_122 = arith.constant dense<0.000000e+00> : vector<8x96xf32>
    %524 = tpu.matmul %522, %432, %cst_122 {dimension_numbers = #tpu.dot_dimension_numbers<[1], [0], [0], [1], [0, 0, 1, 1], [], []>} : vector<8x32xf32>, vector<32x96xf32>, vector<8x96xf32> -> vector<8x96xf32>
    %525 = arith.addf %524, %437 : vector<8x96xf32>
    %526 = vector.extract_strided_slice %523 {offsets = [0, 0], sizes = [8, 64], strides = [1, 1]} : vector<8x96xf32> to vector<8x64xf32>
    %527 = vector.extract_strided_slice %525 {offsets = [0, 0], sizes = [8, 64], strides = [1, 1]} : vector<8x96xf32> to vector<8x64xf32>
    %528 = arith.addf %526, %527 : vector<8x64xf32>
    %529 = arith.negf %528 : vector<8x64xf32>
    %530 = math.exp %529 : vector<8x64xf32>
    %cst_123 = arith.constant 1.000000e+00 : f32
    %531 = vector.broadcast %cst_123 : f32 to vector<8x64xf32>
    %532 = arith.addf %531, %530 : vector<8x64xf32>
    %533 = arith.divf %531, %532 : vector<8x64xf32>
    %534 = vector.extract_strided_slice %523 {offsets = [0, 64], sizes = [8, 32], strides = [1, 1]} : vector<8x96xf32> to vector<8x32xf32>
    %535 = vector.extract_strided_slice %533 {offsets = [0, 0], sizes = [8, 32], strides = [1, 1]} : vector<8x64xf32> to vector<8x32xf32>
    %536 = vector.extract_strided_slice %525 {offsets = [0, 64], sizes = [8, 32], strides = [1, 1]} : vector<8x96xf32> to vector<8x32xf32>
    %537 = arith.mulf %535, %536 : vector<8x32xf32>
    %538 = arith.addf %534, %537 : vector<8x32xf32>
    %539 = math.tanh %538 : vector<8x32xf32>
    %540 = vector.extract_strided_slice %533 {offsets = [0, 32], sizes = [8, 32], strides = [1, 1]} : vector<8x64xf32> to vector<8x32xf32>
    %541 = arith.subf %522, %539 : vector<8x32xf32>
    %542 = arith.mulf %540, %541 : vector<8x32xf32>
    %543 = arith.addf %539, %542 : vector<8x32xf32>
    %544 = vector.extract_strided_slice %430 {offsets = [40, 0], sizes = [8, 96], strides = [1, 1]} : vector<64x96xf32> to vector<8x96xf32>
    %cst_124 = arith.constant dense<0.000000e+00> : vector<8x96xf32>
    %545 = tpu.matmul %543, %432, %cst_124 {dimension_numbers = #tpu.dot_dimension_numbers<[1], [0], [0], [1], [0, 0, 1, 1], [], []>} : vector<8x32xf32>, vector<32x96xf32>, vector<8x96xf32> -> vector<8x96xf32>
    %546 = arith.addf %545, %437 : vector<8x96xf32>
    %547 = vector.extract_strided_slice %544 {offsets = [0, 0], sizes = [8, 64], strides = [1, 1]} : vector<8x96xf32> to vector<8x64xf32>
    %548 = vector.extract_strided_slice %546 {offsets = [0, 0], sizes = [8, 64], strides = [1, 1]} : vector<8x96xf32> to vector<8x64xf32>
    %549 = arith.addf %547, %548 : vector<8x64xf32>
    %550 = arith.negf %549 : vector<8x64xf32>
    %551 = math.exp %550 : vector<8x64xf32>
    %cst_125 = arith.constant 1.000000e+00 : f32
    %552 = vector.broadcast %cst_125 : f32 to vector<8x64xf32>
    %553 = arith.addf %552, %551 : vector<8x64xf32>
    %554 = arith.divf %552, %553 : vector<8x64xf32>
    %555 = vector.extract_strided_slice %544 {offsets = [0, 64], sizes = [8, 32], strides = [1, 1]} : vector<8x96xf32> to vector<8x32xf32>
    %556 = vector.extract_strided_slice %554 {offsets = [0, 0], sizes = [8, 32], strides = [1, 1]} : vector<8x64xf32> to vector<8x32xf32>
    %557 = vector.extract_strided_slice %546 {offsets = [0, 64], sizes = [8, 32], strides = [1, 1]} : vector<8x96xf32> to vector<8x32xf32>
    %558 = arith.mulf %556, %557 : vector<8x32xf32>
    %559 = arith.addf %555, %558 : vector<8x32xf32>
    %560 = math.tanh %559 : vector<8x32xf32>
    %561 = vector.extract_strided_slice %554 {offsets = [0, 32], sizes = [8, 32], strides = [1, 1]} : vector<8x64xf32> to vector<8x32xf32>
    %562 = arith.subf %543, %560 : vector<8x32xf32>
    %563 = arith.mulf %561, %562 : vector<8x32xf32>
    %564 = arith.addf %560, %563 : vector<8x32xf32>
    %565 = vector.extract_strided_slice %430 {offsets = [48, 0], sizes = [8, 96], strides = [1, 1]} : vector<64x96xf32> to vector<8x96xf32>
    %cst_126 = arith.constant dense<0.000000e+00> : vector<8x96xf32>
    %566 = tpu.matmul %564, %432, %cst_126 {dimension_numbers = #tpu.dot_dimension_numbers<[1], [0], [0], [1], [0, 0, 1, 1], [], []>} : vector<8x32xf32>, vector<32x96xf32>, vector<8x96xf32> -> vector<8x96xf32>
    %567 = arith.addf %566, %437 : vector<8x96xf32>
    %568 = vector.extract_strided_slice %565 {offsets = [0, 0], sizes = [8, 64], strides = [1, 1]} : vector<8x96xf32> to vector<8x64xf32>
    %569 = vector.extract_strided_slice %567 {offsets = [0, 0], sizes = [8, 64], strides = [1, 1]} : vector<8x96xf32> to vector<8x64xf32>
    %570 = arith.addf %568, %569 : vector<8x64xf32>
    %571 = arith.negf %570 : vector<8x64xf32>
    %572 = math.exp %571 : vector<8x64xf32>
    %cst_127 = arith.constant 1.000000e+00 : f32
    %573 = vector.broadcast %cst_127 : f32 to vector<8x64xf32>
    %574 = arith.addf %573, %572 : vector<8x64xf32>
    %575 = arith.divf %573, %574 : vector<8x64xf32>
    %576 = vector.extract_strided_slice %565 {offsets = [0, 64], sizes = [8, 32], strides = [1, 1]} : vector<8x96xf32> to vector<8x32xf32>
    %577 = vector.extract_strided_slice %575 {offsets = [0, 0], sizes = [8, 32], strides = [1, 1]} : vector<8x64xf32> to vector<8x32xf32>
    %578 = vector.extract_strided_slice %567 {offsets = [0, 64], sizes = [8, 32], strides = [1, 1]} : vector<8x96xf32> to vector<8x32xf32>
    %579 = arith.mulf %577, %578 : vector<8x32xf32>
    %580 = arith.addf %576, %579 : vector<8x32xf32>
    %581 = math.tanh %580 : vector<8x32xf32>
    %582 = vector.extract_strided_slice %575 {offsets = [0, 32], sizes = [8, 32], strides = [1, 1]} : vector<8x64xf32> to vector<8x32xf32>
    %583 = arith.subf %564, %581 : vector<8x32xf32>
    %584 = arith.mulf %582, %583 : vector<8x32xf32>
    %585 = arith.addf %581, %584 : vector<8x32xf32>
    %586 = vector.extract_strided_slice %430 {offsets = [56, 0], sizes = [8, 96], strides = [1, 1]} : vector<64x96xf32> to vector<8x96xf32>
    %cst_128 = arith.constant dense<0.000000e+00> : vector<8x96xf32>
    %587 = tpu.matmul %585, %432, %cst_128 {dimension_numbers = #tpu.dot_dimension_numbers<[1], [0], [0], [1], [0, 0, 1, 1], [], []>} : vector<8x32xf32>, vector<32x96xf32>, vector<8x96xf32> -> vector<8x96xf32>
    %588 = arith.addf %587, %437 : vector<8x96xf32>
    %589 = vector.extract_strided_slice %586 {offsets = [0, 0], sizes = [8, 64], strides = [1, 1]} : vector<8x96xf32> to vector<8x64xf32>
    %590 = vector.extract_strided_slice %588 {offsets = [0, 0], sizes = [8, 64], strides = [1, 1]} : vector<8x96xf32> to vector<8x64xf32>
    %591 = arith.addf %589, %590 : vector<8x64xf32>
    %592 = arith.negf %591 : vector<8x64xf32>
    %593 = math.exp %592 : vector<8x64xf32>
    %cst_129 = arith.constant 1.000000e+00 : f32
    %594 = vector.broadcast %cst_129 : f32 to vector<8x64xf32>
    %595 = arith.addf %594, %593 : vector<8x64xf32>
    %596 = arith.divf %594, %595 : vector<8x64xf32>
    %597 = vector.extract_strided_slice %586 {offsets = [0, 64], sizes = [8, 32], strides = [1, 1]} : vector<8x96xf32> to vector<8x32xf32>
    %598 = vector.extract_strided_slice %596 {offsets = [0, 0], sizes = [8, 32], strides = [1, 1]} : vector<8x64xf32> to vector<8x32xf32>
    %599 = vector.extract_strided_slice %588 {offsets = [0, 64], sizes = [8, 32], strides = [1, 1]} : vector<8x96xf32> to vector<8x32xf32>
    %600 = arith.mulf %598, %599 : vector<8x32xf32>
    %601 = arith.addf %597, %600 : vector<8x32xf32>
    %602 = math.tanh %601 : vector<8x32xf32>
    %603 = vector.extract_strided_slice %596 {offsets = [0, 32], sizes = [8, 32], strides = [1, 1]} : vector<8x64xf32> to vector<8x32xf32>
    %604 = arith.subf %585, %602 : vector<8x32xf32>
    %605 = arith.mulf %603, %604 : vector<8x32xf32>
    %606 = arith.addf %602, %605 : vector<8x32xf32>
    %c0_130 = arith.constant 0 : index
    %c0_131 = arith.constant 0 : index
    %607 = vector.load %arg4[%c0_130, %c0_131] : memref<64x12xf32, #tpu.memory_space<vmem>>, vector<64x12xf32>
    %608 = vector.extract_strided_slice %607 {offsets = [0, 0], sizes = [32, 12], strides = [1, 1]} : vector<64x12xf32> to vector<32x12xf32>
    %cst_132 = arith.constant dense<0.000000e+00> : vector<8x12xf32>
    %609 = tpu.matmul %606, %608, %cst_132 {dimension_numbers = #tpu.dot_dimension_numbers<[1], [0], [0], [1], [0, 0, 1, 1], [], []>} : vector<8x32xf32>, vector<32x12xf32>, vector<8x12xf32> -> vector<8x12xf32>
    %610 = vector.extract_strided_slice %607 {offsets = [32, 0], sizes = [32, 12], strides = [1, 1]} : vector<64x12xf32> to vector<32x12xf32>
    %cst_133 = arith.constant dense<0.000000e+00> : vector<8x12xf32>
    %611 = tpu.matmul %422, %610, %cst_133 {dimension_numbers = #tpu.dot_dimension_numbers<[1], [0], [0], [1], [0, 0, 1, 1], [], []>} : vector<8x32xf32>, vector<32x12xf32>, vector<8x12xf32> -> vector<8x12xf32>
    %612 = arith.addf %609, %611 : vector<8x12xf32>
    %c0_134 = arith.constant 0 : index
    %c0_135 = arith.constant 0 : index
    %613 = vector.load %arg5[%c0_134, %c0_135] : memref<1x12xf32, #tpu.memory_space<vmem>>, vector<1x12xf32>
    %614 = vector.broadcast %613 : vector<1x12xf32> to vector<8x12xf32>
    %615 = arith.addf %612, %614 : vector<8x12xf32>
    %616 = vector.extract_strided_slice %615 {offsets = [0, 0], sizes = [2, 12], strides = [1, 1]} : vector<8x12xf32> to vector<2x12xf32>
    %c0_136 = arith.constant 0 : index
    %c0_137 = arith.constant 0 : index
    %617 = vector.load %arg6[%c0_136, %c0_137] : memref<2x12xf32, #tpu.memory_space<vmem>>, vector<2x12xf32>
    tpu.vector_store %arg6[%c0_136, %c0_137], %616 {strides = array<i32>} : memref<2x12xf32, #tpu.memory_space<vmem>>, vector<2x12xf32>,
    return
  }
}

</mosaic_0001>

<bundles_post_ra>
// kernel: gru_forward.1
= control target key start
LH: loop header
LB: loop body
LE: loop exit
PB: predicated region body
PF: predicated region fallthrough
CT: control target
= control target key end

     0   :  { %11 = vsyncpa [#allocation4], 0  ;;  %s5248_s0 = inlined_call_operand.vmem [shape: f32[64,64], index: 0, kind: input, shape index: {}]   ;;  %s5249_s1 = inlined_call_operand.hbm [shape: f32[4,64,96], index: 1, kind: input, shape index: {}]   ;;  %s5250_s2 = inlined_call_operand.vmem [shape: f32[4,32,96], index: 2, kind: input, shape index: {}]   ;;  %s5251_s3 = inlined_call_operand.vmem [shape: f32[4,2,96], index: 3, kind: input, shape index: {}]   ;;  %s5252_s4 = inlined_call_operand.vmem [shape: f32[64,12], index: 4, kind: input, shape index: {}]   ;;  %s5253_s5 = inlined_call_operand.vmem [shape: f32[1,12], index: 5, kind: input, shape index: {}]   ;;  %s5254_s6 = inlined_call_operand.hbm [shape: f32[2,12], index: 6, kind: output, shape index: {}]  }
   0x1   :  { %12 = vsyncpa [#allocation5], 0  ;;  %s4512_s21 = smov [#allocation3]   ;;  %s4464_s25 = scalar_lea.hbm %s5249_s1, 4096 }
   0x2   :  { %s20_s22 = sshll.u32 %s4512_s21, 4  ;;  %p4465_p0 = scmp.ne.s32.totalorder %s5249_s1, %s4464_s25  ;;  %s21_s22 = int_to_ptr.vmem [resolvable:$true] %s20_s22 }
   0x3   :  { %p4468_p1 = scmp.lt.u32.totalorder %s4464_s25, %s5249_s1 }
   0x5   :  { %p4470_p2 = pnand %p4468_p1, %p4465_p0 }
   0x7   :  { %4473 = shalt.err (!%p4470_p2)
}
   0x8   :  { %s4474_s30 = scalar_lea.vmem %s21_s22, 4096  ;;  %p4479_p4 = scmp.lt.s32.totalorder %s21_s22, %s21_s22 }
   0x9   :  { %p4475_p3 = scmp.ne.s32.totalorder %s21_s22, %s4474_s30  ;;  %p4480_p5 = scmp.lt.s32.totalorder %s4474_s30, %s4474_s30 }
   0xb   :  { %p4481_p6 = por %p4480_p5, %p4479_p4 }
   0xd   :  { %p4482_p7 = pnand %p4481_p6, %p4475_p3 }
   0xf   :  { %4485 = shalt.err (!%p4482_p7)
}
  0x10   :  { %s4513_s7 = smov 128   ;;  %s4514_s8 = smov 8  }
  0x11   :  { %26 = dma.hbm_to_vmem [thread:$0]  %s5249_s1, 4096, %s21_s22, [#allocation4], %s4513_s7, %s4513_s7, %s4514_s8  }
  0x12   :  { %4508 = dma.done.wait [#allocation4], 4096  }
  0x13   :  { %4509 = vsyncadd [#allocation4], 4294963200  ;;  %v46_v0 = vld [vmem:[#allocation3] sm:$0xff]  ;;  %v47_v1 = vld [vmem:[#allocation3 + $0x8] sm:$0xff]  ;;  %vm59_vm0 = vcmask 523264   ;;  %v4515_v31 = vmov 0.0|0.0   ;;  %v55_v46 = vlaneseq }
  0x14   :  { %v48_v2 = vld [vmem:[#allocation3 + $0x10] sm:$0xff]  ;;  %v4082_v3 = vpack.c.bf16 %v47_v1, %v46_v0  ;;  %v49_v4 = vld [vmem:[#allocation3 + $0x18] sm:$0xff]  ;;  %v190_v5 = vld [vmem:[#allocation3 + $0x40] sm:$0xff]  ;;  %vm4516_vm1 = vmmov 0   ;;  %v4517_v45 = vmov 0.0   ;;  %s4518_s20 = smov 64  }
  0x15   :  { %v191_v6 = vld [vmem:[#allocation3 + $0x48] sm:$0xff]  ;;  %v4086_v7 = vpack.c.bf16 %v49_v4, %v48_v2  ;;  %v50_v9 = vld [vmem:[#allocation3 + $0x20] sm:$0xff]  ;;  %v192_v11 = vld [vmem:[#allocation3 + $0x50] sm:$0xff]  ;;  %v56_v47 = vshrl.u32 %v55_v46, 7  ;;  %s4519_s21 = smov 96   ;;  %s4520_s22 = smov 32  }
  0x16   :  { %v4098_v8 = vpack.c.bf16 %v191_v6, %v190_v5  ;;  %v51_v10 = vld [vmem:[#allocation3 + $0x28] sm:$0xff]  ;;  %4083 = vmatprep.subr.bf16.mxu0 %v4082_v3  ;;  %v193_v12 = vld [vmem:[#allocation3 + $0x58] sm:$0xff]  ;;  %v194_v14 = vld [vmem:[#allocation3 + $0x60] sm:$0xff]  ;;  %vm326_vm2 = vcmask 261120   ;;  %vm537_vm3 = vcmask 523520   ;;  %s4521_s10 = smov [#allocation6]  }
  0x17   :  { %4085 = vmatpush3.bf16.msra.mxu0 %v4082_v3  ;;  %v4102_v13 = vpack.c.bf16 %v193_v12, %v192_v11  ;;  %v195_v15 = vld [vmem:[#allocation3 + $0x68] sm:$0xff]  ;;  %v38_v16 = vld [vmem:[%s5248_s0] sm:$0xff]  ;;  %v4090_v17 = vpack.c.bf16 %v51_v10, %v50_v9  ;;  %v52_v18 = vld [vmem:[#allocation3 + $0x30] sm:$0xff]  ;;  %v4669_v48 = vsub.s32 0, %v56_v47  ;;  %s3392_s1 = sshll.u32 %s4521_s10, 4  ;;  %vm3384_vm4 = vcmask 91136   ;;  %s3393_s1 = int_to_ptr.vmem [resolvable:$true] %s3392_s1 }
  0x18   :  { %4099 = vmatprep.subr.bf16.mxu1 %v4098_v8  ;;  %4087 = vmatprep.subr.bf16.mxu0 %v4086_v7  ;;  %v53_v19 = vld [vmem:[#allocation3 + $0x38] sm:$0xff]  ;;  %v4106_v20 = vpack.c.bf16 %v195_v15, %v194_v14  ;;  %v196_v21 = vld [vmem:[#allocation3 + $0x70] sm:$0xff]  ;;  %v309_v25 = vld [vmem:[%s5250_s2] sm:$0xff]  ;;  %p4491_p9 = scmp.lt.s32.totalorder %s3393_s1, %s3393_s1 }
  0x19   :  { %4101 = vmatpush3.bf16.msra.mxu1 %v4098_v8  ;;  %3698 = vmatprep.mubr.msk.f32.mxu0 %vm59_vm0, %v38_v16  ;;  %v197_v22 = vld [vmem:[#allocation3 + $0x78] sm:$0xff]  ;;  %v4094_v23 = vpack.c.bf16 %v53_v19, %v52_v18  ;;  %v310_v26 = vld [vmem:[%s5250_s2 + $0x8] sm:$0xff]  ;;  %v3418_v27 = vld [vmem:[%s5250_s2 + $0x20] sm:$0xff] }
  0x1a   :  { %4103 = vmatprep.subr.bf16.mxu1 %v4102_v13  ;;  %3726 = vmatprep.mubr.msk.f32.mxu1 %vm59_vm0, %v38_v16  ;;  %v4110_v24 = vpack.c.bf16 %v197_v22, %v196_v21  ;;  %v3419_v28 = vld [vmem:[%s5250_s2 + $0x28] sm:$0xff]  ;;  %v4589_v30 = vpack.c.bf16 %v310_v26, %v309_v25  ;;  %v40_v32 = vld [vmem:[%s5248_s0 + $0x10] sm:$0xff]  ;;  %v312_v34 = vld [vmem:[%s5250_s2 + $0x18] sm:$0xff] }
  0x1b   :  { %4089 = vmatpush3.bf16.msra.mxu0 %v4086_v7  ;;  %v39_v29 = vld [vmem:[%s5248_s0 + $0x8] sm:$0xff]  ;;  %v311_v33 = vld [vmem:[%s5250_s2 + $0x10] sm:$0xff]  ;;  %v4602_v35 = vpack.c.bf16 %v3419_v28, %v3418_v27  ;;  %v3421_v37 = vld [vmem:[%s5250_s2 + $0x38] sm:$0xff]  ;;  %v4695_v7 = vsub.s32 1, %v56_v47 }
  0x1c   :  { %4091 = vmatprep.subr.bf16.mxu0 %v4090_v17  ;;  %v3420_v36 = vld [vmem:[%s5250_s2 + $0x30] sm:$0xff]  ;;  %v41_v38 = vld [vmem:[%s5248_s0 + $0x18] sm:$0xff]  ;;  %v4616_v39 = vpack.c.bf16 %v312_v34, %v311_v33  ;;  %v42_v40 = vld [vmem:[%s5248_s0 + $0x20] sm:$0xff] }
  0x1d   :  { %4105 = vmatpush3.bf16.msra.mxu1 %v4102_v13  ;;  %v4625_v41 = vpack.c.bf16 %v3421_v37, %v3420_v36  ;;  %v43_v42 = vld [vmem:[%s5248_s0 + $0x28] sm:$0xff]  ;;  %v44_v43 = vld [vmem:[%s5248_s0 + $0x30] sm:$0xff]  ;;  %v45_v44 = vld [vmem:[%s5248_s0 + $0x38] sm:$0xff] }
  0x1e   :  { %4107 = vmatprep.subr.bf16.mxu1 %v4106_v20  ;;  %v54_v49 = vld [vmem:[%s5251_s3] sm:$0x3]  ;;  %v3409_v51 = vld [vmem:[%s5251_s3 + $0x2] sm:$0x3] }
  0x1f   :  { %4093 = vmatpush3.bf16.msra.mxu0 %v4090_v17  ;;  %v58_v50 = vrot.slane %v54_v49, %v4669_v48  ;;  %v203_v52 = vrot.slane %v3409_v51, %v4669_v48  ;;  %v4706_v16 = vrot.slane %v54_v49, %v4695_v7  ;;  %v4711_v21 = vrot.slane %v3409_v51, %v4695_v7 }
  0x20   :  { %4095 = vmatprep.subr.bf16.mxu0 %v4094_v23 }
  0x21   :  { %4109 = vmatpush3.bf16.msra.mxu1 %v4106_v20 }
  0x22   :  { %4111 = vmatprep.subr.bf16.mxu1 %v4110_v24 }
  0x23   :  { %4097 = vmatpush3.bf16.msra.mxu0 %v4094_v23 }
  0x24   :  { %4114 = vmatprep.subr.bf16.mxu0 %v4515_v31 }
  0x25   :  { %4113 = vmatpush3.bf16.msra.mxu1 %v4110_v24 }
  0x26   :  { %4120 = vmatprep.subr.bf16.mxu1 %v4515_v31  ;;  %3699 = vmatmul.mubr.msk.f32.vlgmr.msra.gmra.mrb[0].mxu0 %vm59_vm0, %v39_v29 }
  0x27   :  { %4116 = vmatpush3.bf16.msra.mxu0 %v4589_v30  ;;  %3701 = vmatprep.mubr.msk.f32.mxu0 %vm59_vm0, %v40_v32 }
  0x28   :  { %3727 = vmatmul.mubr.msk.f32.vlgmr.msra.gmra.mrb[0].mxu1 %vm59_vm0, %v39_v29  ;;  %4117 = vmatprep.subr.bf16.mxu0 %v4515_v31 }
  0x29   :  { %3729 = vmatprep.mubr.msk.f32.mxu1 %vm59_vm0, %v40_v32  ;;  %4122 = vmatpush3.bf16.msra.mxu1 %v4602_v35 }
  0x2a   :  { %3702 = vmatmul.mubr.msk.f32.gmra.mrb[2].mxu0 %vm59_vm0, %v41_v38  ;;  %4123 = vmatprep.subr.bf16.mxu1 %v4515_v31 }
  0x2b   :  { %3704 = vmatprep.mubr.msk.f32.mxu0 %vm59_vm0, %v42_v40  ;;  %4119 = vmatpush3.bf16.msra.mxu0 %v4616_v39 }
  0x2c   :  { %3730 = vmatmul.mubr.msk.f32.gmra.mrb[2].mxu1 %vm59_vm0, %v41_v38  ;;  %4126 = vmatprep.subr.bf16.mxu0 %v4515_v31 }
  0x2d   :  { %3732 = vmatprep.mubr.msk.f32.mxu1 %vm59_vm0, %v42_v40  ;;  %4125 = vmatpush3.bf16.msra.mxu1 %v4625_v41 }
  0x2e   :  { %3705 = vmatmul.mubr.msk.f32.gmra.mrb[4].mxu0 %vm59_vm0, %v43_v42  ;;  %4132 = vmatprep.subr.bf16.mxu1 %v4515_v31 }
  0x2f   :  { %3707 = vmatprep.mubr.msk.f32.mxu0 %vm59_vm0, %v44_v43 }
  0x30   :  { %3733 = vmatmul.mubr.msk.f32.gmra.mrb[4].mxu1 %vm59_vm0, %v43_v42 }
  0x31   :  { %3735 = vmatprep.mubr.msk.f32.mxu1 %vm59_vm0, %v44_v43 }
  0x32   :  { %3708 = vmatmul.mubr.msk.f32.gmra.mrb[6].mxu0 %vm59_vm0, %v45_v44 }
  0x33   :  { %3746 = vmatprep.mubr.msk.f32.mxu0 %vm4516_vm1, %v4517_v45 }
  0x34   :  { %3736 = vmatmul.mubr.msk.f32.gmra.mrb[6].mxu1 %vm59_vm0, %v45_v44 }
  0x35   :  { %3757 = vmatprep.mubr.msk.f32.mxu1 %vm4516_vm1, %v4517_v45 }
  0x36   :  { %3747 = vmatmul.mubr.f32.vlgmr.msra.gmra.mrb[8].mxu0 %v4517_v45 }
  0x37   :  { %4128 = vmatpush3.bf16.msra.mxu0 %v4589_v30  ;;  %3768 = vmatprep.mubr.msk.f32.mxu0 %vm4516_vm1, %v4517_v45 }
  0x38   :  { %3758 = vmatmul.mubr.f32.vlgmr.msra.gmra.mrb[8].mxu1 %v4517_v45  ;;  %4129 = vmatprep.subr.bf16.mxu0 %v4515_v31 }
  0x39   :  { %4134 = vmatpush3.bf16.msra.mxu1 %v4602_v35  ;;  %3779 = vmatprep.mubr.msk.f32.mxu1 %vm4516_vm1, %v4517_v45 }
  0x3a   :  { %4135 = vmatprep.subr.bf16.mxu1 %v4515_v31 }
  0x3b   :  { %4131 = vmatpush3.bf16.msra.mxu0 %v4616_v39 }
  0x3c   :  { %4138 = vmatprep.subr.bf16.mxu0 %v4515_v31 }
  0x3d   :  { %4137 = vmatpush3.bf16.msra.mxu1 %v4625_v41 }
  0x3e   :  { %4144 = vmatprep.subr.bf16.mxu1 %v4515_v31 }
  0xf9   :  { %v3700_v53 = vpop.f32.mrb[0].mxu0 }
  0xfa   :  { %v4679_v54 = vadd.f32 %v3700_v53, %v58_v50  ;;  %v150_v55 = vpop.f32.mrb[1].mxu0 }
  0xfb   :  { %v3728_v56 = vpop.f32.mrb[0].mxu1  ;;  %v151_v29 = vadd.f32 %v150_v55, %v58_v50 }
  0xfc   :  { %v4681_v57 = vadd.f32 %v3728_v56, %v203_v52  ;;  %v270_v58 = vpop.f32.mrb[1].mxu1 }
  0xfd   :  { %v3703_v59 = vpop.f32.mrb[2].mxu0  ;;  %v4683_v60 = vadd.f32 %v270_v58, %v203_v52 }
  0xfe   :  { %v4685_v61 = vadd.f32 %v3703_v59, %v58_v50  ;;  %v160_v62 = vpop.f32.mrb[3].mxu0 }
  0xff   :  { %v4687_v63 = vadd.f32 %v160_v62, %v58_v50  ;;  %v3731_v0 = vpop.f32.mrb[2].mxu1 }
 0x100   :  { %v4689_v1 = vadd.f32 %v3731_v0, %v203_v52  ;;  %v280_v2 = vpop.f32.mrb[3].mxu1 }
 0x101   :  { %v3706_v3 = vpop.f32.mrb[4].mxu0  ;;  %v4691_v4 = vadd.f32 %v280_v2, %v203_v52 }
 0x102   :  { %v4693_v5 = vadd.f32 %v3706_v3, %v58_v50  ;;  %v170_v6 = vpop.f32.mrb[5].mxu0 }
 0x103   :  { %v4697_v8 = vadd.f32 %v170_v6, %v58_v50  ;;  %v3734_v9 = vpop.f32.mrb[4].mxu1 }
 0x104   :  { %v4699_v10 = vadd.f32 %v3734_v9, %v203_v52  ;;  %v290_v11 = vpop.f32.mrb[5].mxu1 }
 0x105   :  { %v3709_v12 = vpop.f32.mrb[6].mxu0  ;;  %v4701_v13 = vadd.f32 %v290_v11, %v203_v52 }
 0x106   :  { %v4703_v14 = vadd.f32 %v3709_v12, %v58_v50  ;;  %v180_v15 = vpop.f32.mrb[7].mxu0 }
 0x107   :  { %v4708_v17 = vadd.f32 %v180_v15, %v58_v50  ;;  %v3737_v18 = vpop.f32.mrb[6].mxu1 }
 0x108   :  { %v306_v19 = vadd.f32 %v3737_v18, %v203_v52  ;;  %v300_v20 = vpop.f32.mrb[7].mxu1 }
 0x109   :  { %v396_v22 = vpop.f32.mrb[8].mxu0  ;;  %v4713_v23 = vadd.f32 %v300_v20, %v203_v52 }
 0x10a   :  { %v397_v24 = vadd.f32 %v396_v22, %v4706_v16  ;;  %v3748_v25 = vpop.f32.mrb[9].mxu0 }
 0x10b   :  { %v495_v26 = vpop.f32.mrb[8].mxu1 }
 0x10c   :  { %408 = vrot.lane.b32.xlu0 %v397_v24, %s4518_s20  ;;  %v496_v27 = vadd.f32 %v495_v26, %v4711_v21  ;;  %v3759_v28 = vpop.f32.mrb[9].mxu1  ;;  %v400_v32 = vadd.f32 %v397_v24, %v151_v29 }
 0x10e   :  { %v3422_v33 = vmul.f32 -1.442695, %v400_v32  ;;  %v499_v34 = vadd.f32 %v496_v27, %v306_v19 }
 0x110   :  { %507 = vrot.lane.b32.xlu0 %v496_v27, %s4518_s20  ;;  %4314 = vpow2.f32 %v3422_v33  ;;  %v3423_v36 = vmul.f32 -1.442695, %v499_v34 }
 0x112   :  { %4316 = vpow2.f32 %v3423_v36 }
 0x11a   :  { %v4315_v37 = vpop.eup %4314 }
 0x11b   :  { %v404_v38 = vadd.f32 1.0, %v4315_v37 }
 0x11c   :  { %v4317_v40 = vpop.eup %4316 }
 0x11d   :  { %4318 = vrcp.f32 %v404_v38  ;;  %v503_v42 = vadd.f32 1.0, %v4317_v40 }
 0x11f   :  { %4320 = vrcp.f32 %v503_v42 }
 0x127   :  { %v4319_v43 = vpop.eup %4318 }
 0x129   :  { %v4321_v47 = vpop.eup %4320 }
 0x17e   :  { %v409_v44 = vpop.permute.xlu0 %408 }
 0x17f   :  { %v411_v46 = vmul.f32 %v4319_v43, %v409_v44 }
 0x181   :  { %413 = vrot.lane.b32.xlu1 %v411_v46, %s4518_s20 }
 0x182   :  { %v508_v49 = vpop.permute.xlu0 %507 }
 0x183   :  { %v510_v50 = vmul.f32 %v4321_v47, %v508_v49 }
 0x185   :  { %512 = vrot.lane.b32.xlu1 %v510_v50, %s4518_s20 }
 0x1f3   :  { %v414_v51 = vpop.permute.xlu1 %413 }
 0x1f4   :  { %v416_v52 = vadd.f32 %v414_v51, %v151_v29 }
 0x1f6   :  { %4322 = vtanh.f32 %v416_v52 }
 0x1f7   :  { %v513_v53 = vpop.permute.xlu1 %512 }
 0x1f8   :  { %v515_v55 = vadd.f32 %v513_v53, %v306_v19 }
 0x1fa   :  { %4324 = vtanh.f32 %v515_v55 }
 0x200   :  { %v4323_v56 = vpop.eup %4322 }
 0x201   :  { %v418_v58 = vsub.f32 0.0, %v4323_v56 }
 0x203   :  { %420 = vrot.lane.b32.xlu0 %v418_v58, %s4519_s21 }
 0x204   :  { %v4325_v59 = vpop.eup %4324 }
 0x205   :  { %v517_v62 = vsub.f32 0.0, %v4325_v59 }
 0x207   :  { %519 = vrot.lane.b32.xlu1 %v517_v62, %s4519_s21 }
 0x275   :  { %v421_v0 = vpop.permute.xlu0 %420 }
 0x276   :  { %v423_v2 = vmul.f32 %v4319_v43, %v421_v0 }
 0x278   :  { %425 = vrot.lane.b32.xlu0 %v423_v2, %s4520_s22 }
 0x279   :  { %v520_v3 = vpop.permute.xlu1 %519 }
 0x27a   :  { %v522_v6 = vmul.f32 %v4321_v47, %v520_v3 }
 0x27c   :  { %524 = vrot.lane.b32.xlu1 %v522_v6, %s4520_s22 }
 0x2ea   :  { %v426_v9 = vpop.permute.xlu0 %425 }
 0x2eb   :  { %v428_v11 = vadd.f32 %v4323_v56, %v426_v9 }
 0x2ed   :  { %529 = vrot.lane.b32.xlu0 %v428_v11, %s4518_s20 }
 0x2ee   :  { %v525_v12 = vpop.permute.xlu1 %524 }
 0x2ef   :  { %v4726_v15 = vadd.f32 %v4325_v59, %v525_v12 }
 0x2f1   :  { %640 = vrot.lane.b32.xlu1 %v4726_v15, %s4518_s20 }
 0x35f   :  { %v530_v18 = vpop.permute.xlu0 %529 }
 0x360   :  { %532 = vst.msk [vmem:[#allocation2] sm:$0xff] %vm326_vm2, %v530_v18  ;;  %3769 = vmatmul.mubr.msk.f32.vlgmr.msra.gmra.mrb[10].mxu0 %vm326_vm2, %v530_v18 }
 0x361   :  { %4140 = vmatpush3.bf16.msra.mxu0 %v4589_v30  ;;  %3790 = vmatprep.mubr.msk.f32.mxu0 %vm4516_vm1, %v4517_v45 }
 0x362   :  { %4141 = vmatprep.subr.bf16.mxu0 %v4515_v31 }
 0x363   :  { %v641_v19 = vpop.permute.xlu1 %640 }
 0x364   :  { %3780 = vmatmul.mubr.msk.f32.vlgmr.msra.gmra.mrb[10].mxu1 %vm326_vm2, %v641_v19 }
 0x365   :  { %4143 = vmatpush3.bf16.msra.mxu0 %v4616_v39  ;;  %4146 = vmatpush3.bf16.msra.mxu1 %v4602_v35 }
 0x366   :  { %4147 = vmatprep.subr.bf16.mxu1 %v4515_v31  ;;  %3801 = vmatprep.mubr.msk.f32.mxu1 %vm4516_vm1, %v4517_v45 }
 0x367   :  { %4150 = vmatprep.subr.bf16.mxu0 %v4515_v31 }
 0x369   :  { %4149 = vmatpush3.bf16.msra.mxu1 %v4625_v41 }
 0x36a   :  { %4156 = vmatprep.subr.bf16.mxu1 %v4515_v31 }
 0x433   :  { %v607_v20 = vpop.f32.mrb[10].mxu0 }
 0x434   :  { %v608_v22 = vadd.f32 %v607_v20, %v4706_v16  ;;  %v3770_v24 = vpop.f32.mrb[11].mxu0 }
 0x436   :  { %619 = vrot.lane.b32.xlu0 %v608_v22, %s4518_s20  ;;  %v611_v28 = vadd.f32 %v608_v22, %v4679_v54 }
 0x437   :  { %v710_v25 = vpop.f32.mrb[10].mxu1 }
 0x438   :  { %v711_v26 = vadd.f32 %v710_v25, %v4711_v21  ;;  %v3781_v27 = vpop.f32.mrb[11].mxu1  ;;  %v3425_v29 = vmul.f32 -1.442695, %v611_v28 }
 0x43a   :  { %722 = vrot.lane.b32.xlu1 %v711_v26, %s4518_s20  ;;  %v714_v32 = vadd.f32 %v711_v26, %v4713_v23  ;;  %4326 = vpow2.f32 %v3425_v29 }
 0x43c   :  { %v3427_v33 = vmul.f32 -1.442695, %v714_v32 }
 0x43e   :  { %4328 = vpow2.f32 %v3427_v33 }
 0x444   :  { %v4327_v34 = vpop.eup %4326 }
 0x445   :  { %v615_v36 = vadd.f32 1.0, %v4327_v34 }
 0x447   :  { %4330 = vrcp.f32 %v615_v36 }
 0x448   :  { %v4329_v37 = vpop.eup %4328 }
 0x449   :  { %v718_v38 = vadd.f32 1.0, %v4329_v37 }
 0x44b   :  { %4332 = vrcp.f32 %v718_v38 }
 0x451   :  { %v4331_v40 = vpop.eup %4330 }
 0x455   :  { %v4333_v44 = vpop.eup %4332 }
 0x4a8   :  { %v620_v42 = vpop.permute.xlu0 %619 }
 0x4a9   :  { %v622_v43 = vmul.f32 %v4331_v40, %v620_v42 }
 0x4ab   :  { %624 = vrot.lane.b32.xlu0 %v622_v43, %s4518_s20 }
 0x4ac   :  { %v723_v46 = vpop.permute.xlu1 %722 }
 0x4ad   :  { %v725_v47 = vmul.f32 %v4333_v44, %v723_v46 }
 0x4af   :  { %727 = vrot.lane.b32.xlu1 %v725_v47, %s4518_s20 }
 0x51d   :  { %v625_v49 = vpop.permute.xlu0 %624 }
 0x51e   :  { %v627_v50 = vadd.f32 %v625_v49, %v4679_v54 }
 0x520   :  { %4334 = vtanh.f32 %v627_v50 }
 0x521   :  { %v728_v51 = vpop.permute.xlu1 %727 }
 0x522   :  { %v730_v52 = vadd.f32 %v728_v51, %v4713_v23 }
 0x524   :  { %4336 = vtanh.f32 %v730_v52 }
 0x52a   :  { %v4335_v53 = vpop.eup %4334 }
 0x52b   :  { %v629_v55 = vsub.f32 %v428_v11, %v4335_v53 }
 0x52d   :  { %631 = vrot.lane.b32.xlu0 %v629_v55, %s4519_s21 }
 0x52e   :  { %v4337_v56 = vpop.eup %4336 }
 0x52f   :  { %v732_v58 = vsub.f32 %v4726_v15, %v4337_v56 }
 0x531   :  { %734 = vrot.lane.b32.xlu1 %v732_v58, %s4519_s21 }
 0x59f   :  { %v632_v59 = vpop.permute.xlu0 %631 }
 0x5a0   :  { %v634_v62 = vmul.f32 %v4331_v40, %v632_v59 }
 0x5a2   :  { %636 = vrot.lane.b32.xlu0 %v634_v62, %s4520_s22 }
 0x5a3   :  { %v735_v0 = vpop.permute.xlu1 %734 }
 0x5a4   :  { %v737_v54 = vmul.f32 %v4333_v44, %v735_v0 }
 0x5a6   :  { %739 = vrot.lane.b32.xlu1 %v737_v54, %s4520_s22 }
 0x614   :  { %v637_v2 = vpop.permute.xlu0 %636 }
 0x615   :  { %v639_v23 = vadd.f32 %v4335_v53, %v637_v2 }
 0x617   :  { %744 = vrot.lane.b32.xlu0 %v639_v23, %s4518_s20 }
 0x618   :  { %v740_v3 = vpop.permute.xlu1 %739 }
 0x619   :  { %v4761_v6 = vadd.f32 %v4337_v56, %v740_v3 }
 0x61b   :  { %854 = vrot.lane.b32.xlu1 %v4761_v6, %s4518_s20 }
 0x689   :  { %v745_v9 = vpop.permute.xlu0 %744 }
 0x68a   :  { %747 = vst.msk [vmem:[#allocation2 + $0x8] sm:$0xff] %vm326_vm2, %v745_v9  ;;  %3791 = vmatmul.mubr.msk.f32.vlgmr.msra.gmra.mrb[12].mxu0 %vm326_vm2, %v745_v9 }
 0x68b   :  { %4152 = vmatpush3.bf16.msra.mxu0 %v4589_v30  ;;  %3812 = vmatprep.mubr.msk.f32.mxu0 %vm4516_vm1, %v4517_v45 }
 0x68c   :  { %4153 = vmatprep.subr.bf16.mxu0 %v4515_v31 }
 0x68d   :  { %v855_v11 = vpop.permute.xlu1 %854 }
 0x68e   :  { %3802 = vmatmul.mubr.msk.f32.vlgmr.msra.gmra.mrb[12].mxu1 %vm326_vm2, %v855_v11 }
 0x68f   :  { %4155 = vmatpush3.bf16.msra.mxu0 %v4616_v39  ;;  %4158 = vmatpush3.bf16.msra.mxu1 %v4602_v35 }
 0x690   :  { %4159 = vmatprep.subr.bf16.mxu1 %v4515_v31  ;;  %3823 = vmatprep.mubr.msk.f32.mxu1 %vm4516_vm1, %v4517_v45 }
 0x691   :  { %4162 = vmatprep.subr.bf16.mxu0 %v4515_v31 }
 0x693   :  { %4161 = vmatpush3.bf16.msra.mxu1 %v4625_v41 }
 0x694   :  { %4168 = vmatprep.subr.bf16.mxu1 %v4515_v31 }
 0x75d   :  { %v821_v12 = vpop.f32.mrb[12].mxu0 }
 0x75e   :  { %v822_v18 = vadd.f32 %v821_v12, %v4706_v16  ;;  %v3792_v19 = vpop.f32.mrb[13].mxu0 }
 0x760   :  { %833 = vrot.lane.b32.xlu0 %v822_v18, %s4518_s20  ;;  %v825_v25 = vadd.f32 %v822_v18, %v4687_v63 }
 0x761   :  { %v924_v20 = vpop.f32.mrb[12].mxu1 }
 0x762   :  { %v925_v22 = vadd.f32 %v924_v20, %v4711_v21  ;;  %v3803_v24 = vpop.f32.mrb[13].mxu1  ;;  %v3429_v26 = vmul.f32 -1.442695, %v825_v25 }
 0x764   :  { %936 = vrot.lane.b32.xlu1 %v925_v22, %s4518_s20  ;;  %v928_v27 = vadd.f32 %v925_v22, %v4699_v10  ;;  %4338 = vpow2.f32 %v3429_v26 }
 0x766   :  { %v3431_v28 = vmul.f32 -1.442695, %v928_v27 }
 0x768   :  { %4340 = vpow2.f32 %v3431_v28 }
 0x76e   :  { %v4339_v29 = vpop.eup %4338 }
 0x76f   :  { %v829_v32 = vadd.f32 1.0, %v4339_v29 }
 0x771   :  { %4342 = vrcp.f32 %v829_v32 }
 0x772   :  { %v4341_v33 = vpop.eup %4340 }
 0x773   :  { %v932_v34 = vadd.f32 1.0, %v4341_v33 }
 0x775   :  { %4344 = vrcp.f32 %v932_v34 }
 0x77b   :  { %v4343_v36 = vpop.eup %4342 }
 0x77f   :  { %v4345_v40 = vpop.eup %4344 }
 0x7d2   :  { %v834_v37 = vpop.permute.xlu0 %833 }
 0x7d3   :  { %v836_v38 = vmul.f32 %v4343_v36, %v834_v37 }
 0x7d5   :  { %838 = vrot.lane.b32.xlu0 %v836_v38, %s4518_s20 }
 0x7d6   :  { %v937_v42 = vpop.permute.xlu1 %936 }
 0x7d7   :  { %v939_v43 = vmul.f32 %v4345_v40, %v937_v42 }
 0x7d9   :  { %941 = vrot.lane.b32.xlu1 %v939_v43, %s4518_s20 }
 0x847   :  { %v839_v44 = vpop.permute.xlu0 %838 }
 0x848   :  { %v841_v46 = vadd.f32 %v839_v44, %v4687_v63 }
 0x84a   :  { %4346 = vtanh.f32 %v841_v46 }
 0x84b   :  { %v942_v47 = vpop.permute.xlu1 %941 }
 0x84c   :  { %v944_v49 = vadd.f32 %v942_v47, %v4699_v10 }
 0x84e   :  { %4348 = vtanh.f32 %v944_v49 }
 0x854   :  { %v4347_v50 = vpop.eup %4346 }
 0x855   :  { %v843_v51 = vsub.f32 %v639_v23, %v4347_v50 }
 0x857   :  { %845 = vrot.lane.b32.xlu0 %v843_v51, %s4519_s21 }
 0x858   :  { %v4349_v52 = vpop.eup %4348 }
 0x859   :  { %v946_v53 = vsub.f32 %v4761_v6, %v4349_v52 }
 0x85b   :  { %948 = vrot.lane.b32.xlu1 %v946_v53, %s4519_s21 }
 0x8c9   :  { %v846_v55 = vpop.permute.xlu0 %845 }
 0x8ca   :  { %v848_v56 = vmul.f32 %v4343_v36, %v846_v55 }
 0x8cc   :  { %850 = vrot.lane.b32.xlu0 %v848_v56, %s4520_s22 }
 0x8cd   :  { %v949_v58 = vpop.permute.xlu1 %948 }
 0x8ce   :  { %v951_v63 = vmul.f32 %v4345_v40, %v949_v58 }
 0x8d0   :  { %953 = vrot.lane.b32.xlu1 %v951_v63, %s4520_s22 }
 0x93e   :  { %v851_v59 = vpop.permute.xlu0 %850 }
 0x93f   :  { %v853_v10 = vadd.f32 %v4347_v50, %v851_v59 }
 0x941   :  { %958 = vrot.lane.b32.xlu0 %v853_v10, %s4518_s20 }
 0x942   :  { %v954_v62 = vpop.permute.xlu1 %953 }
 0x943   :  { %v4796_v0 = vadd.f32 %v4349_v52, %v954_v62 }
 0x945   :  { %1068 = vrot.lane.b32.xlu1 %v4796_v0, %s4518_s20 }
 0x9b3   :  { %v959_v54 = vpop.permute.xlu0 %958 }
 0x9b4   :  { %961 = vst.msk [vmem:[#allocation2 + $0x10] sm:$0xff] %vm326_vm2, %v959_v54  ;;  %3813 = vmatmul.mubr.msk.f32.vlgmr.msra.gmra.mrb[14].mxu0 %vm326_vm2, %v959_v54 }
 0x9b5   :  { %4164 = vmatpush3.bf16.msra.mxu0 %v4589_v30  ;;  %3834 = vmatprep.mubr.msk.f32.mxu0 %vm4516_vm1, %v4517_v45 }
 0x9b6   :  { %4165 = vmatprep.subr.bf16.mxu0 %v4515_v31 }
 0x9b7   :  { %v1069_v2 = vpop.permute.xlu1 %1068 }
 0x9b8   :  { %3824 = vmatmul.mubr.msk.f32.vlgmr.msra.gmra.mrb[14].mxu1 %vm326_vm2, %v1069_v2 }
 0x9b9   :  { %4167 = vmatpush3.bf16.msra.mxu0 %v4616_v39  ;;  %4170 = vmatpush3.bf16.msra.mxu1 %v4602_v35 }
 0x9ba   :  { %4171 = vmatprep.subr.bf16.mxu1 %v4515_v31  ;;  %3845 = vmatprep.mubr.msk.f32.mxu1 %vm4516_vm1, %v4517_v45 }
 0x9bb   :  { %4174 = vmatprep.subr.bf16.mxu0 %v4515_v31 }
 0x9bd   :  { %4173 = vmatpush3.bf16.msra.mxu1 %v4625_v41 }
 0x9be   :  { %4180 = vmatprep.subr.bf16.mxu1 %v4515_v31 }
 0xa87   :  { %v1035_v23 = vpop.f32.mrb[14].mxu0 }
 0xa88   :  { %v1036_v3 = vadd.f32 %v1035_v23, %v4706_v16  ;;  %v3814_v9 = vpop.f32.mrb[15].mxu0 }
 0xa8a   :  { %1047 = vrot.lane.b32.xlu0 %v1036_v3, %s4518_s20  ;;  %v1039_v19 = vadd.f32 %v1036_v3, %v4685_v61 }
 0xa8b   :  { %v1138_v11 = vpop.f32.mrb[14].mxu1 }
 0xa8c   :  { %v1139_v12 = vadd.f32 %v1138_v11, %v4711_v21  ;;  %v3825_v18 = vpop.f32.mrb[15].mxu1  ;;  %v3433_v20 = vmul.f32 -1.442695, %v1039_v19 }
 0xa8e   :  { %1150 = vrot.lane.b32.xlu1 %v1139_v12, %s4518_s20  ;;  %v1142_v22 = vadd.f32 %v1139_v12, %v4701_v13  ;;  %4350 = vpow2.f32 %v3433_v20 }
 0xa90   :  { %v3435_v24 = vmul.f32 -1.442695, %v1142_v22 }
 0xa92   :  { %4352 = vpow2.f32 %v3435_v24 }
 0xa98   :  { %v4351_v25 = vpop.eup %4350 }
 0xa99   :  { %v1043_v26 = vadd.f32 1.0, %v4351_v25 }
 0xa9b   :  { %4354 = vrcp.f32 %v1043_v26 }
 0xa9c   :  { %v4353_v27 = vpop.eup %4352 }
 0xa9d   :  { %v1146_v28 = vadd.f32 1.0, %v4353_v27 }
 0xa9f   :  { %4356 = vrcp.f32 %v1146_v28 }
 0xaa5   :  { %v4355_v29 = vpop.eup %4354 }
 0xaa9   :  { %v4357_v34 = vpop.eup %4356 }
 0xafc   :  { %v1048_v32 = vpop.permute.xlu0 %1047 }
 0xafd   :  { %v1050_v33 = vmul.f32 %v4355_v29, %v1048_v32 }
 0xaff   :  { %1052 = vrot.lane.b32.xlu0 %v1050_v33, %s4518_s20 }
 0xb00   :  { %v1151_v36 = vpop.permute.xlu1 %1150 }
 0xb01   :  { %v1153_v37 = vmul.f32 %v4357_v34, %v1151_v36 }
 0xb03   :  { %1155 = vrot.lane.b32.xlu1 %v1153_v37, %s4518_s20 }
 0xb71   :  { %v1053_v38 = vpop.permute.xlu0 %1052 }
 0xb72   :  { %v1055_v40 = vadd.f32 %v1053_v38, %v4685_v61 }
 0xb74   :  { %4358 = vtanh.f32 %v1055_v40 }
 0xb75   :  { %v1156_v42 = vpop.permute.xlu1 %1155 }
 0xb76   :  { %v1158_v43 = vadd.f32 %v1156_v42, %v4701_v13 }
 0xb78   :  { %4360 = vtanh.f32 %v1158_v43 }
 0xb7e   :  { %v4359_v44 = vpop.eup %4358 }
 0xb7f   :  { %v1057_v46 = vsub.f32 %v853_v10, %v4359_v44 }
 0xb81   :  { %1059 = vrot.lane.b32.xlu0 %v1057_v46, %s4519_s21 }
 0xb82   :  { %v4361_v47 = vpop.eup %4360 }
 0xb83   :  { %v1160_v49 = vsub.f32 %v4796_v0, %v4361_v47 }
 0xb85   :  { %1162 = vrot.lane.b32.xlu1 %v1160_v49, %s4519_s21 }
 0xbf3   :  { %v1060_v50 = vpop.permute.xlu0 %1059 }
 0xbf4   :  { %v1062_v51 = vmul.f32 %v4355_v29, %v1060_v50 }
 0xbf6   :  { %1064 = vrot.lane.b32.xlu0 %v1062_v51, %s4520_s22 }
 0xbf7   :  { %v1163_v52 = vpop.permute.xlu1 %1162 }
 0xbf8   :  { %v1165_v61 = vmul.f32 %v4357_v34, %v1163_v52 }
 0xbfa   :  { %1167 = vrot.lane.b32.xlu1 %v1165_v61, %s4520_s22 }
 0xc68   :  { %v1065_v53 = vpop.permute.xlu0 %1064 }
 0xc69   :  { %v1067_v13 = vadd.f32 %v4359_v44, %v1065_v53 }
 0xc6b   :  { %1172 = vrot.lane.b32.xlu0 %v1067_v13, %s4518_s20 }
 0xc6c   :  { %v1168_v55 = vpop.permute.xlu1 %1167 }
 0xc6d   :  { %v4831_v56 = vadd.f32 %v4361_v47, %v1168_v55 }
 0xc6f   :  { %1282 = vrot.lane.b32.xlu1 %v4831_v56, %s4518_s20 }
 0xcdd   :  { %v1173_v58 = vpop.permute.xlu0 %1172 }
 0xcde   :  { %1175 = vst.msk [vmem:[#allocation2 + $0x18] sm:$0xff] %vm326_vm2, %v1173_v58  ;;  %3835 = vmatmul.mubr.msk.f32.vlgmr.msra.gmra.mrb[16].mxu0 %vm326_vm2, %v1173_v58 }
 0xcdf   :  { %4176 = vmatpush3.bf16.msra.mxu0 %v4589_v30  ;;  %3856 = vmatprep.mubr.msk.f32.mxu0 %vm4516_vm1, %v4517_v45 }
 0xce0   :  { %4177 = vmatprep.subr.bf16.mxu0 %v4515_v31 }
 0xce1   :  { %v1283_v63 = vpop.permute.xlu1 %1282 }
 0xce2   :  { %3846 = vmatmul.mubr.msk.f32.vlgmr.msra.gmra.mrb[16].mxu1 %vm326_vm2, %v1283_v63 }
 0xce3   :  { %4179 = vmatpush3.bf16.msra.mxu0 %v4616_v39  ;;  %4182 = vmatpush3.bf16.msra.mxu1 %v4602_v35 }
 0xce4   :  { %4183 = vmatprep.subr.bf16.mxu1 %v4515_v31  ;;  %3867 = vmatprep.mubr.msk.f32.mxu1 %vm4516_vm1, %v4517_v45 }
 0xce5   :  { %4186 = vmatprep.subr.bf16.mxu0 %v4515_v31 }
 0xce7   :  { %4185 = vmatpush3.bf16.msra.mxu1 %v4625_v41 }
 0xce8   :  { %4192 = vmatprep.subr.bf16.mxu1 %v4515_v31 }
 0xdb1   :  { %v1249_v59 = vpop.f32.mrb[16].mxu0 }
 0xdb2   :  { %v1250_v10 = vadd.f32 %v1249_v59, %v4706_v16  ;;  %v3836_v62 = vpop.f32.mrb[17].mxu0 }
 0xdb4   :  { %1261 = vrot.lane.b32.xlu0 %v1250_v10, %s4518_s20  ;;  %v1253_v3 = vadd.f32 %v1250_v10, %v4697_v8 }
 0xdb5   :  { %v1352_v54 = vpop.f32.mrb[16].mxu1 }
 0xdb6   :  { %v1353_v2 = vadd.f32 %v1352_v54, %v4711_v21  ;;  %v3847_v23 = vpop.f32.mrb[17].mxu1  ;;  %v3437_v9 = vmul.f32 -1.442695, %v1253_v3 }
 0xdb8   :  { %1364 = vrot.lane.b32.xlu1 %v1353_v2, %s4518_s20  ;;  %v1356_v11 = vadd.f32 %v1353_v2, %v4689_v1  ;;  %4362 = vpow2.f32 %v3437_v9 }
 0xdba   :  { %v3439_v12 = vmul.f32 -1.442695, %v1356_v11 }
 0xdbc   :  { %4364 = vpow2.f32 %v3439_v12 }
 0xdc2   :  { %v4363_v18 = vpop.eup %4362 }
 0xdc3   :  { %v1257_v19 = vadd.f32 1.0, %v4363_v18 }
 0xdc5   :  { %4366 = vrcp.f32 %v1257_v19 }
 0xdc6   :  { %v4365_v20 = vpop.eup %4364 }
 0xdc7   :  { %v1360_v22 = vadd.f32 1.0, %v4365_v20 }
 0xdc9   :  { %4368 = vrcp.f32 %v1360_v22 }
 0xdcf   :  { %v4367_v24 = vpop.eup %4366 }
 0xdd3   :  { %v4369_v27 = vpop.eup %4368 }
 0xe26   :  { %v1262_v25 = vpop.permute.xlu0 %1261 }
 0xe27   :  { %v1264_v26 = vmul.f32 %v4367_v24, %v1262_v25 }
 0xe29   :  { %1266 = vrot.lane.b32.xlu0 %v1264_v26, %s4518_s20 }
 0xe2a   :  { %v1365_v28 = vpop.permute.xlu1 %1364 }
 0xe2b   :  { %v1367_v29 = vmul.f32 %v4369_v27, %v1365_v28 }
 0xe2d   :  { %1369 = vrot.lane.b32.xlu1 %v1367_v29, %s4518_s20 }
 0xe9b   :  { %v1267_v32 = vpop.permute.xlu0 %1266 }
 0xe9c   :  { %v1269_v33 = vadd.f32 %v1267_v32, %v4697_v8 }
 0xe9e   :  { %4370 = vtanh.f32 %v1269_v33 }
 0xe9f   :  { %v1370_v34 = vpop.permute.xlu1 %1369 }
 0xea0   :  { %v1372_v36 = vadd.f32 %v1370_v34, %v4689_v1 }
 0xea2   :  { %4372 = vtanh.f32 %v1372_v36 }
 0xea8   :  { %v4371_v37 = vpop.eup %4370 }
 0xea9   :  { %v1271_v38 = vsub.f32 %v1067_v13, %v4371_v37 }
 0xeab   :  { %1273 = vrot.lane.b32.xlu0 %v1271_v38, %s4519_s21 }
 0xeac   :  { %v4373_v40 = vpop.eup %4372 }
 0xead   :  { %v1374_v42 = vsub.f32 %v4831_v56, %v4373_v40 }
 0xeaf   :  { %1376 = vrot.lane.b32.xlu1 %v1374_v42, %s4519_s21 }
 0xf1d   :  { %v1274_v43 = vpop.permute.xlu0 %1273 }
 0xf1e   :  { %v1276_v44 = vmul.f32 %v4367_v24, %v1274_v43 }
 0xf20   :  { %1278 = vrot.lane.b32.xlu0 %v1276_v44, %s4520_s22 }
 0xf21   :  { %v1377_v46 = vpop.permute.xlu1 %1376 }
 0xf22   :  { %v1379_v8 = vmul.f32 %v4369_v27, %v1377_v46 }
 0xf24   :  { %1381 = vrot.lane.b32.xlu1 %v1379_v8, %s4520_s22 }
 0xf92   :  { %v1279_v47 = vpop.permute.xlu0 %1278 }
 0xf93   :  { %v1281_v1 = vadd.f32 %v4371_v37, %v1279_v47 }
 0xf95   :  { %1386 = vrot.lane.b32.xlu0 %v1281_v1, %s4518_s20 }
 0xf96   :  { %v1382_v49 = vpop.permute.xlu1 %1381 }
 0xf97   :  { %v4866_v50 = vadd.f32 %v4373_v40, %v1382_v49 }
 0xf99   :  { %1496 = vrot.lane.b32.xlu1 %v4866_v50, %s4518_s20 }
0x1007   :  { %v4870_v51 = vpop.permute.xlu0 %1386 }
0x1008   :  { %3857 = vmatmul.mubr.msk.f32.vlgmr.msra.gmra.mrb[18].mxu0 %vm326_vm2, %v4870_v51 }
0x1009   :  { %4188 = vmatpush3.bf16.msra.mxu0 %v4589_v30  ;;  %3878 = vmatprep.mubr.msk.f32.mxu0 %vm4516_vm1, %v4517_v45 }
0x100a   :  { %4189 = vmatprep.subr.bf16.mxu0 %v4515_v31 }
0x100b   :  { %v1497_v52 = vpop.permute.xlu1 %1496 }
0x100c   :  { %3868 = vmatmul.mubr.msk.f32.vlgmr.msra.gmra.mrb[18].mxu1 %vm326_vm2, %v1497_v52 }
0x100d   :  { %4191 = vmatpush3.bf16.msra.mxu0 %v4616_v39  ;;  %4194 = vmatpush3.bf16.msra.mxu1 %v4602_v35 }
0x100e   :  { %4195 = vmatprep.subr.bf16.mxu1 %v4515_v31  ;;  %3889 = vmatprep.mubr.msk.f32.mxu1 %vm4516_vm1, %v4517_v45 }
0x100f   :  { %4198 = vmatprep.subr.bf16.mxu0 %v4515_v31 }
0x1011   :  { %4197 = vmatpush3.bf16.msra.mxu1 %v4625_v41 }
0x1012   :  { %4204 = vmatprep.subr.bf16.mxu1 %v4515_v31 }
0x10db   :  { %v1463_v61 = vpop.f32.mrb[18].mxu0 }
0x10dc   :  { %v1464_v53 = vadd.f32 %v1463_v61, %v4706_v16  ;;  %v3858_v13 = vpop.f32.mrb[19].mxu0 }
0x10de   :  { %1475 = vrot.lane.b32.xlu0 %v1464_v53, %s4518_s20  ;;  %v1467_v59 = vadd.f32 %v1464_v53, %v4693_v5 }
0x10df   :  { %v1566_v55 = vpop.f32.mrb[18].mxu1 }
0x10e0   :  { %v1567_v58 = vadd.f32 %v1566_v55, %v4711_v21  ;;  %v3869_v63 = vpop.f32.mrb[19].mxu1  ;;  %v3441_v10 = vmul.f32 -1.442695, %v1467_v59 }
0x10e2   :  { %1578 = vrot.lane.b32.xlu1 %v1567_v58, %s4518_s20  ;;  %v1570_v62 = vadd.f32 %v1567_v58, %v4691_v4  ;;  %4374 = vpow2.f32 %v3441_v10 }
0x10e4   :  { %v3443_v54 = vmul.f32 -1.442695, %v1570_v62 }
0x10e6   :  { %4376 = vpow2.f32 %v3443_v54 }
0x10ec   :  { %v4375_v2 = vpop.eup %4374 }
0x10ed   :  { %v1471_v23 = vadd.f32 1.0, %v4375_v2 }
0x10ef   :  { %4378 = vrcp.f32 %v1471_v23 }
0x10f0   :  { %v4377_v3 = vpop.eup %4376 }
0x10f1   :  { %v1574_v9 = vadd.f32 1.0, %v4377_v3 }
0x10f3   :  { %4380 = vrcp.f32 %v1574_v9 }
0x10f9   :  { %v4379_v11 = vpop.eup %4378 }
0x10fd   :  { %v4381_v19 = vpop.eup %4380 }
0x1150   :  { %v1476_v12 = vpop.permute.xlu0 %1475 }
0x1151   :  { %v1478_v18 = vmul.f32 %v4379_v11, %v1476_v12 }
0x1153   :  { %1480 = vrot.lane.b32.xlu0 %v1478_v18, %s4518_s20 }
0x1154   :  { %v1579_v20 = vpop.permute.xlu1 %1578 }
0x1155   :  { %v1581_v22 = vmul.f32 %v4381_v19, %v1579_v20 }
0x1157   :  { %1583 = vrot.lane.b32.xlu1 %v1581_v22, %s4518_s20 }
0x11c5   :  { %v1481_v24 = vpop.permute.xlu0 %1480 }
0x11c6   :  { %v1483_v25 = vadd.f32 %v1481_v24, %v4693_v5 }
0x11c8   :  { %4382 = vtanh.f32 %v1483_v25 }
0x11c9   :  { %v1584_v26 = vpop.permute.xlu1 %1583 }
0x11ca   :  { %v1586_v27 = vadd.f32 %v1584_v26, %v4691_v4 }
0x11cc   :  { %4384 = vtanh.f32 %v1586_v27 }
0x11d2   :  { %v4383_v28 = vpop.eup %4382 }
0x11d3   :  { %v1485_v29 = vsub.f32 %v1281_v1, %v4383_v28 }
0x11d5   :  { %1487 = vrot.lane.b32.xlu0 %v1485_v29, %s4519_s21 }
0x11d6   :  { %v4385_v32 = vpop.eup %4384 }
0x11d7   :  { %v1588_v33 = vsub.f32 %v4866_v50, %v4385_v32 }
0x11d9   :  { %1590 = vrot.lane.b32.xlu1 %v1588_v33, %s4519_s21 }
0x1247   :  { %v1488_v34 = vpop.permute.xlu0 %1487 }
0x1248   :  { %v1490_v36 = vmul.f32 %v4379_v11, %v1488_v34 }
0x124a   :  { %1492 = vrot.lane.b32.xlu0 %v1490_v36, %s4520_s22 }
0x124b   :  { %v1591_v37 = vpop.permute.xlu1 %1590 }
0x124c   :  { %v1593_v5 = vmul.f32 %v4381_v19, %v1591_v37 }
0x124e   :  { %1595 = vrot.lane.b32.xlu1 %v1593_v5, %s4520_s22 }
0x12bc   :  { %v1493_v38 = vpop.permute.xlu0 %1492 }
0x12bd   :  { %v1495_v4 = vadd.f32 %v4383_v28, %v1493_v38 }
0x12bf   :  { %1600 = vrot.lane.b32.xlu0 %v1495_v4, %s4518_s20 }
0x12c0   :  { %v1596_v40 = vpop.permute.xlu1 %1595 }
0x12c1   :  { %v4903_v42 = vadd.f32 %v4385_v32, %v1596_v40 }
0x12c3   :  { %1710 = vrot.lane.b32.xlu1 %v4903_v42, %s4518_s20 }
0x1331   :  { %v4907_v43 = vpop.permute.xlu0 %1600 }
0x1332   :  { %3879 = vmatmul.mubr.msk.f32.vlgmr.msra.gmra.mrb[20].mxu0 %vm326_vm2, %v4907_v43 }
0x1333   :  { %4200 = vmatpush3.bf16.msra.mxu0 %v4589_v30  ;;  %3900 = vmatprep.mubr.msk.f32.mxu0 %vm4516_vm1, %v4517_v45 }
0x1334   :  { %4201 = vmatprep.subr.bf16.mxu0 %v4515_v31 }
0x1335   :  { %v1711_v44 = vpop.permute.xlu1 %1710 }
0x1336   :  { %3890 = vmatmul.mubr.msk.f32.vlgmr.msra.gmra.mrb[20].mxu1 %vm326_vm2, %v1711_v44 }
0x1337   :  { %4203 = vmatpush3.bf16.msra.mxu0 %v4616_v39  ;;  %4206 = vmatpush3.bf16.msra.mxu1 %v4602_v35 }
0x1338   :  { %4207 = vmatprep.subr.bf16.mxu1 %v4515_v31  ;;  %3911 = vmatprep.mubr.msk.f32.mxu1 %vm4516_vm1, %v4517_v45 }
0x1339   :  { %4210 = vmatprep.subr.bf16.mxu0 %v4515_v31 }
0x133b   :  { %4209 = vmatpush3.bf16.msra.mxu1 %v4625_v41 }
0x133c   :  { %4222 = vmatprep.subr.bf16.mxu1 %v4515_v31 }
0x1405   :  { %v1677_v30 = vpop.f32.mrb[20].mxu0 }
0x1406   :  { %v1678_v46 = vadd.f32 %v1677_v30, %v4706_v16  ;;  %v3880_v8 = vpop.f32.mrb[21].mxu0 }
0x1408   :  { %1689 = vrot.lane.b32.xlu0 %v1678_v46, %s4518_s20  ;;  %v1681_v1 = vadd.f32 %v1678_v46, %v4708_v17 }
0x1409   :  { %v1780_v39 = vpop.f32.mrb[20].mxu1 }
0x140a   :  { %v1781_v35 = vadd.f32 %v1780_v39, %v4711_v21  ;;  %v3891_v47 = vpop.f32.mrb[21].mxu1  ;;  %v3445_v49 = vmul.f32 -1.442695, %v1681_v1 }
0x140c   :  { %1792 = vrot.lane.b32.xlu1 %v1781_v35, %s4518_s20  ;;  %v1784_v52 = vadd.f32 %v1781_v35, %v4681_v57  ;;  %4386 = vpow2.f32 %v3445_v49 }
0x140e   :  { %v3447_v41 = vmul.f32 -1.442695, %v1784_v52 }
0x1410   :  { %4388 = vpow2.f32 %v3447_v41 }
0x1416   :  { %v4387_v61 = vpop.eup %4386 }
0x1417   :  { %v1685_v53 = vadd.f32 1.0, %v4387_v61 }
0x1419   :  { %4390 = vrcp.f32 %v1685_v53 }
0x141a   :  { %v4389_v13 = vpop.eup %4388 }
0x141b   :  { %v1788_v55 = vadd.f32 1.0, %v4389_v13 }
0x141d   :  { %4392 = vrcp.f32 %v1788_v55 }
0x1423   :  { %v4391_v58 = vpop.eup %4390 }
0x1427   :  { %v4393_v10 = vpop.eup %4392 }
0x147a   :  { %v1690_v63 = vpop.permute.xlu0 %1689 }
0x147b   :  { %v1692_v59 = vmul.f32 %v4391_v58, %v1690_v63 }
0x147d   :  { %1694 = vrot.lane.b32.xlu0 %v1692_v59, %s4518_s20  ;;  %v2057_v59 = vld [vmem:[#allocation3 + $0xc0] sm:$0xff] }
0x147e   :  { %v1793_v62 = vpop.permute.xlu1 %1792 }
0x147f   :  { %v1795_v54 = vmul.f32 %v4393_v10, %v1793_v62  ;;  %v2058_v62 = vld [vmem:[#allocation3 + $0xc8] sm:$0xff] }
0x1481   :  { %1797 = vrot.lane.b32.xlu1 %v1795_v54, %s4518_s20  ;;  %v3454_v54 = vld [vmem:[%s5250_s2 + $0x70] sm:$0xff] }
0x14ef   :  { %v1695_v2 = vpop.permute.xlu0 %1694 }
0x14f0   :  { %v1697_v23 = vadd.f32 %v1695_v2, %v4708_v17  ;;  %v3455_v2 = vld [vmem:[%s5250_s2 + $0x78] sm:$0xff] }
0x14f2   :  { %4394 = vtanh.f32 %v1697_v23  ;;  %v4211_v23 = vpack.c.bf16 %v2058_v62, %v2057_v59 }
0x14f3   :  { %v1798_v3 = vpop.permute.xlu1 %1797 }
0x14f4   :  { %v1800_v9 = vadd.f32 %v1798_v3, %v4681_v57  ;;  %v2059_v3 = vld [vmem:[#allocation3 + $0xd0] sm:$0xff] }
0x14f6   :  { %4396 = vtanh.f32 %v1800_v9  ;;  %v2060_v9 = vld [vmem:[#allocation3 + $0xd8] sm:$0xff] }
0x14fc   :  { %v4395_v11 = vpop.eup %4394 }
0x14fd   :  { %v1699_v12 = vsub.f32 %v1495_v4, %v4395_v11 }
0x14ff   :  { %1701 = vrot.lane.b32.xlu0 %v1699_v12, %s4519_s21  ;;  %v4226_v12 = vpack.c.bf16 %v3455_v2, %v3454_v54 }
0x1500   :  { %v4397_v18 = vpop.eup %4396 }
0x1501   :  { %v1802_v19 = vsub.f32 %v4903_v42, %v4397_v18 }
0x1503   :  { %1804 = vrot.lane.b32.xlu1 %v1802_v19, %s4519_s21 }
0x1571   :  { %v1702_v20 = vpop.permute.xlu0 %1701 }
0x1572   :  { %v1704_v22 = vmul.f32 %v4391_v58, %v1702_v20  ;;  %v4214_v20 = vpack.c.bf16 %v2060_v9, %v2059_v3 }
0x1574   :  { %1706 = vrot.lane.b32.xlu0 %v1704_v22, %s4520_s22 }
0x1575   :  { %v1805_v24 = vpop.permute.xlu1 %1804 }
0x1576   :  { %v1807_v17 = vmul.f32 %v4393_v10, %v1805_v24 }
0x1578   :  { %1809 = vrot.lane.b32.xlu1 %v1807_v17, %s4520_s22 }
0x15e6   :  { %v1707_v25 = vpop.permute.xlu0 %1706 }
0x15e7   :  { %v1709_v57 = vadd.f32 %v4395_v11, %v1707_v25  ;;  %v2242_v11 = vld [vmem:[#allocation3 + $0x80] sm:$0xff] }
0x15e9   :  { %1814 = vrot.lane.b32.xlu0 %v1709_v57, %s4518_s20 }
0x15ea   :  { %v1810_v26 = vpop.permute.xlu1 %1809 }
0x15eb   :  { %v4940_v27 = vadd.f32 %v4397_v18, %v1810_v26  ;;  %v2243_v18 = vld [vmem:[#allocation3 + $0x88] sm:$0xff] }
0x15ec   :  { %v4228_v22 = vpack.c.bf16 %v2243_v18, %v2242_v11  ;;  %v2062_v26 = vld [vmem:[#allocation3 + $0xe8] sm:$0xff] }
0x15ed   :  { %1924 = vrot.lane.b32.xlu1 %v4940_v27, %s4518_s20 }
0x165b   :  { %v4944_v28 = vpop.permute.xlu0 %1814 }
0x165c   :  { %3901 = vmatmul.mubr.msk.f32.vlgmr.msra.gmra.mrb[22].mxu0 %vm326_vm2, %v4944_v28 }
0x165d   :  { %3930 = vmatprep.mubr.msk.f32.mxu0 %vm4516_vm1, %v4517_v45  ;;  %4212 = vmatpush3.bf16.msra.mxu0 %v4211_v23 }
0x165e   :  { %4213 = vmatprep.subr.bf16.mxu0 %v4515_v31 }
0x165f   :  { %v1925_v29 = vpop.permute.xlu1 %1924 }
0x1660   :  { %3912 = vmatmul.mubr.msk.f32.vlgmr.msra.gmra.mrb[22].mxu1 %vm326_vm2, %v1925_v29 }
0x1661   :  { %3941 = vmatprep.mubr.msk.f32.mxu1 %vm4516_vm1, %v4517_v45  ;;  %4215 = vmatpush3.bf16.msra.mxu0 %v4214_v20 }
0x1662   :  { %4216 = vmatprep.subr.bf16.mxu0 %v4515_v31 }
0x172f   :  { %v1891_v32 = vpop.f32.mrb[22].mxu0 }
0x1730   :  { %v1892_v33 = vadd.f32 %v1891_v32, %v4706_v16  ;;  %v3902_v34 = vpop.f32.mrb[23].mxu0  ;;  %v2244_v32 = vld [vmem:[#allocation3 + $0x90] sm:$0xff] }
0x1732   :  { %1903 = vrot.lane.b32.xlu0 %v1892_v33, %s4518_s20  ;;  %v1895_v38 = vadd.f32 %v1892_v33, %v4703_v14  ;;  %v2245_v33 = vld [vmem:[#allocation3 + $0x98] sm:$0xff] }
0x1733   :  { %v1994_v36 = vpop.f32.mrb[22].mxu1  ;;  %v4232_v34 = vpack.c.bf16 %v2245_v33, %v2244_v32 }
0x1734   :  { %v1995_v37 = vadd.f32 %v1994_v36, %v4711_v21  ;;  %v3913_v5 = vpop.f32.mrb[23].mxu1  ;;  %v3449_v4 = vmul.f32 -1.442695, %v1895_v38  ;;  %v2063_v36 = vld [vmem:[#allocation3 + $0xf0] sm:$0xff]  ;;  %v2246_v38 = vld [vmem:[#allocation3 + $0xa0] sm:$0xff] }
0x1736   :  { %2006 = vrot.lane.b32.xlu1 %v1995_v37, %s4518_s20  ;;  %v1998_v40 = vadd.f32 %v1995_v37, %v4683_v60  ;;  %4398 = vpow2.f32 %v3449_v4  ;;  %v2064_v37 = vld [vmem:[#allocation3 + $0xf8] sm:$0xff]  ;;  %v2247_v4 = vld [vmem:[#allocation3 + $0xa8] sm:$0xff] }
0x1737   :  { %v4220_v5 = vpack.c.bf16 %v2064_v37, %v2063_v36 }
0x1738   :  { %v3451_v44 = vmul.f32 -1.442695, %v1998_v40  ;;  %v2248_v40 = vld [vmem:[#allocation3 + $0xb0] sm:$0xff] }
0x173a   :  { %4400 = vpow2.f32 %v3451_v44  ;;  %v2249_v44 = vld [vmem:[#allocation3 + $0xb8] sm:$0xff] }
0x1740   :  { %v4399_v30 = vpop.eup %4398 }
0x1741   :  { %v1899_v46 = vadd.f32 1.0, %v4399_v30  ;;  %v4240_v30 = vpack.c.bf16 %v2249_v44, %v2248_v40 }
0x1743   :  { %4402 = vrcp.f32 %v1899_v46 }
0x1744   :  { %v4401_v16 = vpop.eup %4400 }
0x1745   :  { %v2002_v8 = vadd.f32 1.0, %v4401_v16 }
0x1747   :  { %4404 = vrcp.f32 %v2002_v8 }
0x174d   :  { %v4403_v39 = vpop.eup %4402 }
0x1751   :  { %v4405_v47 = vpop.eup %4404 }
0x17a4   :  { %v1904_v35 = vpop.permute.xlu0 %1903 }
0x17a5   :  { %v1906_v21 = vmul.f32 %v4403_v39, %v1904_v35 }
0x17a7   :  { %1908 = vrot.lane.b32.xlu0 %v1906_v21, %s4518_s20 }
0x17a8   :  { %v2007_v1 = vpop.permute.xlu1 %2006 }
0x17a9   :  { %v2009_v49 = vmul.f32 %v4405_v47, %v2007_v1  ;;  %v3469_v1 = vld [vmem:[%s5250_s2 + $0x48] sm:$0xff] }
0x17ab   :  { %2011 = vrot.lane.b32.xlu1 %v2009_v49, %s4518_s20 }
0x1819   :  { %v1909_v52 = vpop.permute.xlu0 %1908 }
0x181a   :  { %v1911_v41 = vadd.f32 %v1909_v52, %v4703_v14  ;;  %v3452_v14 = vld [vmem:[%s5250_s2 + $0x60] sm:$0xff] }
0x181c   :  { %4406 = vtanh.f32 %v1911_v41  ;;  %v3470_v41 = vld [vmem:[%s5250_s2 + $0x50] sm:$0xff] }
0x181d   :  { %v2012_v61 = vpop.permute.xlu1 %2011 }
0x181e   :  { %v2014_v53 = vadd.f32 %v2012_v61, %v4683_v60  ;;  %v3453_v60 = vld [vmem:[%s5250_s2 + $0x68] sm:$0xff]  ;;  %v3471_v61 = vld [vmem:[%s5250_s2 + $0x58] sm:$0xff] }
0x181f   :  { %v4223_v10 = vpack.c.bf16 %v3453_v60, %v3452_v14 }
0x1820   :  { %4408 = vtanh.f32 %v2014_v53 }
0x1821   :  { %4224 = vmatpush3.bf16.msra.mxu1 %v4223_v10  ;;  %v3459_v10 = vld [vmem:[%s5251_s3 + $0x4] sm:$0x3] }
0x1822   :  { %4225 = vmatprep.subr.bf16.mxu1 %v4515_v31  ;;  %v5052_v54 = vrot.slane %v3459_v10, %v4695_v7  ;;  %v5057_v11 = vrot.slane %v3459_v10, %v4669_v48 }
0x1825   :  { %4227 = vmatpush3.bf16.msra.mxu1 %v4226_v12 }
0x1826   :  { %v4963_v13 = vpop.eup %4406  ;;  %4229 = vmatprep.subr.bf16.mxu1 %v4228_v22 }
0x1827   :  { %v1913_v55 = vsub.f32 %v1709_v57, %v4963_v13  ;;  %v2061_v57 = vld [vmem:[#allocation3 + $0xe0] sm:$0xff] }
0x1828   :  { %3942 = vmatmul.mubr.f32.vlgmr.msra.gmra.mrb[24].mxu1 %v4517_v45  ;;  %v4217_v29 = vpack.c.bf16 %v2062_v26, %v2061_v57 }
0x1829   :  { %1915 = vrot.lane.b32.xlu0 %v1913_v55, %s4519_s21  ;;  %4231 = vmatpush3.bf16.msra.mxu1 %v4228_v22 }
0x182a   :  { %v4967_v58 = vpop.eup %4408  ;;  %4218 = vmatpush3.bf16.msra.mxu0 %v4217_v29  ;;  %4233 = vmatprep.subr.bf16.mxu1 %v4232_v34 }
0x182b   :  { %v2016_v63 = vsub.f32 %v4940_v27, %v4967_v58  ;;  %4219 = vmatprep.subr.bf16.mxu0 %v4515_v31 }
0x182d   :  { %2018 = vrot.lane.b32.xlu1 %v2016_v63, %s4519_s21  ;;  %4235 = vmatpush3.bf16.msra.mxu1 %v4232_v34 }
0x182e   :  { %4221 = vmatpush3.bf16.msra.mxu0 %v4220_v5 }
0x182f   :  { %4244 = vmatprep.subr.bf16.mxu0 %v4515_v31 }
0x189b   :  { %v1916_v19 = vpop.permute.xlu0 %1915 }
0x189c   :  { %v1918_v24 = vmul.f32 %v4403_v39, %v1916_v19 }
0x189e   :  { %1920 = vrot.lane.b32.xlu0 %v1918_v24, %s4520_s22 }
0x189f   :  { %v2019_v17 = vpop.permute.xlu1 %2018 }
0x18a0   :  { %v2021_v25 = vmul.f32 %v4405_v47, %v2019_v17  ;;  %v3468_v47 = vld [vmem:[%s5250_s2 + $0x40] sm:$0xff] }
0x18a2   :  { %534 = vrot.lane.b32.xlu0 %v4726_v15, %s4519_s21  ;;  %2023 = vrot.lane.b32.xlu1 %v2021_v25, %s4520_s22  ;;  %v4236_v15 = vpack.c.bf16 %v2247_v4, %v2246_v38 }
0x18a4   :  { %4237 = vmatprep.subr.bf16.mxu1 %v4236_v15 }
0x18a5   :  { %4239 = vmatpush3.bf16.msra.mxu1 %v4236_v15 }
0x18a6   :  { %4241 = vmatprep.subr.bf16.mxu1 %v4240_v30 }
0x18a9   :  { %4243 = vmatpush3.bf16.msra.mxu1 %v4240_v30 }
0x18aa   :  { %4262 = vmatprep.subr.bf16.mxu1 %v4515_v31 }
0x18fb   :  { %v5044_v63 = vpop.f32.mrb[24].mxu1 }
0x18fc   :  { %v3943_v14 = vpop.f32.mrb[25].mxu1 }
0x1910   :  { %v1921_v46 = vpop.permute.xlu0 %1920 }
0x1911   :  { %v1923_v16 = vadd.f32 %v4963_v13, %v1921_v46  ;;  %v5024_v13 = vpack.c.bf16 %v3471_v61, %v3470_v41 }
0x1913   :  { %2028 = vrot.lane.b32.xlu1 %v1923_v16, %s4518_s20 }
0x1914   :  { %v535_v8 = vpop.permute.xlu0 %534  ;;  %v2024_v39 = vpop.permute.xlu1 %2023 }
0x1915   :  { %538 = vst.msk [vmem:[#allocation2 + $0x38] sm:$0xff] %vm537_vm3, %v535_v8  ;;  %v2026_v35 = vadd.f32 %v4967_v58, %v2024_v39 }
0x1917   :  { %1819 = vrot.lane.b32.xlu1 %v4940_v27, %s4519_s21  ;;  %2033 = vrot.lane.b32.xlu0 %v2026_v35, %s4519_s21  ;;  %v5011_v27 = vpack.c.bf16 %v3469_v1, %v3468_v47 }
0x1985   :  { %v2029_v21 = vpop.permute.xlu1 %2028 }
0x1986   :  { %2031 = vst.msk [vmem:[#allocation2 + $0x38] sm:$0xff] %vm326_vm2, %v2029_v21 }
0x1989   :  { %v2034_v49 = vpop.permute.xlu0 %2033  ;;  %v1820_v52 = vpop.permute.xlu1 %1819 }
0x198a   :  { %2036 = vst.msk [vmem:[#allocation2] sm:$0xff] %vm537_vm3, %v2034_v49  ;;  %1822 = vst.msk [vmem:[#allocation2 + $0x8] sm:$0xff] %vm537_vm3, %v1820_v52 }
0x198d   :  { %v5019_v53 = vld [vmem:[#allocation2 + $0x38] sm:$0xff] }
0x198e   :  { %3931 = vmatmul.mubr.msk.f32.vlgmr.msra.gmra.mrb[24].mxu0 %vm59_vm0, %v5019_v53 }
0x198f   :  { %4246 = vmatpush3.bf16.msra.mxu0 %v5011_v27  ;;  %3980 = vmatprep.mubr.msk.f32.mxu0 %vm4516_vm1, %v4517_v45 }
0x1990   :  { %4247 = vmatprep.subr.bf16.mxu0 %v4515_v31 }
0x1991   :  { %v2037_v55 = vld [vmem:[#allocation2] sm:$0xff]  ;;  %v2038_v58 = vld [vmem:[#allocation2 + $0x8] sm:$0xff] }
0x1992   :  { %3960 = vmatprep.mubr.msk.f32.mxu1 %vm59_vm0, %v2037_v55 }
0x1993   :  { %4249 = vmatpush3.bf16.msra.mxu0 %v5024_v13  ;;  %3961 = vmatmul.mubr.msk.f32.vlgmr.msra.gmra.mrb[26].mxu1 %vm59_vm0, %v2038_v58 }
0x1994   :  { %4250 = vmatprep.subr.bf16.mxu0 %v4515_v31  ;;  %4264 = vmatpush3.bf16.msra.mxu1 %v5011_v27 }
0x1995   :  { %4265 = vmatprep.subr.bf16.mxu1 %v4515_v31 }
0x1996   :  { %3981 = vmatmul.mubr.f32.vlgmr.msra.gmra.mrb[26].mxu0 %v4517_v45 }
0x1997   :  { %4252 = vmatpush3.bf16.msra.mxu0 %v5011_v27  ;;  %3991 = vmatprep.mubr.msk.f32.mxu0 %vm4516_vm1, %v4517_v45 }
0x1998   :  { %4253 = vmatprep.subr.bf16.mxu0 %v4515_v31  ;;  %4267 = vmatpush3.bf16.msra.mxu1 %v5024_v13 }
0x1999   :  { %4274 = vmatprep.subr.bf16.mxu1 %v4515_v31 }
0x199b   :  { %4255 = vmatpush3.bf16.msra.mxu0 %v5024_v13 }
0x199c   :  { %4256 = vmatprep.subr.bf16.mxu0 %v4515_v31 }
0x1a61   :  { %v5046_v60 = vpop.f32.mrb[24].mxu0 }
0x1a62   :  { %v3932_v59 = vpop.f32.mrb[25].mxu0 }
0x1a66   :  { %v3962_v62 = vpop.f32.mrb[26].mxu1 }
0x1a67   :  { %v2343_v2 = vpop.f32.mrb[27].mxu1  ;;  %v2349_v40 = vadd.f32 %v3962_v62, %v5057_v11 }
0x1a68   :  { %v2344_v12 = vadd.f32 %v2343_v2, %v5057_v11 }
0x1a69   :  { %v2457_v23 = vpop.f32.mrb[26].mxu0 }
0x1a6a   :  { %v2458_v3 = vadd.f32 %v2457_v23, %v5052_v54  ;;  %v3982_v9 = vpop.f32.mrb[27].mxu0 }
0x1a6c   :  { %2469 = vrot.lane.b32.xlu0 %v2458_v3, %s4518_s20  ;;  %v2461_v18 = vadd.f32 %v2458_v3, %v2344_v12 }
0x1a6e   :  { %v3472_v19 = vmul.f32 -1.442695, %v2461_v18 }
0x1a70   :  { %4410 = vpow2.f32 %v3472_v19 }
0x1a7a   :  { %v4411_v20 = vpop.eup %4410 }
0x1a7b   :  { %v2465_v22 = vadd.f32 1.0, %v4411_v20 }
0x1a7d   :  { %4412 = vrcp.f32 %v2465_v22 }
0x1a87   :  { %v4413_v24 = vpop.eup %4412 }
0x1ade   :  { %v2470_v17 = vpop.permute.xlu0 %2469 }
0x1adf   :  { %v2472_v25 = vmul.f32 %v4413_v24, %v2470_v17 }
0x1ae1   :  { %2474 = vrot.lane.b32.xlu1 %v2472_v25, %s4518_s20 }
0x1b53   :  { %v2475_v57 = vpop.permute.xlu1 %2474 }
0x1b54   :  { %v2477_v26 = vadd.f32 %v2475_v57, %v2344_v12 }
0x1b56   :  { %4414 = vtanh.f32 %v2477_v26 }
0x1b60   :  { %v4415_v29 = vpop.eup %4414 }
0x1b61   :  { %v2479_v32 = vsub.f32 0.0, %v4415_v29 }
0x1b63   :  { %2481 = vrot.lane.b32.xlu0 %v2479_v32, %s4519_s21 }
0x1bd5   :  { %v2482_v33 = vpop.permute.xlu0 %2481 }
0x1bd6   :  { %v2484_v34 = vmul.f32 %v4413_v24, %v2482_v33 }
0x1bd8   :  { %2486 = vrot.lane.b32.xlu1 %v2484_v34, %s4520_s22 }
0x1c4a   :  { %v2487_v36 = vpop.permute.xlu1 %2486 }
0x1c4b   :  { %v2489_v37 = vadd.f32 %v4415_v29, %v2487_v36 }
0x1c4d   :  { %2491 = vrot.lane.b32.xlu0 %v2489_v37, %s4518_s20 }
0x1cbf   :  { %v2492_v5 = vpop.permute.xlu0 %2491 }
0x1cc0   :  { %3992 = vmatmul.mubr.msk.f32.vlgmr.msra.gmra.mrb[28].mxu0 %vm326_vm2, %v2492_v5 }
0x1cc1   :  { %4258 = vmatpush3.bf16.msra.mxu0 %v5011_v27  ;;  %4002 = vmatprep.mubr.msk.f32.mxu0 %vm4516_vm1, %v4517_v45 }
0x1cc2   :  { %4259 = vmatprep.subr.bf16.mxu0 %v4515_v31 }
0x1cc5   :  { %4261 = vmatpush3.bf16.msra.mxu0 %v5024_v13 }
0x1cc6   :  { %4268 = vmatprep.subr.bf16.mxu0 %v4515_v31 }
0x1d93   :  { %v2561_v38 = vpop.f32.mrb[28].mxu0 }
0x1d94   :  { %v2562_v4 = vadd.f32 %v2561_v38, %v5052_v54  ;;  %v3993_v15 = vpop.f32.mrb[29].mxu0 }
0x1d96   :  { %2573 = vrot.lane.b32.xlu1 %v2562_v4, %s4518_s20  ;;  %v2565_v44 = vadd.f32 %v2562_v4, %v2349_v40 }
0x1d98   :  { %v3474_v30 = vmul.f32 -1.442695, %v2565_v44 }
0x1d9a   :  { %4416 = vpow2.f32 %v3474_v30 }
0x1da4   :  { %v4417_v46 = vpop.eup %4416 }
0x1da5   :  { %v2569_v16 = vadd.f32 1.0, %v4417_v46 }
0x1da7   :  { %4418 = vrcp.f32 %v2569_v16 }
0x1db1   :  { %v4419_v8 = vpop.eup %4418 }
0x1e08   :  { %v2574_v39 = vpop.permute.xlu1 %2573 }
0x1e09   :  { %v2576_v35 = vmul.f32 %v4419_v8, %v2574_v39 }
0x1e0b   :  { %2578 = vrot.lane.b32.xlu0 %v2576_v35, %s4518_s20 }
0x1e7d   :  { %v2579_v21 = vpop.permute.xlu0 %2578 }
0x1e7e   :  { %v2581_v47 = vadd.f32 %v2579_v21, %v2349_v40 }
0x1e80   :  { %4420 = vtanh.f32 %v2581_v47 }
0x1e8a   :  { %v4421_v1 = vpop.eup %4420 }
0x1e8b   :  { %v2583_v49 = vsub.f32 %v2489_v37, %v4421_v1 }
0x1e8d   :  { %2585 = vrot.lane.b32.xlu1 %v2583_v49, %s4519_s21 }
0x1eff   :  { %v2586_v52 = vpop.permute.xlu1 %2585 }
0x1f00   :  { %v2588_v41 = vmul.f32 %v4419_v8, %v2586_v52 }
0x1f02   :  { %2590 = vrot.lane.b32.xlu0 %v2588_v41, %s4520_s22 }
0x1f06   :  { %1605 = vrot.lane.b32.xlu0 %v4903_v42, %s4519_s21 }
0x1f74   :  { %v2591_v61 = vpop.permute.xlu0 %2590 }
0x1f75   :  { %v2593_v55 = vadd.f32 %v4421_v1, %v2591_v61 }
0x1f77   :  { %2595 = vrot.lane.b32.xlu1 %v2593_v55, %s4518_s20 }
0x1f78   :  { %v1606_v58 = vpop.permute.xlu0 %1605 }
0x1f79   :  { %1608 = vst.msk [vmem:[#allocation2 + $0x10] sm:$0xff] %vm537_vm3, %v1606_v58 }
0x1f7b   :  { %1391 = vrot.lane.b32.xlu1 %v4866_v50, %s4519_s21 }
0x1f80   :  { %v2039_v14 = vld [vmem:[#allocation2 + $0x10] sm:$0xff] }
0x1f81   :  { %3963 = vmatprep.mubr.msk.f32.mxu1 %vm59_vm0, %v2039_v14 }
0x1fe9   :  { %v2596_v59 = vpop.permute.xlu1 %2595 }
0x1fea   :  { %4003 = vmatmul.mubr.msk.f32.vlgmr.msra.gmra.mrb[30].mxu0 %vm326_vm2, %v2596_v59 }
0x1feb   :  { %4270 = vmatpush3.bf16.msra.mxu0 %v5011_v27  ;;  %4024 = vmatprep.mubr.msk.f32.mxu0 %vm4516_vm1, %v4517_v45 }
0x1fec   :  { %4271 = vmatprep.subr.bf16.mxu0 %v4515_v31 }
0x1fed   :  { %v1392_v42 = vpop.permute.xlu1 %1391 }
0x1fee   :  { %1394 = vst.msk [vmem:[#allocation2 + $0x18] sm:$0xff] %vm537_vm3, %v1392_v42 }
0x1fef   :  { %4273 = vmatpush3.bf16.msra.mxu0 %v5024_v13 }
0x1ff0   :  { %4280 = vmatprep.subr.bf16.mxu0 %v4515_v31 }
0x1ff5   :  { %v2040_v50 = vld [vmem:[#allocation2 + $0x18] sm:$0xff] }
0x1ff6   :  { %3964 = vmatmul.mubr.msk.f32.gmra.mrb[28].mxu1 %vm59_vm0, %v2040_v50 }
0x20bd   :  { %v2665_v10 = vpop.f32.mrb[30].mxu0 }
0x20be   :  { %v2666_v62 = vadd.f32 %v2665_v10, %v5052_v54  ;;  %v4004_v2 = vpop.f32.mrb[31].mxu0 }
0x20c0   :  { %2677 = vrot.lane.b32.xlu0 %v2666_v62, %s4518_s20 }
0x20c9   :  { %v3965_v23 = vpop.f32.mrb[28].mxu1 }
0x20ca   :  { %v2353_v3 = vpop.f32.mrb[29].mxu1  ;;  %v2359_v30 = vadd.f32 %v3965_v23, %v5057_v11 }
0x20cb   :  { %v2354_v9 = vadd.f32 %v2353_v3, %v5057_v11 }
0x20cd   :  { %v2669_v12 = vadd.f32 %v2666_v62, %v2354_v9 }
0x20cf   :  { %v3476_v18 = vmul.f32 -1.442695, %v2669_v12 }
0x20d1   :  { %4422 = vpow2.f32 %v3476_v18 }
0x20db   :  { %v4423_v19 = vpop.eup %4422 }
0x20dc   :  { %v2673_v20 = vadd.f32 1.0, %v4423_v19 }
0x20de   :  { %4424 = vrcp.f32 %v2673_v20 }
0x20e8   :  { %v4425_v22 = vpop.eup %4424 }
0x2132   :  { %v2678_v24 = vpop.permute.xlu0 %2677 }
0x2133   :  { %v2680_v17 = vmul.f32 %v4425_v22, %v2678_v24 }
0x2135   :  { %2682 = vrot.lane.b32.xlu1 %v2680_v17, %s4518_s20 }
0x21a7   :  { %v2683_v25 = vpop.permute.xlu1 %2682 }
0x21a8   :  { %v2685_v57 = vadd.f32 %v2683_v25, %v2354_v9 }
0x21aa   :  { %4426 = vtanh.f32 %v2685_v57 }
0x21b4   :  { %v4427_v26 = vpop.eup %4426 }
0x21b5   :  { %v2687_v29 = vsub.f32 %v2593_v55, %v4427_v26 }
0x21b7   :  { %2689 = vrot.lane.b32.xlu0 %v2687_v29, %s4519_s21 }
0x21bb   :  { %1177 = vrot.lane.b32.xlu0 %v4831_v56, %s4519_s21 }
0x21bf   :  { %749 = vrot.lane.b32.xlu0 %v4761_v6, %s4519_s21 }
0x2229   :  { %v2690_v32 = vpop.permute.xlu0 %2689 }
0x222a   :  { %v2692_v33 = vmul.f32 %v4425_v22, %v2690_v32 }
0x222c   :  { %2694 = vrot.lane.b32.xlu1 %v2692_v33, %s4520_s22 }
0x222d   :  { %v1178_v34 = vpop.permute.xlu0 %1177 }
0x222e   :  { %1180 = vst.msk [vmem:[#allocation2 + $0x20] sm:$0xff] %vm537_vm3, %v1178_v34 }
0x222f   :  { %1389 = vst.msk [vmem:[#allocation2 + $0x20] sm:$0xff] %vm326_vm2, %v4870_v51 }
0x2230   :  { %963 = vrot.lane.b32.xlu1 %v4796_v0, %s4519_s21 }
0x2231   :  { %v750_v36 = vpop.permute.xlu0 %749 }
0x2232   :  { %752 = vst.msk [vmem:[#allocation2 + $0x30] sm:$0xff] %vm537_vm3, %v750_v36 }
0x2233   :  { %1817 = vst.msk [vmem:[#allocation2 + $0x30] sm:$0xff] %vm326_vm2, %v4944_v28 }
0x2236   :  { %v2041_v6 = vld [vmem:[#allocation2 + $0x20] sm:$0xff] }
0x2237   :  { %3966 = vmatprep.mubr.msk.f32.mxu1 %vm59_vm0, %v2041_v6 }
0x223a   :  { %v2043_v51 = vld [vmem:[#allocation2 + $0x30] sm:$0xff] }
0x229e   :  { %v2695_v56 = vpop.permute.xlu1 %2694 }
0x229f   :  { %v2697_v37 = vadd.f32 %v4427_v26, %v2695_v56 }
0x22a1   :  { %2699 = vrot.lane.b32.xlu1 %v2697_v37, %s4518_s20 }
0x22a2   :  { %v964_v5 = vpop.permute.xlu1 %963 }
0x22a3   :  { %966 = vst.msk [vmem:[#allocation2 + $0x28] sm:$0xff] %vm537_vm3, %v964_v5 }
0x22a4   :  { %1603 = vst.msk [vmem:[#allocation2 + $0x28] sm:$0xff] %vm326_vm2, %v4907_v43 }
0x22ab   :  { %v2042_v0 = vld [vmem:[#allocation2 + $0x28] sm:$0xff] }
0x22ac   :  { %3967 = vmatmul.mubr.msk.f32.gmra.mrb[30].mxu1 %vm59_vm0, %v2042_v0 }
0x22ad   :  { %3969 = vmatprep.mubr.msk.f32.mxu1 %vm59_vm0, %v2043_v51 }
0x22b0   :  { %3970 = vmatmul.mubr.msk.f32.gmra.mrb[32].mxu1 %vm59_vm0, %v5019_v53 }
0x22b1   :  { %4013 = vmatprep.mubr.msk.f32.mxu1 %vm4516_vm1, %v4517_v45 }
0x2313   :  { %v2700_v28 = vpop.permute.xlu1 %2699 }
0x2314   :  { %4014 = vmatmul.mubr.msk.f32.vlgmr.msra.gmra.mrb[34].mxu1 %vm326_vm2, %v2700_v28 }
0x2315   :  { %4276 = vmatpush3.bf16.msra.mxu1 %v5011_v27  ;;  %4035 = vmatprep.mubr.msk.f32.mxu1 %vm4516_vm1, %v4517_v45 }
0x2316   :  { %4277 = vmatprep.subr.bf16.mxu1 %v4515_v31 }
0x2319   :  { %4279 = vmatpush3.bf16.msra.mxu1 %v5024_v13 }
0x231a   :  { %4286 = vmatprep.subr.bf16.mxu1 %v4515_v31 }
0x237f   :  { %v5129_v43 = vpop.f32.mrb[30].mxu1 }
0x2380   :  { %v2363_v53 = vpop.f32.mrb[31].mxu1  ;;  %v2369_v6 = vadd.f32 %v5129_v43, %v5057_v11 }
0x2381   :  { %v2364_v62 = vadd.f32 %v2363_v53, %v5057_v11 }
0x2383   :  { %v5131_v38 = vpop.f32.mrb[32].mxu1 }
0x2384   :  { %v5133_v4 = vpop.f32.mrb[33].mxu1 }
0x23e7   :  { %v2769_v15 = vpop.f32.mrb[34].mxu1 }
0x23e8   :  { %v2770_v40 = vadd.f32 %v2769_v15, %v5052_v54  ;;  %v4015_v44 = vpop.f32.mrb[35].mxu1 }
0x23ea   :  { %2781 = vrot.lane.b32.xlu0 %v2770_v40, %s4518_s20  ;;  %v2773_v46 = vadd.f32 %v2770_v40, %v2359_v30 }
0x23ec   :  { %v3478_v16 = vmul.f32 -1.442695, %v2773_v46 }
0x23ee   :  { %4428 = vpow2.f32 %v3478_v16 }
0x23f8   :  { %v4429_v8 = vpop.eup %4428 }
0x23f9   :  { %v2777_v39 = vadd.f32 1.0, %v4429_v8 }
0x23fb   :  { %4430 = vrcp.f32 %v2777_v39 }
0x2405   :  { %v4431_v35 = vpop.eup %4430 }
0x245c   :  { %v2782_v21 = vpop.permute.xlu0 %2781 }
0x245d   :  { %v2784_v47 = vmul.f32 %v4431_v35, %v2782_v21  ;;  %v2374_v21 = vadd.f32 %v5133_v4, %v5057_v11  ;;  %v3456_v4 = vld [vmem:[%s5251_s3 + $0x6] sm:$0x3] }
0x245f   :  { %2786 = vrot.lane.b32.xlu1 %v2784_v47, %s4518_s20 }
0x24d1   :  { %v2787_v1 = vpop.permute.xlu1 %2786 }
0x24d2   :  { %v2789_v49 = vadd.f32 %v2787_v1, %v2359_v30 }
0x24d4   :  { %4432 = vtanh.f32 %v2789_v49 }
0x24de   :  { %v4433_v52 = vpop.eup %4432 }
0x24df   :  { %v2791_v41 = vsub.f32 %v2697_v37, %v4433_v52 }
0x24e1   :  { %2793 = vrot.lane.b32.xlu0 %v2791_v41, %s4519_s21 }
0x2553   :  { %v2794_v61 = vpop.permute.xlu0 %2793 }
0x2554   :  { %v2796_v55 = vmul.f32 %v4431_v35, %v2794_v61 }
0x2556   :  { %2798 = vrot.lane.b32.xlu1 %v2796_v55, %s4520_s22 }
0x25c8   :  { %v2799_v58 = vpop.permute.xlu1 %2798 }
0x25c9   :  { %v2801_v14 = vadd.f32 %v4433_v52, %v2799_v58 }
0x25cb   :  { %2803 = vrot.lane.b32.xlu0 %v2801_v14, %s4518_s20 }
0x263d   :  { %v2804_v59 = vpop.permute.xlu0 %2803 }
0x263e   :  { %4025 = vmatmul.mubr.msk.f32.vlgmr.msra.gmra.mrb[32].mxu0 %vm326_vm2, %v2804_v59 }
0x263f   :  { %4282 = vmatpush3.bf16.msra.mxu0 %v5011_v27  ;;  %4046 = vmatprep.mubr.msk.f32.mxu0 %vm4516_vm1, %v4517_v45 }
0x2640   :  { %4283 = vmatprep.subr.bf16.mxu0 %v4515_v31 }
0x2643   :  { %4285 = vmatpush3.bf16.msra.mxu0 %v5024_v13 }
0x2644   :  { %4292 = vmatprep.subr.bf16.mxu0 %v4515_v31 }
0x2711   :  { %v2873_v42 = vpop.f32.mrb[32].mxu0 }
0x2712   :  { %v2874_v50 = vadd.f32 %v2873_v42, %v5052_v54  ;;  %v4026_v10 = vpop.f32.mrb[33].mxu0 }
0x2713   :  { %v2055_v10 = vrot.slane %v3456_v4, %v4695_v7 }
0x2714   :  { %2885 = vrot.lane.b32.xlu1 %v2874_v50, %s4518_s20  ;;  %v2877_v2 = vadd.f32 %v2874_v50, %v2364_v62 }
0x2716   :  { %v3480_v23 = vmul.f32 -1.442695, %v2877_v2  ;;  %v2209_v2 = vadd.f32 %v5044_v63, %v2055_v10 }
0x2718   :  { %4434 = vpow2.f32 %v3480_v23  ;;  %v2068_v23 = vrot.slane %v3456_v4, %v4669_v48 }
0x2722   :  { %v4435_v3 = vpop.eup %4434 }
0x2723   :  { %v2881_v9 = vadd.f32 1.0, %v4435_v3  ;;  %v2139_v3 = vadd.f32 %v5046_v60, %v2068_v23 }
0x2725   :  { %4436 = vrcp.f32 %v2881_v9  ;;  %v2212_v9 = vadd.f32 %v2209_v2, %v2139_v3 }
0x272f   :  { %v4437_v12 = vpop.eup %4436 }
0x2786   :  { %v2886_v18 = vpop.permute.xlu1 %2885 }
0x2787   :  { %v2888_v19 = vmul.f32 %v4437_v12, %v2886_v18 }
0x2789   :  { %2890 = vrot.lane.b32.xlu0 %v2888_v19, %s4518_s20 }
0x27fb   :  { %v2891_v20 = vpop.permute.xlu0 %2890 }
0x27fc   :  { %v2893_v22 = vadd.f32 %v2891_v20, %v2364_v62 }
0x27fe   :  { %4438 = vtanh.f32 %v2893_v22 }
0x2808   :  { %v4439_v24 = vpop.eup %4438 }
0x2809   :  { %v2895_v17 = vsub.f32 %v2801_v14, %v4439_v24 }
0x280b   :  { %2897 = vrot.lane.b32.xlu1 %v2895_v17, %s4519_s21 }
0x287d   :  { %v2898_v25 = vpop.permute.xlu1 %2897 }
0x287e   :  { %v2900_v57 = vmul.f32 %v4437_v12, %v2898_v25  ;;  %v3458_v12 = vmul.f32 -1.442695, %v2212_v9 }
0x2880   :  { %2902 = vrot.lane.b32.xlu0 %v2900_v57, %s4520_s22 }
0x28f2   :  { %v2903_v26 = vpop.permute.xlu0 %2902 }
0x28f3   :  { %v2905_v29 = vadd.f32 %v4439_v24, %v2903_v26 }
0x28f5   :  { %2907 = vrot.lane.b32.xlu1 %v2905_v29, %s4518_s20 }
0x2967   :  { %v2908_v32 = vpop.permute.xlu1 %2907 }
0x2968   :  { %4036 = vmatmul.mubr.msk.f32.vlgmr.msra.gmra.mrb[36].mxu1 %vm326_vm2, %v2908_v32  ;;  %v3222_v32 = vld [vmem:[%s5252_s4 + $0x20] sm:$0xff] }
0x2969   :  { %4288 = vmatpush3.bf16.msra.mxu1 %v5011_v27  ;;  %4057 = vmatprep.mubr.msk.f32.mxu1 %vm4516_vm1, %v4517_v45 }
0x296a   :  { %4289 = vmatprep.subr.bf16.mxu1 %v4515_v31 }
0x296d   :  { %4291 = vmatpush3.bf16.msra.mxu1 %v5024_v13 }
0x296e   :  { %4298 = vmatprep.subr.bf16.mxu1 %v4515_v31 }
0x2a3b   :  { %v2977_v33 = vpop.f32.mrb[36].mxu1 }
0x2a3c   :  { %v2978_v34 = vadd.f32 %v2977_v33, %v5052_v54  ;;  %v4037_v36 = vpop.f32.mrb[37].mxu1  ;;  %v3223_v33 = vld [vmem:[%s5252_s4 + $0x28] sm:$0xff] }
0x2a3d   :  { %v3225_v36 = vld [vmem:[%s5252_s4 + $0x38] sm:$0xff] }
0x2a3e   :  { %2989 = vrot.lane.b32.xlu0 %v2978_v34, %s4518_s20  ;;  %v2981_v56 = vadd.f32 %v2978_v34, %v2369_v6  ;;  %v4293_v34 = vpack.c.bf16 %v3223_v33, %v3222_v32 }
0x2a40   :  { %v3482_v27 = vmul.f32 -1.442695, %v2981_v56 }
0x2a42   :  { %4440 = vpow2.f32 %v3482_v27 }
0x2a4c   :  { %v4441_v37 = vpop.eup %4440 }
0x2a4d   :  { %v2985_v5 = vadd.f32 1.0, %v4441_v37 }
0x2a4f   :  { %4442 = vrcp.f32 %v2985_v5 }
0x2a59   :  { %v4443_v0 = vpop.eup %4442 }
0x2ab0   :  { %v2990_v51 = vpop.permute.xlu0 %2989 }
0x2ab1   :  { %v2992_v13 = vmul.f32 %v4443_v0, %v2990_v51  ;;  %v2379_v51 = vadd.f32 %v5131_v38, %v5057_v11  ;;  %v3218_v11 = vld [vmem:[%s5252_s4] sm:$0xff]  ;;  %v3219_v38 = vld [vmem:[%s5252_s4 + $0x8] sm:$0xff] }
0x2ab3   :  { %2994 = vrot.lane.b32.xlu1 %v2992_v13, %s4518_s20 }
0x2b25   :  { %v2995_v28 = vpop.permute.xlu1 %2994 }
0x2b26   :  { %v2997_v53 = vadd.f32 %v2995_v28, %v2369_v6 }
0x2b28   :  { %4444 = vtanh.f32 %v2997_v53 }
0x2b32   :  { %v4445_v15 = vpop.eup %4444 }
0x2b33   :  { %v2999_v40 = vsub.f32 %v2905_v29, %v4445_v15 }
0x2b35   :  { %3001 = vrot.lane.b32.xlu0 %v2999_v40, %s4519_s21 }
0x2ba7   :  { %v3002_v44 = vpop.permute.xlu0 %3001 }
0x2ba8   :  { %v3004_v43 = vmul.f32 %v4443_v0, %v3002_v44 }
0x2baa   :  { %3006 = vrot.lane.b32.xlu1 %v3004_v43, %s4520_s22 }
0x2c1c   :  { %v3007_v30 = vpop.permute.xlu1 %3006 }
0x2c1d   :  { %v3009_v46 = vadd.f32 %v4445_v15, %v3007_v30 }
0x2c1f   :  { %3011 = vrot.lane.b32.xlu0 %v3009_v46, %s4518_s20 }
0x2c91   :  { %v3012_v16 = vpop.permute.xlu0 %3011 }
0x2c92   :  { %4047 = vmatmul.mubr.msk.f32.vlgmr.msra.gmra.mrb[34].mxu0 %vm326_vm2, %v3012_v16 }
0x2c93   :  { %4068 = vmatprep.mubr.msk.f32.mxu0 %vm4516_vm1, %v4517_v45  ;;  %4294 = vmatpush3.bf16.msra.mxu0 %v4293_v34 }
0x2c94   :  { %4295 = vmatprep.subr.bf16.mxu0 %v4515_v31 }
0x2d65   :  { %v3081_v8 = vpop.f32.mrb[34].mxu0 }
0x2d66   :  { %v3082_v39 = vadd.f32 %v3081_v8, %v5052_v54  ;;  %v4048_v35 = vpop.f32.mrb[35].mxu0 }
0x2d67   :  { %v4299_v35 = vpack.c.bf16 %v3219_v38, %v3218_v11 }
0x2d68   :  { %3093 = vrot.lane.b32.xlu1 %v3082_v39, %s4518_s20  ;;  %v3085_v47 = vadd.f32 %v3082_v39, %v2374_v21  ;;  %v3220_v39 = vld [vmem:[%s5252_s4 + $0x10] sm:$0xff] }
0x2d6a   :  { %v3484_v1 = vmul.f32 -1.442695, %v3085_v47 }
0x2d6c   :  { %4446 = vpow2.f32 %v3484_v1 }
0x2d76   :  { %v4447_v49 = vpop.eup %4446 }
0x2d77   :  { %v3089_v52 = vadd.f32 1.0, %v4447_v49 }
0x2d79   :  { %4448 = vrcp.f32 %v3089_v52 }
0x2d83   :  { %v4449_v41 = vpop.eup %4448 }
0x2dda   :  { %v3094_v61 = vpop.permute.xlu1 %3093 }
0x2ddb   :  { %v3096_v55 = vmul.f32 %v4449_v41, %v3094_v61 }
0x2ddd   :  { %3098 = vrot.lane.b32.xlu0 %v3096_v55, %s4518_s20 }
0x2e4f   :  { %v3099_v58 = vpop.permute.xlu0 %3098 }
0x2e50   :  { %v3101_v14 = vadd.f32 %v3099_v58, %v2374_v21  ;;  %v3221_v21 = vld [vmem:[%s5252_s4 + $0x18] sm:$0xff] }
0x2e51   :  { %v4302_v47 = vpack.c.bf16 %v3221_v21, %v3220_v39 }
0x2e52   :  { %4450 = vtanh.f32 %v3101_v14 }
0x2e53   :  { %4452 = vpow2.f32 %v3458_v12 }
0x2e5c   :  { %v4451_v59 = vpop.eup %4450 }
0x2e5d   :  { %v3103_v42 = vsub.f32 %v3009_v46, %v4451_v59  ;;  %v4453_v18 = vpop.eup %4452 }
0x2e5e   :  { %v2216_v19 = vadd.f32 1.0, %v4453_v18 }
0x2e5f   :  { %3105 = vrot.lane.b32.xlu1 %v3103_v42, %s4519_s21 }
0x2e60   :  { %4454 = vrcp.f32 %v2216_v19 }
0x2e6a   :  { %v4455_v7 = vpop.eup %4454 }
0x2ed1   :  { %v3106_v50 = vpop.permute.xlu1 %3105 }
0x2ed2   :  { %v3108_v62 = vmul.f32 %v4449_v41, %v3106_v50 }
0x2ed4   :  { %3110 = vrot.lane.b32.xlu0 %v3108_v62, %s4520_s22 }
0x2ed8   :  { %2220 = vrot.lane.b32.xlu0 %v2209_v2, %s4518_s20 }
0x2f46   :  { %v3111_v20 = vpop.permute.xlu0 %3110 }
0x2f47   :  { %v3113_v22 = vadd.f32 %v4451_v59, %v3111_v20  ;;  %v3489_v59 = vld [vmem:[%s5253_s5] ss:$0 sm:$0xff] }
0x2f49   :  { %3115 = vrot.lane.b32.xlu1 %v3113_v22, %s4518_s20 }
0x2f4a   :  { %v2221_v24 = vpop.permute.xlu0 %2220 }
0x2f4b   :  { %v2223_v17 = vmul.f32 %v4455_v7, %v2221_v24 }
0x2f4d   :  { %2225 = vrot.lane.b32.xlu0 %v2223_v17, %s4518_s20 }
0x2fbb   :  { %v3116_v63 = vpop.permute.xlu1 %3115 }
0x2fbc   :  { %4058 = vmatmul.mubr.msk.f32.vlgmr.msra.gmra.mrb[38].mxu1 %vm326_vm2, %v3116_v63 }
0x2fbd   :  { %4079 = vmatprep.mubr.msk.f32.mxu1 %vm4516_vm1, %v4517_v45  ;;  %v3224_v45 = vld [vmem:[%s5252_s4 + $0x30] sm:$0xff]  ;;  %4300 = vmatpush3.bf16.msra.mxu1 %v4299_v35 }
0x2fbe   :  { %v4296_v6 = vpack.c.bf16 %v3225_v36, %v3224_v45  ;;  %4301 = vmatprep.subr.bf16.mxu1 %v4515_v31 }
0x2fbf   :  { %v2226_v48 = vpop.permute.xlu0 %2225 }
0x2fc0   :  { %v2228_v60 = vadd.f32 %v2226_v48, %v2139_v3  ;;  %4297 = vmatpush3.bf16.msra.mxu0 %v4296_v6 }
0x2fc1   :  { %4303 = vmatpush3.bf16.msra.mxu1 %v4302_v47 }
0x2fc2   :  { %4456 = vtanh.f32 %v2228_v60 }
0x2fcc   :  { %v4457_v25 = vpop.eup %4456 }
0x2fcd   :  { %v2230_v57 = vsub.f32 0.0, %v4457_v25 }
0x2fcf   :  { %2232 = vrot.lane.b32.xlu0 %v2230_v57, %s4519_s21 }
0x3041   :  { %v2233_v26 = vpop.permute.xlu0 %2232 }
0x3042   :  { %v2235_v29 = vmul.f32 %v4455_v7, %v2233_v26 }
0x3044   :  { %2237 = vrot.lane.b32.xlu0 %v2235_v29, %s4520_s22 }
0x308f   :  { %v3185_v56 = vpop.f32.mrb[38].mxu1 }
0x3090   :  { %v3186_v27 = vadd.f32 %v3185_v56, %v5052_v54  ;;  %v4059_v37 = vpop.f32.mrb[39].mxu1 }
0x3092   :  { %3197 = vrot.lane.b32.xlu1 %v3186_v27, %s4518_s20  ;;  %v3189_v13 = vadd.f32 %v3186_v27, %v2379_v51 }
0x3094   :  { %v3486_v28 = vmul.f32 -1.442695, %v3189_v13 }
0x3096   :  { %4458 = vpow2.f32 %v3486_v28 }
0x30a0   :  { %v4459_v53 = vpop.eup %4458 }
0x30a1   :  { %v3193_v15 = vadd.f32 1.0, %v4459_v53 }
0x30a3   :  { %4460 = vrcp.f32 %v3193_v15 }
0x30ad   :  { %v4461_v40 = vpop.eup %4460 }
0x30b6   :  { %v2238_v5 = vpop.permute.xlu0 %2237 }
0x30b7   :  { %v2240_v0 = vadd.f32 %v4457_v25, %v2238_v5 }
0x30b9   :  { %3227 = vrot.lane.b32.xlu0 %v2240_v0, %s4518_s20 }
0x3104   :  { %v3198_v44 = vpop.permute.xlu1 %3197 }
0x3105   :  { %v3200_v43 = vmul.f32 %v4461_v40, %v3198_v44 }
0x3107   :  { %3202 = vrot.lane.b32.xlu1 %v3200_v43, %s4518_s20 }
0x312b   :  { %v3228_v54 = vpop.permute.xlu0 %3227 }
0x312c   :  { %4069 = vmatmul.mubr.msk.f32.vlgmr.msra.gmra.mrb[36].mxu0 %vm326_vm2, %v3228_v54 }
0x3179   :  { %v3203_v30 = vpop.permute.xlu1 %3202 }
0x317a   :  { %v3205_v46 = vadd.f32 %v3203_v30, %v2379_v51 }
0x317c   :  { %4462 = vtanh.f32 %v3205_v46 }
0x3186   :  { %v4463_v16 = vpop.eup %4462 }
0x3187   :  { %v3207_v8 = vsub.f32 %v3113_v22, %v4463_v16 }
0x3189   :  { %3209 = vrot.lane.b32.xlu1 %v3207_v8, %s4519_s21 }
0x31fb   :  { %v3210_v1 = vpop.permute.xlu1 %3209 }
0x31fc   :  { %v3212_v49 = vmul.f32 %v4461_v40, %v3210_v1 }
0x31fe   :  { %3214 = vrot.lane.b32.xlu1 %v3212_v49, %s4520_s22  ;;  %s4486_s22 = scalar_lea.vmem %s3393_s1, 32 }
0x31ff   :  { %v3297_v52 = vpop.f32.mrb[36].mxu0  ;;  %p4487_p8 = scmp.ne.s32.totalorder %s3393_s1, %s4486_s22  ;;  %p4492_p10 = scmp.lt.s32.totalorder %s4486_s22, %s4486_s22 }
0x3200   :  { %v4070_v41 = vpop.f32.mrb[37].mxu0 }
0x3201   :  { %p4493_p11 = por %p4492_p10, %p4491_p9 }
0x3203   :  { %p4494_p12 = pnand %p4493_p11, %p4487_p8 }
0x3270   :  { %v3215_v61 = vpop.permute.xlu1 %3214 }
0x3271   :  { %v3217_v55 = vadd.f32 %v4463_v16, %v3215_v61 }
0x3273   :  { %3302 = vrot.lane.b32.xlu1 %v3217_v55, %s4518_s20 }
0x32e5   :  { %v3303_v58 = vpop.permute.xlu1 %3302 }
0x32e6   :  { %4080 = vmatmul.mubr.msk.f32.vlgmr.msra.gmra.mrb[40].mxu1 %vm326_vm2, %v3303_v58 }
0x33b9   :  { %v3372_v14 = vpop.f32.mrb[40].mxu1 }
0x33ba   :  { %v3373_v31 = vadd.f32 %v3372_v14, %v3297_v52  ;;  %v4081_v42 = vpop.f32.mrb[41].mxu1 }
0x33bc   :  { %v3383_v4 = vadd.f32 %v3489_v59, %v3373_v31 }
0x33be   :  { %3385 = vst.msk [vmem:[#allocation6] sm:$0x3] %vm3384_vm4, %v3383_v4 }
0x33bf   :  { %4497 = shalt.err (!%p4494_p12)
}
0x33c0   :  { %s4498_s12 = scalar_lea.hbm %s5254_s6, 32 }
0x33c1   :  { %p4499_p13 = scmp.ne.s32.totalorder %s5254_s6, %s4498_s12  ;;  %p4502_p0 = scmp.lt.u32.totalorder %s4498_s12, %s5254_s6 }
0x33c3   :  { %p4504_p1 = pnand %p4502_p0, %p4499_p13 }
0x33c5   :  { %4507 = shalt.err (!%p4504_p1)
}
0x33c6   :  { %3395 = dma.vmem_to_hbm [thread:$0]  %s3393_s1, 32, %s5254_s6, [#allocation5]  }
0x33c7   :  { %4510 = dma.done.wait [#allocation5], 32  }
0x33c8   :  { %4511 = vsyncadd [#allocation5], 4294967264 }
0x33c9   :  { %3399 = vsyncpa [#allocation4], 1 }
0x33ca   :  { %3400 = vsyncpa [#allocation5], 1 }

</bundles_post_ra>
